<compile_context>
chip_gen: v7x
topology: tpu7x:2x2x1
jax: 0.10.0
libtpu: 0.0.40
codegen_flags: <defaults>
</compile_context>

<pallas_src>
import jax
import jax.numpy as jnp
from jax.experimental import pallas as pl
from jax.experimental.pallas import tpu as pltpu

_LANE = 128
_SUBLANE = 8


def _round_up(x, m):
    return ((x + m - 1) // m) * m


def _cdiv(a, b):
    return (a + b - 1) // b


def _make_mlp_kernel(n_layers):
    """Kernel computing n_layers linears: ReLU for hidden layers, sigmoid last."""

    def kernel(*refs):
        x_ref = refs[0]
        o_ref = refs[-1]
        param_refs = refs[1:-1]  # interleaved (w_t, bias) pairs

        h = x_ref[...]  # streaming dtype (bf16 or f32)
        for i in range(n_layers):
            w_t = param_refs[2 * i][...]                        # (in_pad, out_pad)
            b = param_refs[2 * i + 1][...].astype(jnp.float32)  # (1, out_pad) f32
            h = jnp.dot(h.astype(w_t.dtype), w_t,
                        preferred_element_type=jnp.float32) + b
            if i == n_layers - 1:
                h = jax.nn.sigmoid(h)        # final_non_linearity = Sigmoid
            else:
                h = jnp.maximum(h, 0.0)      # non_linearity = ReLU
        o_ref[...] = h.astype(o_ref.dtype)

    return kernel


def function_representation_forward(coordinates, weights, biases, *,
                                    tile_n=2048, param_dtype=jnp.bfloat16):
    """Pallas implementation of FunctionRepresentation.forward.

    Args:
      coordinates: (N, 2*num_frequencies) float array.
      weights: list of (out_i, in_i) arrays (PyTorch F.linear convention).
      biases:  list of (out_i,) arrays.
      tile_n: target row tile size (rows per grid step).
      param_dtype: dtype of the HBM-side coordinate/weight streams
        (default bf16); accumulation and elementwise math stay f32.
    Returns:
      Features matching the torch output, with trailing .squeeze() applied.
    """
    n_layers = len(weights)
    N, in_dim = coordinates.shape
    feature_dim = int(weights[-1].shape[0])
    out_dtype = coordinates.dtype

    if param_dtype is None:
        param_dtype = out_dtype
    param_dtype = jnp.dtype(param_dtype)

    # Layer widths: hidden dims lane-padded to 128; the FINAL layer keeps its
    # true width so the output slab is exactly (N, feature_dim).
    dims = [in_dim] + [int(w.shape[0]) for w in weights[:-1]] + [feature_dim]
    dims_pad = ([_round_up(in_dim, _LANE)]
                + [_round_up(d, _LANE) for d in dims[1:-1]]
                + [feature_dim])
    in_pad = dims_pad[0]

    # Coordinates: cast to the streaming dtype; lane-pad only when in_dim is
    # not already a multiple of 128 (pad + cast fuse into one XLA op).
    # NO row padding — the ragged final grid block is handled by Pallas.
    x = jnp.asarray(coordinates)
    if in_pad != in_dim:
        x = jnp.pad(x, ((0, 0), (0, in_pad - in_dim)))
    x = x.astype(param_dtype)

    # Row tile: big by default (per-step overhead ~0.35us), but keep >= 2 grid
    # blocks whenever N allows it so the "parallel" axis can feed both TCs on
    # v7x.  Always a multiple of 8 sublanes.
    tile_rows = min(_round_up(max(int(tile_n), _SUBLANE), _SUBLANE),
                    _round_up(_cdiv(N, 2), _SUBLANE))
    tile_rows = max(tile_rows, _SUBLANE)
    grid = (_cdiv(N, tile_rows),)

    # Pre-transpose weights to (in, out) and zero-pad to (in_pad, out_pad);
    # biases become (1, out_pad) f32 slabs.  Zero padding is exact: padded
    # activations are ReLU(0)=0 and padded weight rows/cols are 0.
    w_ts, b2ds = [], []
    for li, (w, b) in enumerate(zip(weights, biases)):
        w = jnp.asarray(w)
        o_dim, i_dim = w.shape
        i_p, o_p = dims_pad[li], dims_pad[li + 1]
        w_t = jnp.pad(w.T, ((0, i_p - i_dim), (0, o_p - o_dim))).astype(param_dtype)
        b2 = jnp.pad(jnp.asarray(b).astype(jnp.float32).reshape(1, -1),
                     ((0, 0), (0, o_p - o_dim)))
        w_ts.append(w_t)
        b2ds.append(b2)

    kernel = _make_mlp_kernel(n_layers)

    in_specs = [pl.BlockSpec((tile_rows, in_pad), lambda i: (i, 0))]
    args = [x]
    for w_t, b2 in zip(w_ts, b2ds):
        # Whole (padded) weight / bias resident per grid step (constant index_map).
        in_specs.append(pl.BlockSpec(w_t.shape, lambda i: (0, 0)))
        in_specs.append(pl.BlockSpec(b2.shape, lambda i: (0, 0)))
        args += [w_t, b2]

    # ---- Advisory cost estimate --------------------------------------------
    flops = 2 * N * sum(dims_pad[i] * dims_pad[i + 1] for i in range(n_layers))
    transcendentals = N * feature_dim  # sigmoid -> exp per (real) output element
    bytes_params = (sum(int(a.nbytes) for a in w_ts)
                    + sum(int(a.nbytes) for a in b2ds))
    bytes_accessed = int(x.nbytes) + N * feature_dim * 4 + bytes_params

    # ---- VMEM budget (lane/sublane-rounded, double-buffered) ---------------
    def vmem_tile(rows, cols, itemsize):
        return _round_up(rows, _SUBLANE) * _round_up(cols, _LANE) * itemsize

    bytes_x_tile = vmem_tile(tile_rows, in_pad, param_dtype.itemsize)
    bytes_o_tile = vmem_tile(tile_rows, feature_dim, 4)
    bytes_params_vmem = (
        sum(vmem_tile(w.shape[0], w.shape[1], w.dtype.itemsize) for w in w_ts)
        + sum(vmem_tile(b.shape[0], b.shape[1], 4) for b in b2ds))
    bytes_act = vmem_tile(tile_rows, max(dims_pad), 4) * 3
    needed = 2 * (bytes_x_tile + bytes_o_tile + bytes_params_vmem) + bytes_act
    vmem_limit = min(48 * 1024 * 1024, max(16 * 1024 * 1024, int(needed * 1.5)))

    out = pl.pallas_call(
        kernel,
        out_shape=jax.ShapeDtypeStruct((N, feature_dim), jnp.float32),
        grid=grid,
        in_specs=in_specs,
        out_specs=pl.BlockSpec((tile_rows, feature_dim), lambda i: (i, 0)),
        compiler_params=pltpu.CompilerParams(
            dimension_semantics=("parallel",),
            vmem_limit_bytes=vmem_limit),
        cost_estimate=pl.CostEstimate(
            flops=flops,
            transcendentals=transcendentals,
            bytes_accessed=bytes_accessed),
    )(*args)

    # Glue: restore caller dtype and match torch's trailing `.squeeze()`.
    return jnp.squeeze(out.astype(out_dtype))


def _init_params(key, layer_dims):
    """Deterministic PyTorch-Linear-style init: U(-1/sqrt(fan_in), 1/sqrt(fan_in))."""
    weights, biases = [], []
    for fan_in, fan_out in zip(layer_dims[:-1], layer_dims[1:]):
        key, kw, kb = jax.random.split(key, 3)
        bound = 1.0 / jnp.sqrt(jnp.float32(fan_in))
        weights.append(jax.random.uniform(
            kw, (fan_out, fan_in), jnp.float32, -bound, bound))
        biases.append(jax.random.uniform(
            kb, (fan_out,), jnp.float32, -bound, bound))
    return weights, biases


def _reference_forward(coordinates, weights, biases):
    """Plain-JAX reference replicating the torch forward exactly."""
    h = coordinates
    for i, (w, b) in enumerate(zip(weights, biases)):
        h = h @ w.T + b
        if i == len(weights) - 1:
            h = jax.nn.sigmoid(h)
        else:
            h = jnp.maximum(h, 0.0)
    return jnp.squeeze(h)


if __name__ == "__main__":
    # Module config (small): num_frequencies=64 -> input dim 128,
    # hidden layer_sizes=(64, 64), feature_dim=3 (RGB).
    num_frequencies = 64
    layer_sizes = (64, 64)
    feature_dim = 3
    num_coords = 1000  # NOT a multiple of the tile -> exercises the ragged last block

    in_dim = num_frequencies * 2
    layer_dims = [in_dim] + list(layer_sizes) + [feature_dim]

    key = jax.random.PRNGKey(0)
    key, kc = jax.random.split(key)
    coordinates = jax.random.normal(kc, (num_coords, in_dim), jnp.float32)
    weights, biases = _init_params(key, layer_dims)

    ref = _reference_forward(coordinates, weights, biases)

    # f32 streaming path: must match the reference tightly.
    out_f32 = jax.block_until_ready(function_representation_forward(
        coordinates, weights, biases, param_dtype=jnp.float32))
    assert out_f32.shape == ref.shape, (out_f32.shape, ref.shape)
    assert jnp.allclose(out_f32, ref, atol=1e-5, rtol=1e-5), "f32 mismatch vs reference"

    # Default bf16 streaming path: halves HBM coordinate/weight traffic.
    out_bf16 = jax.block_until_ready(function_representation_forward(
        coordinates, weights, biases))
    assert out_bf16.shape == ref.shape, (out_bf16.shape, ref.shape)
    assert out_bf16.dtype == ref.dtype
    assert jnp.allclose(out_bf16, ref, atol=5e-2, rtol=5e-2), "bf16 mismatch vs reference"

    # Non-multiple-of-128 input dim + ragged rows: exercises the lane-pad path.
    nf2, ls2, fd2, n2 = 50, (32,), 3, 77
    in2 = nf2 * 2
    key, kc2 = jax.random.split(key)
    coords2 = jax.random.normal(kc2, (n2, in2), jnp.float32)
    w2, b2 = _init_params(key, [in2] + list(ls2) + [fd2])
    ref2 = _reference_forward(coords2, w2, b2)
    out2 = jax.block_until_ready(function_representation_forward(
        coords2, w2, b2, param_dtype=jnp.float32))
    assert out2.shape == ref2.shape, (out2.shape, ref2.shape)
    assert jnp.allclose(out2, ref2, atol=1e-5, rtol=1e-5), "lane-pad path mismatch"

    print("KERNEL_OK")
</pallas_src>

<mosaic_0001>
module attributes {stable_mosaic.version = 11 : i64} {
  func.func @kernel(%arg0: i32, %arg1: memref<504x128xf32, #tpu.memory_space<vmem>>, %arg2: memref<128x128xf32, #tpu.memory_space<vmem>>, %arg3: memref<1x128xf32, #tpu.memory_space<vmem>>, %arg4: memref<128x128xf32, #tpu.memory_space<vmem>>, %arg5: memref<1x128xf32, #tpu.memory_space<vmem>>, %arg6: memref<128x3xf32, #tpu.memory_space<vmem>>, %arg7: memref<1x3xf32, #tpu.memory_space<vmem>>, %arg8: memref<504x3xf32, #tpu.memory_space<vmem>>) attributes {dimension_semantics = [#tpu.dimension_semantics<parallel>], iteration_bounds = array<i64: 2>, scalar_prefetch = 0 : i64, scratch_operands = 0 : i64, tpu.core_type = #tpu.core_type<tc>, window_params = [{transform_indices = @transform_0, window_bounds = array<i64: 504, 128>}, {pipeline_mode = #tpu.pipeline_mode<synchronous>, transform_indices = @transform_1, window_bounds = array<i64: 128, 128>}, {pipeline_mode = #tpu.pipeline_mode<synchronous>, transform_indices = @transform_2, window_bounds = array<i64: 1, 128>}, {pipeline_mode = #tpu.pipeline_mode<synchronous>, transform_indices = @transform_3, window_bounds = array<i64: 128, 128>}, {pipeline_mode = #tpu.pipeline_mode<synchronous>, transform_indices = @transform_4, window_bounds = array<i64: 1, 128>}, {pipeline_mode = #tpu.pipeline_mode<synchronous>, transform_indices = @transform_5, window_bounds = array<i64: 128, 3>}, {pipeline_mode = #tpu.pipeline_mode<synchronous>, transform_indices = @transform_6, window_bounds = array<i64: 1, 3>}, {transform_indices = @transform_7, window_bounds = array<i64: 504, 3>}]} {
    %c0 = arith.constant 0 : index
    %c0_0 = arith.constant 0 : index
    %0 = vector.load %arg1[%c0, %c0_0] : memref<504x128xf32, #tpu.memory_space<vmem>>, vector<504x128xf32>
    %c0_1 = arith.constant 0 : index
    %c0_2 = arith.constant 0 : index
    %1 = vector.load %arg2[%c0_1, %c0_2] : memref<128x128xf32, #tpu.memory_space<vmem>>, vector<128x128xf32>
    %c0_3 = arith.constant 0 : index
    %c0_4 = arith.constant 0 : index
    %2 = vector.load %arg3[%c0_3, %c0_4] : memref<1x128xf32, #tpu.memory_space<vmem>>, vector<1x128xf32>
    %cst = arith.constant dense<0.000000e+00> : vector<504x128xf32>
    %3 = tpu.matmul %0, %1, %cst {dimension_numbers = #tpu.dot_dimension_numbers<[1], [0], [0], [1], [0, 0, 1, 1], [], []>} : vector<504x128xf32>, vector<128x128xf32>, vector<504x128xf32> -> vector<504x128xf32>
    %4 = vector.broadcast %2 : vector<1x128xf32> to vector<504x128xf32>
    %5 = arith.addf %3, %4 : vector<504x128xf32>
    %cst_5 = arith.constant 0.000000e+00 : f32
    %6 = vector.broadcast %cst_5 : f32 to vector<504x128xf32>
    %7 = arith.maximumf %5, %6 : vector<504x128xf32>
    %c0_6 = arith.constant 0 : index
    %c0_7 = arith.constant 0 : index
    %8 = vector.load %arg4[%c0_6, %c0_7] : memref<128x128xf32, #tpu.memory_space<vmem>>, vector<128x128xf32>
    %c0_8 = arith.constant 0 : index
    %c0_9 = arith.constant 0 : index
    %9 = vector.load %arg5[%c0_8, %c0_9] : memref<1x128xf32, #tpu.memory_space<vmem>>, vector<1x128xf32>
    %cst_10 = arith.constant dense<0.000000e+00> : vector<504x128xf32>
    %10 = tpu.matmul %7, %8, %cst_10 {dimension_numbers = #tpu.dot_dimension_numbers<[1], [0], [0], [1], [0, 0, 1, 1], [], []>} : vector<504x128xf32>, vector<128x128xf32>, vector<504x128xf32> -> vector<504x128xf32>
    %11 = vector.broadcast %9 : vector<1x128xf32> to vector<504x128xf32>
    %12 = arith.addf %10, %11 : vector<504x128xf32>
    %cst_11 = arith.constant 0.000000e+00 : f32
    %13 = vector.broadcast %cst_11 : f32 to vector<504x128xf32>
    %14 = arith.maximumf %12, %13 : vector<504x128xf32>
    %c0_12 = arith.constant 0 : index
    %c0_13 = arith.constant 0 : index
    %15 = vector.load %arg6[%c0_12, %c0_13] : memref<128x3xf32, #tpu.memory_space<vmem>>, vector<128x3xf32>
    %c0_14 = arith.constant 0 : index
    %c0_15 = arith.constant 0 : index
    %16 = vector.load %arg7[%c0_14, %c0_15] : memref<1x3xf32, #tpu.memory_space<vmem>>, vector<1x3xf32>
    %cst_16 = arith.constant dense<0.000000e+00> : vector<504x3xf32>
    %17 = tpu.matmul %14, %15, %cst_16 {dimension_numbers = #tpu.dot_dimension_numbers<[1], [0], [0], [1], [0, 0, 1, 1], [], []>} : vector<504x128xf32>, vector<128x3xf32>, vector<504x3xf32> -> vector<504x3xf32>
    %18 = vector.broadcast %16 : vector<1x3xf32> to vector<504x3xf32>
    %19 = arith.addf %17, %18 : vector<504x3xf32>
    %20 = arith.negf %19 : vector<504x3xf32>
    %21 = math.exp %20 : vector<504x3xf32>
    %cst_17 = arith.constant 1.000000e+00 : f32
    %22 = vector.broadcast %cst_17 : f32 to vector<504x3xf32>
    %23 = arith.addf %22, %21 : vector<504x3xf32>
    %24 = arith.divf %22, %23 : vector<504x3xf32>
    %c0_18 = arith.constant 0 : index
    %c0_19 = arith.constant 0 : index
    %25 = vector.load %arg8[%c0_18, %c0_19] : memref<504x3xf32, #tpu.memory_space<vmem>>, vector<504x3xf32>
    tpu.vector_store %arg8[%c0_18, %c0_19], %24 {strides = array<i32>} : memref<504x3xf32, #tpu.memory_space<vmem>>, vector<504x3xf32>,
    return
  }
  func.func @transform_0(%arg0: i32) -> (i32, i32) {
    %c0_i32 = arith.constant 0 : i32
    %c0_i32_0 = arith.constant 0 : i32
    return %arg0, %c0_i32 : i32, i32
  }
  func.func @transform_1(%arg0: i32) -> (i32, i32) {
    %c0_i32 = arith.constant 0 : i32
    %c0_i32_0 = arith.constant 0 : i32
    %c0_i32_1 = arith.constant 0 : i32
    return %c0_i32, %c0_i32_0 : i32, i32
  }
  func.func @transform_2(%arg0: i32) -> (i32, i32) {
    %c0_i32 = arith.constant 0 : i32
    %c0_i32_0 = arith.constant 0 : i32
    %c0_i32_1 = arith.constant 0 : i32
    return %c0_i32, %c0_i32_0 : i32, i32
  }
  func.func @transform_3(%arg0: i32) -> (i32, i32) {
    %c0_i32 = arith.constant 0 : i32
    %c0_i32_0 = arith.constant 0 : i32
    %c0_i32_1 = arith.constant 0 : i32
    return %c0_i32, %c0_i32_0 : i32, i32
  }
  func.func @transform_4(%arg0: i32) -> (i32, i32) {
    %c0_i32 = arith.constant 0 : i32
    %c0_i32_0 = arith.constant 0 : i32
    %c0_i32_1 = arith.constant 0 : i32
    return %c0_i32, %c0_i32_0 : i32, i32
  }
  func.func @transform_5(%arg0: i32) -> (i32, i32) {
    %c0_i32 = arith.constant 0 : i32
    %c0_i32_0 = arith.constant 0 : i32
    %c0_i32_1 = arith.constant 0 : i32
    return %c0_i32, %c0_i32_0 : i32, i32
  }
  func.func @transform_6(%arg0: i32) -> (i32, i32) {
    %c0_i32 = arith.constant 0 : i32
    %c0_i32_0 = arith.constant 0 : i32
    %c0_i32_1 = arith.constant 0 : i32
    return %c0_i32, %c0_i32_0 : i32, i32
  }
  func.func @transform_7(%arg0: i32) -> (i32, i32) {
    %c0_i32 = arith.constant 0 : i32
    %c0_i32_0 = arith.constant 0 : i32
    return %arg0, %c0_i32 : i32, i32
  }
}

</mosaic_0001>

<bundles_post_ra>
// kernel: tpu_custom_call.1
= control target key start
LH: loop header
LB: loop body
LE: loop exit
PB: predicated region body
PF: predicated region fallthrough
CT: control target
= control target key end

     0   :  { %12 = vsyncpa [#allocation3], 0  ;;  %s5656_s0 = inlined_call_operand.hbm [shape: f32[1000,128], index: 0, kind: input, shape index: {}]   ;;  %s5657_s1 = inlined_call_operand.vmem [shape: f32[128,128], index: 1, kind: input, shape index: {}]   ;;  %s5658_s2 = inlined_call_operand.vmem [shape: f32[1,128], index: 2, kind: input, shape index: {}]   ;;  %s5659_s3 = inlined_call_operand.hbm [shape: f32[128,128], index: 3, kind: input, shape index: {}]   ;;  %s5660_s4 = inlined_call_operand.vmem [shape: f32[1,128], index: 4, kind: input, shape index: {}]   ;;  %s5661_s5 = inlined_call_operand.vmem [shape: f32[128,3], index: 5, kind: input, shape index: {}]   ;;  %s5662_s6 = inlined_call_operand.vmem [shape: f32[1,3], index: 6, kind: input, shape index: {}]   ;;  %s5663_s7 = inlined_call_operand.vmem [shape: f32[1000,3], index: 7, kind: output, shape index: {}]  }
   0x1   :  { %14 = vsyncpa [#allocation3 + $0x1], 0 }
   0x2   :  { %15 = vsyncpa [#allocation5], 0  ;;  %s4313_s24 = smov 0   ;;  %s4315_s25 = smov 0  }
   0x3   :  { %s4317_s26 = smov 0   ;;  %s4319_s27 = smov 0  }
   0x4 LB: > { %s4332_s28 = sadd.s32 4294967295, %s4230_s27   ;;  %s4335_s29 = sadd.s32 1, %s4230_s27   ;;  %s4230_s27 = sphi %s4319_s27, %s5686_s27   ;;  %s4226_s26 = sphi %s4317_s26, %s5685_s26   ;;  %s4222_s25 = sphi %s4315_s25, %s5684_s25   ;;  %s4218_s24 = sphi %s4313_s24, %s5683_s24  }
   0x5   : > { %s25_s30 = ssub.s32 %s4230_s27, %s4335_s29  ;;  %s28_s8 = sadd.s32 1, %s4226_s26 }
   0x6   : > { %p26_p0 = scmp.eq.s32.totalorder %s25_s30, 0  ;;  %p35_p1 = scmp.ne.s32.totalorder %s4226_s26, %s4222_s25 }
   0x7   : > { %p36_p2 = scmp.eq.s32.totalorder %s4230_s27, 0  ;;  %p41_p3 = scmp.ne.s32.totalorder %s4222_s25, %s4218_s24 }
   0x8   : > { %s4345_s9 = scalar_select %p26_p0, %s4226_s26, %s28_s8  }
   0x9   : > { %p4347_p4 = por %p36_p2, %p35_p1  ;;  %p5664_p5 = scmp.eq.s32.totalorder %s4332_s28, 0 }
   0xa   : > { %p191_p6 = scmp.eq.s32.totalorder %s4332_s28, 1  ;;  %p2651_p7 = scmp.ge.s32.totalorder %s4230_s27, 1 }
   0xb   : > { %s5667_s10 = scalar_select %p4347_p4, 1, 0 }
   0xc   : > { %p4356_p8 = por %p5664_p5, %p41_p3  ;;  %p204_p9 = scmp.lt.s32.totalorder %s4230_s27, 3 }
   0xd   : > { %p4361_p10 = por %p191_p6, %p35_p1  ;;  %s4264_s14 = smov [#allocation4]  }
   0xe   : > { %s5668_s11 = scalar_select %p4356_p8, 1, 0 }
   0xf   : > { %s5669_s12 = scalar_select %p4361_p10, 1, 0 }
  0x10   : > { %p4365_p11 = pnand %p2651_p7, %p204_p9  ;;  %s222_s15 = sshll.u32 %s4264_s14, 4  ;;  %s223_s15 = int_to_ptr.vmem [resolvable:$true] %s222_s15 }
  0x11   : > { %s4104_s19 = scalar_lea.hbm %s5659_s3, 2048 }
  0x12   : > { %s5670_s13 = scalar_select %p4365_p11, 1, 0 }
  0x13   : > { %p3736_p12 = pneg %p4365_p11  ;;  %p4105_p0 = scmp.ne.s32.totalorder %s5659_s3, %s4104_s19 }
  0x14   : > { %p4111_p6 = scmp.lt.u32.totalorder %s4104_s19, %s5659_s3 }
  0x15   : > { %p4373_p13 = pnand %p3736_p12, %p5664_p5 }
  0x17   : > { %p4106_p1 = pneg %p4373_p13 }
  0x19   : > { %p4107_p2 = pnand %p4106_p1, %p4105_p0 }
  0x1b   : > { %p4108_p3 = pneg %p4107_p2 }
  0x1d   : > { %p4113_p7 = pnand %p4111_p6, %p4108_p3 }
  0x1f   : > { %4116 = shalt.err (!%p4113_p7)
}
  0x20   : > { %s4117_s24 = scalar_lea.vmem %s223_s15, 2048  ;;  %p4125_p10 = scmp.lt.s32.totalorder %s223_s15, %s223_s15 }
  0x21   : > { %p4118_p9 = scmp.ne.s32.totalorder %s223_s15, %s4117_s24  ;;  %p4126_p8 = scmp.lt.s32.totalorder %s4117_s24, %s4117_s24 }
  0x23   : > { %p4120_p12 = pnand %p4118_p9, %p4106_p1  ;;  %p4127_p11 = por %p4126_p8, %p4125_p10 }
  0x25   : > { %p4121_p5 = pneg %p4120_p12 }
  0x27   : > { %p4128_p4 = pnand %p4127_p11, %p4121_p5 }
  0x29   : > { %4131 = shalt.err (!%p4128_p4)
}
  0x2a   : > { %s4265_s30 = smov 128   ;;  %s4266_s8 = smov 8  }
  0x2b   : > { %3739 = dma.hbm_to_vmem [thread:$0]  (!%p4373_p13), %s5659_s3, 2048, %s223_s15, [#allocation5], %s4265_s30, %s4265_s30, %s4266_s8  }
  0x2c   : > { %p2653_p0 = scmp.ge.s32.totalorder %s4230_s27, 2 }
  0x2d   : > { %p5672_p2 = scmp.ne.s32.totalorder (!%p2653_p0), %s5667_s10, 0 }
  0x2e   : > { %241 = sbr.rel (%p2653_p0) target bundleno = 88 (0x58), region = 40 }
  0x35   : > { %244 = sbr.rel (!%p5672_p2) target bundleno = 88 (0x58), region = 44  ;;  %s245_s18 = sand.u32 (%p5672_p2), 1, %s4226_s26  }
  0x36   : > { %s250_s19 = smul.u32 (%p5672_p2), 63, %s4230_s27  ;;  %s4401_s23 = scalar_lea.sflag (%p5672_p2), [#allocation3], %s245_s18 }
  0x37   : > { %s3729_s20 = smul.u32 (%p5672_p2), 504, %s245_s18 }
  0x38   : > { %s251_s21 = ssub.s32 (%p5672_p2), 125, %s250_s19 }
  0x39   : > { %p252_p4 = scmp.lt.s32.totalorder (%p5672_p2), %s251_s21, 63  ;;  %s249_s15 = scalar_lea.vmem (%p5672_p2), [#allocation2], %s3729_s20 }
  0x3c   : > { %s5688_s21 = smov (!%p252_p4, %s251_s21), 63 }
  0x3d   : > { %s4398_s22 = sshll.u32 %s5688_s21, 7 }
  0x3e   : > { %s256_s16 = ssub.s32 8064, %s4398_s22 }
  0x3f   : > { %257 = vsyncadd %s4401_s23, %s256_s16  ;;  %p2655_p5 = scmp.ne.s32.totalorder %s4398_s22, 0  ;;  %s2739_s10 = smul.u32 8064, %s4230_s27 }
  0x40   : > { %s262_s24 = sshll.u32 %s249_s15, 4  ;;  %s4136_s27 = scalar_lea.hbm %s5656_s0, 16000  ;;  %s4411_s24 = int_to_ptr.vmem [resolvable:$true] %s262_s24 }
  0x41   : > { %s4409_s14 = scalar_lea.hbm %s5656_s0, %s2739_s10 }
  0x42   : > { %s4132_s17 = scalar_lea.hbm %s4409_s14, %s4398_s22  ;;  %p4137_p13 = scmp.lt.u32.totalorder %s4409_s14, %s5656_s0 }
  0x43   : > { %p4133_p8 = scmp.ne.s32.totalorder %s4409_s14, %s4132_s17  ;;  %p4138_p1 = scmp.lt.u32.totalorder %s4136_s27, %s4132_s17 }
  0x44   : > { %p4140_p6 = scmp.lt.u32.totalorder %s4132_s17, %s4409_s14 }
  0x45   : > { %p4134_p10 = pnand %p4133_p8, %p2655_p5  ;;  %p4139_p3 = por %p4138_p1, %p4137_p13 }
  0x47   : > { %p4135_p11 = pneg %p4134_p10  ;;  %p4141_p7 = por %p4140_p6, %p4139_p3 }
  0x49   : > { %p4142_p9 = pnand %p4141_p7, %p4135_p11 }
  0x4b   : > { %4145 = shalt.err (!%p4142_p9)
}
  0x4c   : > { %s4146_s16 = scalar_lea.vmem %s4411_s24, %s4398_s22  ;;  %s4267_s15 = smov [#allocation2]  }
  0x4d   : > { %p4147_p12 = scmp.ne.s32.totalorder %s4411_s24, %s4146_s16  ;;  %s4150_s10 = sshll.u32 %s4267_s15, 4  ;;  %s4151_s10 = int_to_ptr.vmem [resolvable:$false] %s4150_s10 }
  0x4e   : > { %s4152_s30 = scalar_lea.vmem %s4151_s10, 16128  ;;  %p4153_p4 = scmp.lt.s32.totalorder %s4411_s24, %s4151_s10 }
  0x4f   : > { %p4148_p0 = pnand %p4147_p12, %p2655_p5  ;;  %p4154_p8 = scmp.lt.s32.totalorder %s4152_s30, %s4146_s16 }
  0x51   : > { %p4149_p2 = pneg %p4148_p0  ;;  %p4155_p10 = por %p4154_p8, %p4153_p4 }
  0x53   : > { %p4156_p13 = pnand %p4155_p10, %p4149_p2 }
  0x55   : > { %4159 = shalt.err (!%p4156_p13)
}
  0x56   : > { %s4268_s8 = smov 128   ;;  %s4269_s17 = smov 8  }
  0x57   : > { %268 = dma.hbm_to_vmem [thread:$0]  (%p2655_p5), %s4409_s14, %s4398_s22, %s4411_s24, %s4401_s23, %s4268_s8, %s4268_s8, %s4269_s17  }
  0x58 PF: > { %p5673_p11 = scmp.ne.s32.totalorder %s5670_s13, 0 }
  0x59   : > { %s276_s18 = sand.u32 (!%p5673_p11), 1, %s4222_s25   ;;  %p5674_p1 = scmp.ne.s32.totalorder (!%p5673_p11), %s5668_s11, 0 }
  0x5a   : > { %274 = sbr.rel (%p5673_p11) target bundleno = 1140 (0x474), region = 48  ;;  %s277_s27 = scalar_lea.sflag (!%p5673_p11), [#allocation3], %s276_s18 }
  0x5b   : > { %s4441_s19 = smul.u32 (!%p5673_p11), 504, %s276_s18 }
  0x5d   : > { %s4444_s20 = scalar_lea.vmem (!%p5673_p11), [#allocation2], %s4441_s19 }
  0x61   : > { %4209 = dma.done.wait (%p5674_p1), %s277_s27, 8064  }
  0x62   : > { %4211 = vsyncadd (%p5674_p1), %s277_s27, 4294959232  ;;  %p5675_p5 = scmp.eq.s32.totalorder %s4332_s28, 0 }
  0x64   : > { %4213 = dma.done.wait (%p5675_p5), [#allocation5], 2048   ;;  %p5676_p3 = pmov %p5675_p5 }
  0x65   : > { %v4270_v0 = vmov 0.0|0.0   ;;  %vm4271_vm0 = vmmov 0   ;;  %v4272_v1 = vmov 0.0   ;;  %v387_v2 = vld [vmem:[%s5657_s1] sm:$0xff]  ;;  %v388_v3 = vld [vmem:[%s5657_s1 + $0x8] sm:$0xff]  ;;  %v389_v4 = vld [vmem:[%s5657_s1 + $0x10] sm:$0xff] }
  0x66   : > { %4215 = vsyncadd (%p5676_p3), [#allocation5], 4294965248  ;;  %3641 = vmatprep.subr.bf16.mxu0 %v4270_v0  ;;  %3010 = vmatprep.mubr.msk.f32.mxu0 %vm4271_vm0, %v4272_v1  ;;  %v3642_v5 = vpack.c.bf16 %v388_v3, %v387_v2  ;;  %v390_v6 = vld [vmem:[%s5657_s1 + $0x18] sm:$0xff]  ;;  %v391_v8 = vld [vmem:[%s5657_s1 + $0x20] sm:$0xff]  ;;  %vm2100_vm1 = vcmask 23552   ;;  %s5259_s16 = scalar_lea.vmem [#allocation6], %s4441_s19  }
  0x67   : > { %3713 = vmatprep.subr.bf16.mxu1 %v4270_v0  ;;  %3106 = vmatprep.mubr.msk.f32.mxu1 %vm4271_vm0, %v4272_v1  ;;  %v3645_v7 = vpack.c.bf16 %v390_v6, %v389_v4  ;;  %v392_v9 = vld [vmem:[%s5657_s1 + $0x28] sm:$0xff]  ;;  %v393_v11 = vld [vmem:[%s5657_s1 + $0x30] sm:$0xff]  ;;  %v394_v12 = vld [vmem:[%s5657_s1 + $0x38] sm:$0xff]  ;;  %p5677_p6 = scmp.ne.s32.totalorder %s5669_s12, 0 }
  0x68   : > { %3643 = vmatpush3.bf16.msra.mxu0 %v3642_v5  ;;  %3721 = vmatpush3.bf16.msra.mxu1 %v3642_v5  ;;  %v3648_v10 = vpack.c.bf16 %v392_v9, %v391_v8  ;;  %v3651_v13 = vpack.c.bf16 %v394_v12, %v393_v11  ;;  %v395_v14 = vld [vmem:[%s5657_s1 + $0x40] sm:$0xff]  ;;  %v396_v15 = vld [vmem:[%s5657_s1 + $0x48] sm:$0xff]  ;;  %v397_v17 = vld [vmem:[%s5657_s1 + $0x50] sm:$0xff]  ;;  %s2171_s10 = smul.u32 (%p5677_p6), 63, %s4332_s28 }
  0x69   : > { %3644 = vmatprep.subr.bf16.mxu0 %v4270_v0  ;;  %3714 = vmatprep.subr.bf16.mxu1 %v4270_v0  ;;  %v3654_v16 = vpack.c.bf16 %v396_v15, %v395_v14  ;;  %v398_v18 = vld [vmem:[%s5657_s1 + $0x58] sm:$0xff]  ;;  %v399_v20 = vld [vmem:[%s5657_s1 + $0x60] sm:$0xff]  ;;  %v400_v21 = vld [vmem:[%s5657_s1 + $0x68] sm:$0xff]  ;;  %s2740_s30 = smul.u32 (%p5677_p6), 504, %s4332_s28 }
  0x6a   : > { %v3657_v19 = vpack.c.bf16 %v398_v18, %v397_v17  ;;  %v3660_v22 = vpack.c.bf16 %v400_v21, %v399_v20  ;;  %v401_v23 = vld [vmem:[%s5657_s1 + $0x70] sm:$0xff]  ;;  %v402_v24 = vld [vmem:[%s5657_s1 + $0x78] sm:$0xff]  ;;  %v855_v31 = vld [vmem:[#allocation4 + $0x10] sm:$0xff]  ;;  %s2172_s8 = ssub.s32 (%p5677_p6), 125, %s2171_s10 }
  0x6b   : > { %v3663_v25 = vpack.c.bf16 %v402_v24, %v401_v23  ;;  %v853_v26 = vld [vmem:[#allocation4] sm:$0xff]  ;;  %v854_v27 = vld [vmem:[#allocation4 + $0x8] sm:$0xff]  ;;  %v856_v32 = vld [vmem:[#allocation4 + $0x18] sm:$0xff]  ;;  %p2173_p7 = scmp.lt.s32.totalorder (%p5677_p6), %s2172_s8, 63  ;;  %s5461_s27 = scalar_lea.vmem (%p5677_p6), %s5663_s7, %s2740_s30  }
  0x6c   : > { %3646 = vmatpush3.bf16.msra.mxu0 %v3645_v7  ;;  %3722 = vmatpush3.bf16.msra.mxu1 %v3645_v7  ;;  %v324_v28 = vld [vmem:[%s4444_s20] sm:$0xff]  ;;  %v3666_v30 = vpack.c.bf16 %v854_v27, %v853_v26  ;;  %v325_v33 = vld [vmem:[%s4444_s20 + $0x8] sm:$0xff]  ;;  %v3669_v35 = vpack.c.bf16 %v856_v32, %v855_v31  ;;  %v857_v36 = vld [vmem:[#allocation4 + $0x20] sm:$0xff] }
  0x6d   : > { %3647 = vmatprep.subr.bf16.mxu0 %v4270_v0  ;;  %3715 = vmatprep.subr.bf16.mxu1 %v4270_v0  ;;  %v356_v29 = vld [vmem:[%s4444_s20 + $0x100] sm:$0xff]  ;;  %v357_v34 = vld [vmem:[%s4444_s20 + $0x108] sm:$0xff]  ;;  %v326_v38 = vld [vmem:[%s4444_s20 + $0x10] sm:$0xff] }
  0x6e   : > { %v858_v37 = vld [vmem:[#allocation4 + $0x28] sm:$0xff]  ;;  %v358_v39 = vld [vmem:[%s4444_s20 + $0x110] sm:$0xff]  ;;  %v859_v41 = vld [vmem:[#allocation4 + $0x30] sm:$0xff] }
  0x6f   : > { %v3672_v40 = vpack.c.bf16 %v858_v37, %v857_v36  ;;  %v860_v42 = vld [vmem:[#allocation4 + $0x38] sm:$0xff]  ;;  %v327_v43 = vld [vmem:[%s4444_s20 + $0x18] sm:$0xff]  ;;  %v328_v48 = vld [vmem:[%s4444_s20 + $0x20] sm:$0xff] }
  0x70   : > { %3649 = vmatpush3.bf16.msra.mxu0 %v3648_v10  ;;  %3723 = vmatpush3.bf16.msra.mxu1 %v3648_v10  ;;  %v359_v44 = vld [vmem:[%s4444_s20 + $0x118] sm:$0xff]  ;;  %v3675_v45 = vpack.c.bf16 %v860_v42, %v859_v41  ;;  %v360_v49 = vld [vmem:[%s4444_s20 + $0x120] sm:$0xff]  ;;  %v864_v52 = vld [vmem:[#allocation4 + $0x58] sm:$0xff] }
  0x71   : > { %3650 = vmatprep.subr.bf16.mxu0 %v4270_v0  ;;  %3716 = vmatprep.subr.bf16.mxu1 %v4270_v0  ;;  %v861_v46 = vld [vmem:[#allocation4 + $0x40] sm:$0xff]  ;;  %v862_v47 = vld [vmem:[#allocation4 + $0x48] sm:$0xff]  ;;  %v863_v51 = vld [vmem:[#allocation4 + $0x50] sm:$0xff] }
  0x72   : > { %v3678_v50 = vpack.c.bf16 %v862_v47, %v861_v46  ;;  %v329_v53 = vld [vmem:[%s4444_s20 + $0x28] sm:$0xff]  ;;  %v3681_v55 = vpack.c.bf16 %v864_v52, %v863_v51  ;;  %v865_v56 = vld [vmem:[#allocation4 + $0x60] sm:$0xff]  ;;  %v866_v57 = vld [vmem:[#allocation4 + $0x68] sm:$0xff] }
  0x73   : > { %v361_v54 = vld [vmem:[%s4444_s20 + $0x128] sm:$0xff]  ;;  %v330_v58 = vld [vmem:[%s4444_s20 + $0x30] sm:$0xff]  ;;  %v3684_v60 = vpack.c.bf16 %v866_v57, %v865_v56  ;;  %v331_v63 = vld [vmem:[%s4444_s20 + $0x38] sm:$0xff] }
  0x74   : > { %3652 = vmatpush3.bf16.msra.mxu0 %v3651_v13  ;;  %3724 = vmatpush3.bf16.msra.mxu1 %v3651_v13  ;;  %v362_v59 = vld [vmem:[%s4444_s20 + $0x130] sm:$0xff]  ;;  %v867_v61 = vld [vmem:[#allocation4 + $0x70] sm:$0xff]  ;;  %v363_v2 = vld [vmem:[%s4444_s20 + $0x138] sm:$0xff] }
  0x75   : > { %3653 = vmatprep.subr.bf16.mxu0 %v4270_v0  ;;  %3717 = vmatprep.subr.bf16.mxu1 %v4270_v0  ;;  %v868_v62 = vld [vmem:[#allocation4 + $0x78] sm:$0xff]  ;;  %v332_v4 = vld [vmem:[%s4444_s20 + $0x40] sm:$0xff]  ;;  %v335_v10 = vld [vmem:[%s4444_s20 + $0x58] sm:$0xff] }
  0x76   : > { %v3687_v3 = vpack.c.bf16 %v868_v62, %v867_v61  ;;  %v364_v5 = vld [vmem:[%s4444_s20 + $0x140] sm:$0xff]  ;;  %v333_v6 = vld [vmem:[%s4444_s20 + $0x48] sm:$0xff]  ;;  %v334_v8 = vld [vmem:[%s4444_s20 + $0x50] sm:$0xff] }
  0x77   : > { %v365_v7 = vld [vmem:[%s4444_s20 + $0x148] sm:$0xff]  ;;  %v366_v9 = vld [vmem:[%s4444_s20 + $0x150] sm:$0xff]  ;;  %v367_v11 = vld [vmem:[%s4444_s20 + $0x158] sm:$0xff] }
  0x78   : > { %3655 = vmatpush3.bf16.msra.mxu0 %v3654_v16  ;;  %3725 = vmatpush3.bf16.msra.mxu1 %v3654_v16  ;;  %v336_v12 = vld [vmem:[%s4444_s20 + $0x60] sm:$0xff]  ;;  %v337_v14 = vld [vmem:[%s4444_s20 + $0x68] sm:$0xff]  ;;  %v338_v16 = vld [vmem:[%s4444_s20 + $0x70] sm:$0xff] }
  0x79   : > { %3656 = vmatprep.subr.bf16.mxu0 %v4270_v0  ;;  %3718 = vmatprep.subr.bf16.mxu1 %v4270_v0  ;;  %v368_v13 = vld [vmem:[%s4444_s20 + $0x160] sm:$0xff]  ;;  %v369_v15 = vld [vmem:[%s4444_s20 + $0x168] sm:$0xff]  ;;  %v370_v17 = vld [vmem:[%s4444_s20 + $0x170] sm:$0xff] }
  0x7a   : > { %v339_v18 = vld [vmem:[%s4444_s20 + $0x78] sm:$0xff]  ;;  %v340_v20 = vld [vmem:[%s4444_s20 + $0x80] sm:$0xff]  ;;  %v373_v23 = vld [vmem:[%s4444_s20 + $0x188] sm:$0xff] }
  0x7b   : > { %v372_v21 = vld [vmem:[%s4444_s20 + $0x180] sm:$0xff]  ;;  %v342_v24 = vld [vmem:[%s4444_s20 + $0x90] sm:$0xff]  ;;  %v343_v26 = vld [vmem:[%s4444_s20 + $0x98] sm:$0xff] }
  0x7c   : > { %3658 = vmatpush3.bf16.msra.mxu0 %v3657_v19  ;;  %3726 = vmatpush3.bf16.msra.mxu1 %v3657_v19  ;;  %v371_v19 = vld [vmem:[%s4444_s20 + $0x178] sm:$0xff]  ;;  %v377_v31 = vld [vmem:[%s4444_s20 + $0x1a8] sm:$0xff]  ;;  %v346_v32 = vld [vmem:[%s4444_s20 + $0xb0] sm:$0xff] }
  0x7d   : > { %3659 = vmatprep.subr.bf16.mxu0 %v4270_v0  ;;  %3719 = vmatprep.subr.bf16.mxu1 %v4270_v0  ;;  %v375_v27 = vld [vmem:[%s4444_s20 + $0x198] sm:$0xff]  ;;  %v348_v36 = vld [vmem:[%s4444_s20 + $0xc0] sm:$0xff]  ;;  %v382_v41 = vld [vmem:[%s4444_s20 + $0x1d0] sm:$0xff] }
  0x7e   : > { %v380_v37 = vld [vmem:[%s4444_s20 + $0x1c0] sm:$0xff]  ;;  %v351_v42 = vld [vmem:[%s4444_s20 + $0xd8] sm:$0xff]  ;;  %v353_v46 = vld [vmem:[%s4444_s20 + $0xe8] sm:$0xff] }
  0x7f   : > { %v385_v47 = vld [vmem:[%s4444_s20 + $0x1e8] sm:$0xff] }
  0x80   : > { %3661 = vmatpush3.bf16.msra.mxu0 %v3660_v22  ;;  %3727 = vmatpush3.bf16.msra.mxu1 %v3660_v22  ;;  %v341_v22 = vld [vmem:[%s4444_s20 + $0x88] sm:$0xff] }
  0x81   : > { %3662 = vmatprep.subr.bf16.mxu0 %v4270_v0  ;;  %3720 = vmatprep.subr.bf16.mxu1 %v4270_v0  ;;  %v1319_v51 = vld [vmem:[%s5661_s5] sm:$0xff]  ;;  %v1320_v52 = vld [vmem:[%s5661_s5 + $0x8] sm:$0xff] }
  0x82   : > { %v4737_v57 = vld [vmem:[%s5658_s2] ss:$0 sm:$0xff] }
  0x84   : > { %3664 = vmatpush3.bf16.msra.mxu0 %v3663_v25  ;;  %3728 = vmatpush3.bf16.msra.mxu1 %v3663_v25  ;;  %v374_v25 = vld [vmem:[%s4444_s20 + $0x190] sm:$0xff] }
  0x85   : > { %3665 = vmatprep.subr.bf16.mxu1 %v4270_v0  ;;  %3689 = vmatprep.subr.bf16.mxu0 %v4270_v0 }
  0x87   : > { %3011 = vmatmul.mubr.f32.vlgmr.msra.gmra.mrb[0].mxu0 %v324_v28  ;;  %3107 = vmatmul.mubr.f32.vlgmr.msra.gmra.mrb[0].mxu1 %v356_v29  ;;  %v344_v28 = vld [vmem:[%s4444_s20 + $0xa0] sm:$0xff] }
  0x88   : > { %3013 = vmatprep.mubr.msk.f32.mxu0 %vm4271_vm0, %v4272_v1  ;;  %3667 = vmatpush3.bf16.msra.mxu1 %v3666_v30  ;;  %v376_v29 = vld [vmem:[%s4444_s20 + $0x1a0] sm:$0xff]  ;;  %v345_v30 = vld [vmem:[%s4444_s20 + $0xa8] sm:$0xff] }
  0x89   : > { %3109 = vmatprep.mubr.msk.f32.mxu1 %vm4271_vm0, %v4272_v1  ;;  %3668 = vmatprep.subr.bf16.mxu1 %v4270_v0 }
  0x8b   : > { %3014 = vmatmul.mubr.f32.gmra.mrb[2].mxu0 %v325_v33  ;;  %3110 = vmatmul.mubr.f32.gmra.mrb[2].mxu1 %v357_v34  ;;  %v378_v33 = vld [vmem:[%s4444_s20 + $0x1b0] sm:$0xff]  ;;  %v347_v34 = vld [vmem:[%s4444_s20 + $0xb8] sm:$0xff] }
  0x8c   : > { %3016 = vmatprep.mubr.msk.f32.mxu0 %vm4271_vm0, %v4272_v1  ;;  %3112 = vmatprep.mubr.msk.f32.mxu1 %vm4271_vm0, %v4272_v1 }
  0x8d   : > { %3670 = vmatpush3.bf16.msra.mxu1 %v3669_v35  ;;  %v379_v35 = vld [vmem:[%s4444_s20 + $0x1b8] sm:$0xff] }
  0x8e   : > { %3671 = vmatprep.subr.bf16.mxu1 %v4270_v0 }
  0x8f   : > { %3017 = vmatmul.mubr.f32.gmra.mrb[4].mxu0 %v326_v38  ;;  %3113 = vmatmul.mubr.f32.gmra.mrb[4].mxu1 %v358_v39  ;;  %v349_v38 = vld [vmem:[%s4444_s20 + $0xc8] sm:$0xff] }
  0x90   : > { %3019 = vmatprep.mubr.msk.f32.mxu0 %vm4271_vm0, %v4272_v1  ;;  %3115 = vmatprep.mubr.msk.f32.mxu1 %vm4271_vm0, %v4272_v1  ;;  %v381_v39 = vld [vmem:[%s4444_s20 + $0x1c8] sm:$0xff] }
  0x91   : > { %3673 = vmatpush3.bf16.msra.mxu1 %v3672_v40  ;;  %v350_v40 = vld [vmem:[%s4444_s20 + $0xd0] sm:$0xff] }
  0x92   : > { %3674 = vmatprep.subr.bf16.mxu1 %v4270_v0 }
  0x93   : > { %3020 = vmatmul.mubr.f32.gmra.mrb[6].mxu0 %v327_v43  ;;  %3116 = vmatmul.mubr.f32.gmra.mrb[6].mxu1 %v359_v44  ;;  %v383_v43 = vld [vmem:[%s4444_s20 + $0x1d8] sm:$0xff]  ;;  %v352_v44 = vld [vmem:[%s4444_s20 + $0xe0] sm:$0xff] }
  0x94   : > { %3022 = vmatprep.mubr.msk.f32.mxu0 %vm4271_vm0, %v4272_v1  ;;  %3118 = vmatprep.mubr.msk.f32.mxu1 %vm4271_vm0, %v4272_v1 }
  0x95   : > { %3676 = vmatpush3.bf16.msra.mxu1 %v3675_v45  ;;  %v384_v45 = vld [vmem:[%s4444_s20 + $0x1e0] sm:$0xff] }
  0x96   : > { %3677 = vmatprep.subr.bf16.mxu1 %v4270_v0 }
  0x97   : > { %3023 = vmatmul.mubr.f32.gmra.mrb[8].mxu0 %v328_v48  ;;  %3119 = vmatmul.mubr.f32.gmra.mrb[8].mxu1 %v360_v49  ;;  %v354_v48 = vld [vmem:[%s4444_s20 + $0xf0] sm:$0xff] }
  0x98   : > { %3025 = vmatprep.mubr.msk.f32.mxu0 %vm4271_vm0, %v4272_v1  ;;  %3121 = vmatprep.mubr.msk.f32.mxu1 %vm4271_vm0, %v4272_v1  ;;  %v386_v49 = vld [vmem:[%s4444_s20 + $0x1f0] sm:$0xff] }
  0x99   : > { %3679 = vmatpush3.bf16.msra.mxu1 %v3678_v50  ;;  %v355_v50 = vld [vmem:[%s4444_s20 + $0xf8] sm:$0xff] }
  0x9a   : > { %3680 = vmatprep.subr.bf16.mxu1 %v4270_v0 }
  0x9b   : > { %3026 = vmatmul.mubr.f32.gmra.mrb[10].mxu0 %v329_v53  ;;  %3122 = vmatmul.mubr.f32.gmra.mrb[10].mxu1 %v361_v54  ;;  %v3690_v53 = vpack.c.bf16 %v1320_v52, %v1319_v51  ;;  %v1321_v54 = vld [vmem:[%s5661_s5 + $0x10] sm:$0xff] }
  0x9c   : > { %3028 = vmatprep.mubr.msk.f32.mxu0 %vm4271_vm0, %v4272_v1  ;;  %3124 = vmatprep.mubr.msk.f32.mxu1 %vm4271_vm0, %v4272_v1 }
  0x9d   : > { %3682 = vmatpush3.bf16.msra.mxu1 %v3681_v55  ;;  %3691 = vmatpush3.bf16.msra.mxu0 %v3690_v53  ;;  %v1322_v55 = vld [vmem:[%s5661_s5 + $0x18] sm:$0xff] }
  0x9e   : > { %3683 = vmatprep.subr.bf16.mxu1 %v4270_v0  ;;  %3692 = vmatprep.subr.bf16.mxu0 %v4270_v0  ;;  %v3693_v56 = vpack.c.bf16 %v1322_v55, %v1321_v54 }
  0x9f   : > { %3029 = vmatmul.mubr.f32.gmra.mrb[12].mxu0 %v330_v58  ;;  %3125 = vmatmul.mubr.f32.gmra.mrb[12].mxu1 %v362_v59  ;;  %v1323_v58 = vld [vmem:[%s5661_s5 + $0x20] sm:$0xff]  ;;  %v1324_v59 = vld [vmem:[%s5661_s5 + $0x28] sm:$0xff] }
  0xa0   : > { %3031 = vmatprep.mubr.msk.f32.mxu0 %vm4271_vm0, %v4272_v1  ;;  %3127 = vmatprep.mubr.msk.f32.mxu1 %vm4271_vm0, %v4272_v1  ;;  %v3696_v62 = vpack.c.bf16 %v1324_v59, %v1323_v58 }
  0xa1   : > { %3685 = vmatpush3.bf16.msra.mxu1 %v3684_v60  ;;  %3694 = vmatpush3.bf16.msra.mxu0 %v3693_v56 }
  0xa2   : > { %3686 = vmatprep.subr.bf16.mxu1 %v4270_v0  ;;  %3695 = vmatprep.subr.bf16.mxu0 %v4270_v0 }
  0xa3   : > { %3032 = vmatmul.mubr.f32.gmra.mrb[14].mxu0 %v331_v63  ;;  %3128 = vmatmul.mubr.f32.gmra.mrb[14].mxu1 %v363_v2 }
  0xa4   : > { %3034 = vmatprep.mubr.msk.f32.mxu0 %vm4271_vm0, %v4272_v1  ;;  %3130 = vmatprep.mubr.msk.f32.mxu1 %vm4271_vm0, %v4272_v1 }
  0xa5   : > { %3688 = vmatpush3.bf16.msra.mxu1 %v3687_v3  ;;  %3697 = vmatpush3.bf16.msra.mxu0 %v3696_v62 }
  0xa6   : > { %3698 = vmatprep.subr.bf16.mxu0 %v4270_v0 }
  0xa7   : > { %3035 = vmatmul.mubr.f32.gmra.mrb[16].mxu0 %v332_v4  ;;  %3131 = vmatmul.mubr.f32.gmra.mrb[16].mxu1 %v364_v5 }
  0xa8   : > { %3037 = vmatprep.mubr.msk.f32.mxu0 %vm4271_vm0, %v4272_v1  ;;  %3133 = vmatprep.mubr.msk.f32.mxu1 %vm4271_vm0, %v4272_v1 }
  0xab   : > { %3038 = vmatmul.mubr.f32.gmra.mrb[18].mxu0 %v333_v6  ;;  %3134 = vmatmul.mubr.f32.gmra.mrb[18].mxu1 %v365_v7 }
  0xac   : > { %3040 = vmatprep.mubr.msk.f32.mxu0 %vm4271_vm0, %v4272_v1  ;;  %3136 = vmatprep.mubr.msk.f32.mxu1 %vm4271_vm0, %v4272_v1 }
  0xaf   : > { %3041 = vmatmul.mubr.f32.gmra.mrb[20].mxu0 %v334_v8  ;;  %3137 = vmatmul.mubr.f32.gmra.mrb[20].mxu1 %v366_v9 }
  0xb0   : > { %3043 = vmatprep.mubr.msk.f32.mxu0 %vm4271_vm0, %v4272_v1  ;;  %3139 = vmatprep.mubr.msk.f32.mxu1 %vm4271_vm0, %v4272_v1 }
  0xb3   : > { %3044 = vmatmul.mubr.f32.gmra.mrb[22].mxu0 %v335_v10  ;;  %3140 = vmatmul.mubr.f32.gmra.mrb[22].mxu1 %v367_v11 }
  0xb4   : > { %3046 = vmatprep.mubr.msk.f32.mxu0 %vm4271_vm0, %v4272_v1  ;;  %3142 = vmatprep.mubr.msk.f32.mxu1 %vm4271_vm0, %v4272_v1 }
  0xb7   : > { %3047 = vmatmul.mubr.f32.gmra.mrb[24].mxu0 %v336_v12  ;;  %3143 = vmatmul.mubr.f32.gmra.mrb[24].mxu1 %v368_v13 }
  0xb8   : > { %3049 = vmatprep.mubr.msk.f32.mxu0 %vm4271_vm0, %v4272_v1  ;;  %3145 = vmatprep.mubr.msk.f32.mxu1 %vm4271_vm0, %v4272_v1 }
  0xbb   : > { %3050 = vmatmul.mubr.f32.gmra.mrb[26].mxu0 %v337_v14  ;;  %3146 = vmatmul.mubr.f32.gmra.mrb[26].mxu1 %v369_v15 }
  0xbc   : > { %3052 = vmatprep.mubr.msk.f32.mxu0 %vm4271_vm0, %v4272_v1  ;;  %3148 = vmatprep.mubr.msk.f32.mxu1 %vm4271_vm0, %v4272_v1 }
  0xbf   : > { %3053 = vmatmul.mubr.f32.gmra.mrb[28].mxu0 %v338_v16  ;;  %3149 = vmatmul.mubr.f32.gmra.mrb[28].mxu1 %v370_v17 }
  0xc0   : > { %3055 = vmatprep.mubr.msk.f32.mxu0 %vm4271_vm0, %v4272_v1  ;;  %3151 = vmatprep.mubr.msk.f32.mxu1 %vm4271_vm0, %v4272_v1 }
  0xc3   : > { %3056 = vmatmul.mubr.f32.gmra.mrb[30].mxu0 %v339_v18  ;;  %3152 = vmatmul.mubr.f32.gmra.mrb[30].mxu1 %v371_v19 }
  0xc4   : > { %3058 = vmatprep.mubr.msk.f32.mxu0 %vm4271_vm0, %v4272_v1  ;;  %3154 = vmatprep.mubr.msk.f32.mxu1 %vm4271_vm0, %v4272_v1 }
  0xc7   : > { %3059 = vmatmul.mubr.f32.gmra.mrb[32].mxu0 %v340_v20  ;;  %3155 = vmatmul.mubr.f32.gmra.mrb[32].mxu1 %v372_v21 }
  0xc8   : > { %3061 = vmatprep.mubr.msk.f32.mxu0 %vm4271_vm0, %v4272_v1  ;;  %3157 = vmatprep.mubr.msk.f32.mxu1 %vm4271_vm0, %v4272_v1 }
  0xcb   : > { %3062 = vmatmul.mubr.f32.gmra.mrb[34].mxu0 %v341_v22  ;;  %3158 = vmatmul.mubr.f32.gmra.mrb[34].mxu1 %v373_v23  ;;  %v1325_v22 = vld [vmem:[%s5661_s5 + $0x30] sm:$0xff]  ;;  %v1326_v23 = vld [vmem:[%s5661_s5 + $0x38] sm:$0xff] }
  0xcc   : > { %3064 = vmatprep.mubr.msk.f32.mxu0 %vm4271_vm0, %v4272_v1  ;;  %3160 = vmatprep.mubr.msk.f32.mxu1 %vm4271_vm0, %v4272_v1 }
  0xcf   : > { %3065 = vmatmul.mubr.f32.gmra.mrb[36].mxu0 %v342_v24  ;;  %3161 = vmatmul.mubr.f32.gmra.mrb[36].mxu1 %v374_v25  ;;  %v3699_v24 = vpack.c.bf16 %v1326_v23, %v1325_v22 }
  0xd0   : > { %3067 = vmatprep.mubr.msk.f32.mxu0 %vm4271_vm0, %v4272_v1  ;;  %3163 = vmatprep.mubr.msk.f32.mxu1 %vm4271_vm0, %v4272_v1 }
  0xd1   : > { %3700 = vmatpush3.bf16.msra.mxu0 %v3699_v24 }
  0xd2   : > { %3701 = vmatprep.subr.bf16.mxu0 %v4270_v0 }
  0xd3   : > { %3068 = vmatmul.mubr.f32.gmra.mrb[38].mxu0 %v343_v26  ;;  %3164 = vmatmul.mubr.f32.gmra.mrb[38].mxu1 %v375_v27 }
  0xd4   : > { %3070 = vmatprep.mubr.msk.f32.mxu0 %vm4271_vm0, %v4272_v1  ;;  %3166 = vmatprep.mubr.msk.f32.mxu1 %vm4271_vm0, %v4272_v1 }
  0xd7   : > { %3071 = vmatmul.mubr.f32.gmra.mrb[40].mxu0 %v344_v28  ;;  %3167 = vmatmul.mubr.f32.gmra.mrb[40].mxu1 %v376_v29 }
  0xd8   : > { %3073 = vmatprep.mubr.msk.f32.mxu0 %vm4271_vm0, %v4272_v1  ;;  %3169 = vmatprep.mubr.msk.f32.mxu1 %vm4271_vm0, %v4272_v1 }
  0xdb   : > { %3074 = vmatmul.mubr.f32.gmra.mrb[42].mxu0 %v345_v30  ;;  %3170 = vmatmul.mubr.f32.gmra.mrb[42].mxu1 %v377_v31 }
  0xdc   : > { %3076 = vmatprep.mubr.msk.f32.mxu0 %vm4271_vm0, %v4272_v1  ;;  %3172 = vmatprep.mubr.msk.f32.mxu1 %vm4271_vm0, %v4272_v1 }
  0xdf   : > { %3077 = vmatmul.mubr.f32.gmra.mrb[44].mxu0 %v346_v32  ;;  %3173 = vmatmul.mubr.f32.gmra.mrb[44].mxu1 %v378_v33 }
  0xe0   : > { %3079 = vmatprep.mubr.msk.f32.mxu0 %vm4271_vm0, %v4272_v1  ;;  %3175 = vmatprep.mubr.msk.f32.mxu1 %vm4271_vm0, %v4272_v1 }
  0xe3   : > { %3080 = vmatmul.mubr.f32.gmra.mrb[46].mxu0 %v347_v34  ;;  %3176 = vmatmul.mubr.f32.gmra.mrb[46].mxu1 %v379_v35 }
  0xe4   : > { %3082 = vmatprep.mubr.msk.f32.mxu0 %vm4271_vm0, %v4272_v1  ;;  %3178 = vmatprep.mubr.msk.f32.mxu1 %vm4271_vm0, %v4272_v1 }
  0xe7   : > { %3083 = vmatmul.mubr.f32.gmra.mrb[48].mxu0 %v348_v36  ;;  %3179 = vmatmul.mubr.f32.gmra.mrb[48].mxu1 %v380_v37 }
  0xe8   : > { %3085 = vmatprep.mubr.msk.f32.mxu0 %vm4271_vm0, %v4272_v1  ;;  %3181 = vmatprep.mubr.msk.f32.mxu1 %vm4271_vm0, %v4272_v1 }
  0xeb   : > { %3086 = vmatmul.mubr.f32.gmra.mrb[50].mxu0 %v349_v38  ;;  %3182 = vmatmul.mubr.f32.gmra.mrb[50].mxu1 %v381_v39 }
  0xec   : > { %3088 = vmatprep.mubr.msk.f32.mxu0 %vm4271_vm0, %v4272_v1  ;;  %3184 = vmatprep.mubr.msk.f32.mxu1 %vm4271_vm0, %v4272_v1 }
  0xef   : > { %3089 = vmatmul.mubr.f32.gmra.mrb[52].mxu0 %v350_v40  ;;  %3185 = vmatmul.mubr.f32.gmra.mrb[52].mxu1 %v382_v41 }
  0xf0   : > { %3091 = vmatprep.mubr.msk.f32.mxu0 %vm4271_vm0, %v4272_v1  ;;  %3187 = vmatprep.mubr.msk.f32.mxu1 %vm4271_vm0, %v4272_v1 }
  0xf3   : > { %3092 = vmatmul.mubr.f32.gmra.mrb[54].mxu0 %v351_v42  ;;  %3188 = vmatmul.mubr.f32.gmra.mrb[54].mxu1 %v383_v43 }
  0xf4   : > { %3094 = vmatprep.mubr.msk.f32.mxu0 %vm4271_vm0, %v4272_v1  ;;  %3190 = vmatprep.mubr.msk.f32.mxu1 %vm4271_vm0, %v4272_v1 }
  0xf7   : > { %3095 = vmatmul.mubr.f32.gmra.mrb[56].mxu0 %v352_v44  ;;  %3191 = vmatmul.mubr.f32.gmra.mrb[56].mxu1 %v384_v45 }
  0xf8   : > { %3097 = vmatprep.mubr.msk.f32.mxu0 %vm4271_vm0, %v4272_v1  ;;  %3193 = vmatprep.mubr.msk.f32.mxu1 %vm4271_vm0, %v4272_v1 }
  0xfb   : > { %3098 = vmatmul.mubr.f32.gmra.mrb[58].mxu0 %v353_v46  ;;  %3194 = vmatmul.mubr.f32.gmra.mrb[58].mxu1 %v385_v47 }
  0xfc   : > { %3100 = vmatprep.mubr.msk.f32.mxu0 %vm4271_vm0, %v4272_v1  ;;  %3196 = vmatprep.mubr.msk.f32.mxu1 %vm4271_vm0, %v4272_v1 }
  0xff   : > { %3101 = vmatmul.mubr.f32.gmra.mrb[60].mxu0 %v354_v48  ;;  %3197 = vmatmul.mubr.f32.gmra.mrb[60].mxu1 %v386_v49  ;;  %v1327_v49 = vld [vmem:[%s5661_s5 + $0x40] sm:$0xff] }
 0x100   : > { %3103 = vmatprep.mubr.msk.f32.mxu0 %vm4271_vm0, %v4272_v1  ;;  %3231 = vmatprep.mubr.msk.f32.mxu1 %vm4271_vm0, %v4272_v1 }
 0x103   : > { %3104 = vmatmul.mubr.f32.gmra.mrb[62].mxu0 %v355_v50  ;;  %v1328_v50 = vld [vmem:[%s5661_s5 + $0x48] sm:$0xff] }
 0x104   : > { %3452 = vmatprep.mubr.msk.f32.mxu0 %vm4271_vm0, %v4272_v1  ;;  %v3702_v51 = vpack.c.bf16 %v1328_v50, %v1327_v49  ;;  %v1331_v50 = vld [vmem:[%s5661_s5 + $0x60] sm:$0xff] }
 0x106   : > { %3703 = vmatpush3.bf16.msra.mxu0 %v3702_v51  ;;  %v1332_v51 = vld [vmem:[%s5661_s5 + $0x68] sm:$0xff] }
 0x107   : > { %3704 = vmatprep.subr.bf16.mxu0 %v4270_v0 }
 0x15a   : > { %v476_v60 = vpop.f32.mrb[0].mxu0  ;;  %v4745_v61 = vpop.f32.mrb[0].mxu1 }
 0x15b   : > { %v477_v63 = vadd.f32 %v4737_v57, %v476_v60  ;;  %v3012_v2 = vpop.f32.mrb[1].mxu0  ;;  %v3108_v3 = vpop.f32.mrb[1].mxu1 }
 0x15d   : > { %v790_v4 = vmax.f32 %v477_v63, 0.0 }
 0x15e   : > { %v481_v5 = vpop.f32.mrb[2].mxu0  ;;  %v4749_v6 = vpop.f32.mrb[2].mxu1 }
 0x15f   : > { %v482_v7 = vadd.f32 %v4737_v57, %v481_v5  ;;  %v3015_v8 = vpop.f32.mrb[3].mxu0  ;;  %3232 = vmatmul.mubr.f32.vlgmr.msra.gmra.mrb[62].mxu1 %v790_v4  ;;  %v3111_v9 = vpop.f32.mrb[3].mxu1 }
 0x160   : > { %3234 = vmatprep.mubr.msk.f32.mxu1 %vm4271_vm0, %v4272_v1 }
 0x161   : > { %v791_v10 = vmax.f32 %v482_v7, 0.0 }
 0x162   : > { %v486_v11 = vpop.f32.mrb[4].mxu0  ;;  %v4754_v12 = vpop.f32.mrb[4].mxu1 }
 0x163   : > { %v487_v13 = vadd.f32 %v4737_v57, %v486_v11  ;;  %v3018_v14 = vpop.f32.mrb[5].mxu0  ;;  %3235 = vmatmul.mubr.f32.gmra.mrb[64].mxu1 %v791_v10  ;;  %v3114_v15 = vpop.f32.mrb[5].mxu1 }
 0x164   : > { %3237 = vmatprep.mubr.msk.f32.mxu1 %vm4271_vm0, %v4272_v1 }
 0x165   : > { %v792_v16 = vmax.f32 %v487_v13, 0.0 }
 0x166   : > { %v491_v17 = vpop.f32.mrb[6].mxu0  ;;  %v4759_v18 = vpop.f32.mrb[6].mxu1 }
 0x167   : > { %v492_v19 = vadd.f32 %v4737_v57, %v491_v17  ;;  %v3021_v20 = vpop.f32.mrb[7].mxu0  ;;  %3238 = vmatmul.mubr.f32.gmra.mrb[66].mxu1 %v792_v16  ;;  %v3117_v21 = vpop.f32.mrb[7].mxu1 }
 0x168   : > { %3240 = vmatprep.mubr.msk.f32.mxu1 %vm4271_vm0, %v4272_v1  ;;  %v1330_v20 = vld [vmem:[%s5661_s5 + $0x58] sm:$0xff] }
 0x169   : > { %v793_v25 = vmax.f32 %v492_v19, 0.0  ;;  %v1329_v19 = vld [vmem:[%s5661_s5 + $0x50] sm:$0xff] }
 0x16a   : > { %v496_v26 = vpop.f32.mrb[8].mxu0  ;;  %v4770_v27 = vpop.f32.mrb[8].mxu1  ;;  %v3705_v21 = vpack.c.bf16 %v1330_v20, %v1329_v19 }
 0x16b   : > { %v497_v28 = vadd.f32 %v4737_v57, %v496_v26  ;;  %v3024_v29 = vpop.f32.mrb[9].mxu0  ;;  %3241 = vmatmul.mubr.f32.gmra.mrb[68].mxu1 %v793_v25  ;;  %v3120_v30 = vpop.f32.mrb[9].mxu1 }
 0x16c   : > { %3243 = vmatprep.mubr.msk.f32.mxu1 %vm4271_vm0, %v4272_v1  ;;  %3706 = vmatpush3.bf16.msra.mxu0 %v3705_v21 }
 0x16d   : > { %v794_v31 = vmax.f32 %v497_v28, 0.0  ;;  %3707 = vmatprep.subr.bf16.mxu0 %v4270_v0 }
 0x16e   : > { %v501_v32 = vpop.f32.mrb[10].mxu0  ;;  %v4776_v33 = vpop.f32.mrb[10].mxu1 }
 0x16f   : > { %v502_v34 = vadd.f32 %v4737_v57, %v501_v32  ;;  %v3027_v35 = vpop.f32.mrb[11].mxu0  ;;  %3244 = vmatmul.mubr.f32.gmra.mrb[70].mxu1 %v794_v31  ;;  %v3123_v36 = vpop.f32.mrb[11].mxu1 }
 0x170   : > { %3246 = vmatprep.mubr.msk.f32.mxu1 %vm4271_vm0, %v4272_v1 }
 0x171   : > { %v795_v37 = vmax.f32 %v502_v34, 0.0 }
 0x172   : > { %v506_v38 = vpop.f32.mrb[12].mxu0  ;;  %v4781_v39 = vpop.f32.mrb[12].mxu1 }
 0x173   : > { %v507_v40 = vadd.f32 %v4737_v57, %v506_v38  ;;  %v3030_v41 = vpop.f32.mrb[13].mxu0  ;;  %3247 = vmatmul.mubr.f32.gmra.mrb[72].mxu1 %v795_v37  ;;  %v3126_v42 = vpop.f32.mrb[13].mxu1 }
 0x174   : > { %3249 = vmatprep.mubr.msk.f32.mxu1 %vm4271_vm0, %v4272_v1 }
 0x175   : > { %v796_v43 = vmax.f32 %v507_v40, 0.0 }
 0x176   : > { %v511_v44 = vpop.f32.mrb[14].mxu0  ;;  %v4786_v45 = vpop.f32.mrb[14].mxu1 }
 0x177   : > { %v512_v46 = vadd.f32 %v4737_v57, %v511_v44  ;;  %v3033_v47 = vpop.f32.mrb[15].mxu0  ;;  %3250 = vmatmul.mubr.f32.gmra.mrb[74].mxu1 %v796_v43  ;;  %v3129_v48 = vpop.f32.mrb[15].mxu1 }
 0x178   : > { %3252 = vmatprep.mubr.msk.f32.mxu1 %vm4271_vm0, %v4272_v1 }
 0x179   : > { %v797_v52 = vmax.f32 %v512_v46, 0.0 }
 0x17a   : > { %v516_v53 = vpop.f32.mrb[16].mxu0  ;;  %v4797_v54 = vpop.f32.mrb[16].mxu1 }
 0x17b   : > { %v517_v55 = vadd.f32 %v4737_v57, %v516_v53  ;;  %v3036_v56 = vpop.f32.mrb[17].mxu0  ;;  %3253 = vmatmul.mubr.f32.gmra.mrb[76].mxu1 %v797_v52  ;;  %v3132_v58 = vpop.f32.mrb[17].mxu1  ;;  %v3708_v52 = vpack.c.bf16 %v1332_v51, %v1331_v50 }
 0x17c   : > { %3255 = vmatprep.mubr.msk.f32.mxu1 %vm4271_vm0, %v4272_v1 }
 0x17d   : > { %v798_v59 = vmax.f32 %v517_v55, 0.0  ;;  %3709 = vmatpush3.bf16.msra.mxu0 %v3708_v52 }
 0x17e   : > { %v521_v60 = vpop.f32.mrb[18].mxu0  ;;  %v4803_v62 = vpop.f32.mrb[18].mxu1  ;;  %3710 = vmatprep.subr.bf16.mxu0 %v4270_v0 }
 0x17f   : > { %v522_v63 = vadd.f32 %v4737_v57, %v521_v60  ;;  %v3039_v2 = vpop.f32.mrb[19].mxu0  ;;  %3256 = vmatmul.mubr.f32.gmra.mrb[78].mxu1 %v798_v59  ;;  %v3135_v3 = vpop.f32.mrb[19].mxu1 }
 0x180   : > { %3258 = vmatprep.mubr.msk.f32.mxu1 %vm4271_vm0, %v4272_v1 }
 0x181   : > { %v799_v4 = vmax.f32 %v522_v63, 0.0 }
 0x182   : > { %v526_v5 = vpop.f32.mrb[20].mxu0  ;;  %v4808_v7 = vpop.f32.mrb[20].mxu1 }
 0x183   : > { %v527_v8 = vadd.f32 %v4737_v57, %v526_v5  ;;  %v3042_v9 = vpop.f32.mrb[21].mxu0  ;;  %3259 = vmatmul.mubr.f32.gmra.mrb[80].mxu1 %v799_v4  ;;  %v3138_v10 = vpop.f32.mrb[21].mxu1 }
 0x184   : > { %3261 = vmatprep.mubr.msk.f32.mxu1 %vm4271_vm0, %v4272_v1 }
 0x185   : > { %v800_v11 = vmax.f32 %v527_v8, 0.0 }
 0x186   : > { %v531_v13 = vpop.f32.mrb[22].mxu0  ;;  %v4813_v14 = vpop.f32.mrb[22].mxu1 }
 0x187   : > { %v532_v15 = vadd.f32 %v4737_v57, %v531_v13  ;;  %v3045_v16 = vpop.f32.mrb[23].mxu0  ;;  %3262 = vmatmul.mubr.f32.gmra.mrb[82].mxu1 %v800_v11  ;;  %v3141_v17 = vpop.f32.mrb[23].mxu1 }
 0x188   : > { %3264 = vmatprep.mubr.msk.f32.mxu1 %vm4271_vm0, %v4272_v1 }
 0x189   : > { %v801_v22 = vmax.f32 %v532_v15, 0.0 }
 0x18a   : > { %v536_v23 = vpop.f32.mrb[24].mxu0  ;;  %v4824_v24 = vpop.f32.mrb[24].mxu1 }
 0x18b   : > { %v537_v25 = vadd.f32 %v4737_v57, %v536_v23  ;;  %v3048_v26 = vpop.f32.mrb[25].mxu0  ;;  %3265 = vmatmul.mubr.f32.gmra.mrb[84].mxu1 %v801_v22  ;;  %v3144_v28 = vpop.f32.mrb[25].mxu1  ;;  %v1333_v23 = vld [vmem:[%s5661_s5 + $0x70] sm:$0xff] }
 0x18c   : > { %3267 = vmatprep.mubr.msk.f32.mxu1 %vm4271_vm0, %v4272_v1 }
 0x18d   : > { %v802_v29 = vmax.f32 %v537_v25, 0.0  ;;  %v1334_v25 = vld [vmem:[%s5661_s5 + $0x78] sm:$0xff] }
 0x18e   : > { %v541_v30 = vpop.f32.mrb[26].mxu0  ;;  %v4830_v31 = vpop.f32.mrb[26].mxu1  ;;  %v3711_v26 = vpack.c.bf16 %v1334_v25, %v1333_v23 }
 0x18f   : > { %v542_v32 = vadd.f32 %v4737_v57, %v541_v30  ;;  %v3051_v34 = vpop.f32.mrb[27].mxu0  ;;  %3268 = vmatmul.mubr.f32.gmra.mrb[86].mxu1 %v802_v29  ;;  %v3147_v35 = vpop.f32.mrb[27].mxu1 }
 0x190   : > { %3270 = vmatprep.mubr.msk.f32.mxu1 %vm4271_vm0, %v4272_v1  ;;  %3712 = vmatpush3.bf16.msra.mxu0 %v3711_v26 }
 0x191   : > { %v803_v36 = vmax.f32 %v542_v32, 0.0 }
 0x192   : > { %v546_v37 = vpop.f32.mrb[28].mxu0  ;;  %v4835_v38 = vpop.f32.mrb[28].mxu1 }
 0x193   : > { %v547_v40 = vadd.f32 %v4737_v57, %v546_v37  ;;  %v3054_v41 = vpop.f32.mrb[29].mxu0  ;;  %3271 = vmatmul.mubr.f32.gmra.mrb[88].mxu1 %v803_v36  ;;  %v3150_v42 = vpop.f32.mrb[29].mxu1 }
 0x194   : > { %3273 = vmatprep.mubr.msk.f32.mxu1 %vm4271_vm0, %v4272_v1 }
 0x195   : > { %v804_v43 = vmax.f32 %v547_v40, 0.0 }
 0x196   : > { %v551_v44 = vpop.f32.mrb[30].mxu0  ;;  %v4840_v46 = vpop.f32.mrb[30].mxu1 }
 0x197   : > { %v552_v47 = vadd.f32 %v4737_v57, %v551_v44  ;;  %v3057_v48 = vpop.f32.mrb[31].mxu0  ;;  %3274 = vmatmul.mubr.f32.gmra.mrb[90].mxu1 %v804_v43  ;;  %v3153_v49 = vpop.f32.mrb[31].mxu1 }
 0x198   : > { %3276 = vmatprep.mubr.msk.f32.mxu1 %vm4271_vm0, %v4272_v1 }
 0x199   : > { %v805_v53 = vmax.f32 %v552_v47, 0.0 }
 0x19a   : > { %v556_v55 = vpop.f32.mrb[32].mxu0  ;;  %v4851_v56 = vpop.f32.mrb[32].mxu1 }
 0x19b   : > { %v557_v58 = vadd.f32 %v4737_v57, %v556_v55  ;;  %v3060_v59 = vpop.f32.mrb[33].mxu0  ;;  %3277 = vmatmul.mubr.f32.gmra.mrb[92].mxu1 %v805_v53  ;;  %v3156_v60 = vpop.f32.mrb[33].mxu1 }
 0x19c   : > { %3279 = vmatprep.mubr.msk.f32.mxu1 %vm4271_vm0, %v4272_v1 }
 0x19d   : > { %v806_v63 = vmax.f32 %v557_v58, 0.0 }
 0x19e   : > { %v561_v2 = vpop.f32.mrb[34].mxu0  ;;  %v4857_v3 = vpop.f32.mrb[34].mxu1 }
 0x19f   : > { %v562_v4 = vadd.f32 %v4737_v57, %v561_v2  ;;  %v3063_v5 = vpop.f32.mrb[35].mxu0  ;;  %3280 = vmatmul.mubr.f32.gmra.mrb[94].mxu1 %v806_v63  ;;  %v3159_v8 = vpop.f32.mrb[35].mxu1 }
 0x1a0   : > { %3282 = vmatprep.mubr.msk.f32.mxu1 %vm4271_vm0, %v4272_v1 }
 0x1a1   : > { %v807_v9 = vmax.f32 %v562_v4, 0.0 }
 0x1a2   : > { %v566_v10 = vpop.f32.mrb[36].mxu0  ;;  %v4862_v11 = vpop.f32.mrb[36].mxu1 }
 0x1a3   : > { %v567_v0 = vadd.f32 %v4737_v57, %v566_v10  ;;  %v3066_v13 = vpop.f32.mrb[37].mxu0  ;;  %3283 = vmatmul.mubr.f32.gmra.mrb[96].mxu1 %v807_v9  ;;  %v3162_v15 = vpop.f32.mrb[37].mxu1 }
 0x1a4   : > { %3285 = vmatprep.mubr.msk.f32.mxu1 %vm4271_vm0, %v4272_v1 }
 0x1a5   : > { %v808_v16 = vmax.f32 %v567_v0, 0.0 }
 0x1a6   : > { %v571_v17 = vpop.f32.mrb[38].mxu0  ;;  %v4867_v19 = vpop.f32.mrb[38].mxu1 }
 0x1a7   : > { %v572_v20 = vadd.f32 %v4737_v57, %v571_v17  ;;  %v3069_v21 = vpop.f32.mrb[39].mxu0  ;;  %3286 = vmatmul.mubr.f32.gmra.mrb[98].mxu1 %v808_v16  ;;  %v3165_v22 = vpop.f32.mrb[39].mxu1 }
 0x1a8   : > { %3288 = vmatprep.mubr.msk.f32.mxu1 %vm4271_vm0, %v4272_v1 }
 0x1a9   : > { %v809_v28 = vmax.f32 %v572_v20, 0.0 }
 0x1aa   : > { %v576_v29 = vpop.f32.mrb[40].mxu0  ;;  %v4878_v30 = vpop.f32.mrb[40].mxu1 }
 0x1ab   : > { %v577_v32 = vadd.f32 %v4737_v57, %v576_v29  ;;  %v3072_v34 = vpop.f32.mrb[41].mxu0  ;;  %3289 = vmatmul.mubr.f32.gmra.mrb[100].mxu1 %v809_v28  ;;  %v3168_v35 = vpop.f32.mrb[41].mxu1 }
 0x1ac   : > { %3291 = vmatprep.mubr.msk.f32.mxu1 %vm4271_vm0, %v4272_v1 }
 0x1ad   : > { %v810_v36 = vmax.f32 %v577_v32, 0.0 }
 0x1ae   : > { %v581_v37 = vpop.f32.mrb[42].mxu0  ;;  %v4883_v40 = vpop.f32.mrb[42].mxu1 }
 0x1af   : > { %v582_v41 = vadd.f32 %v4737_v57, %v581_v37  ;;  %v3075_v42 = vpop.f32.mrb[43].mxu0  ;;  %3292 = vmatmul.mubr.f32.gmra.mrb[102].mxu1 %v810_v36  ;;  %v3171_v43 = vpop.f32.mrb[43].mxu1 }
 0x1b0   : > { %3294 = vmatprep.mubr.msk.f32.mxu1 %vm4271_vm0, %v4272_v1 }
 0x1b1   : > { %v811_v44 = vmax.f32 %v582_v41, 0.0 }
 0x1b2   : > { %v586_v47 = vpop.f32.mrb[44].mxu0  ;;  %v4888_v48 = vpop.f32.mrb[44].mxu1 }
 0x1b3   : > { %v587_v49 = vadd.f32 %v4737_v57, %v586_v47  ;;  %v3078_v50 = vpop.f32.mrb[45].mxu0  ;;  %3295 = vmatmul.mubr.f32.gmra.mrb[104].mxu1 %v811_v44  ;;  %v3174_v51 = vpop.f32.mrb[45].mxu1 }
 0x1b4   : > { %3297 = vmatprep.mubr.msk.f32.mxu1 %vm4271_vm0, %v4272_v1 }
 0x1b5   : > { %v812_v52 = vmax.f32 %v587_v49, 0.0 }
 0x1b6   : > { %v591_v53 = vpop.f32.mrb[46].mxu0  ;;  %v4893_v55 = vpop.f32.mrb[46].mxu1 }
 0x1b7   : > { %v592_v58 = vadd.f32 %v4737_v57, %v591_v53  ;;  %v3081_v59 = vpop.f32.mrb[47].mxu0  ;;  %3298 = vmatmul.mubr.f32.gmra.mrb[106].mxu1 %v812_v52  ;;  %v3177_v60 = vpop.f32.mrb[47].mxu1 }
 0x1b8   : > { %3300 = vmatprep.mubr.msk.f32.mxu1 %vm4271_vm0, %v4272_v1 }
 0x1b9   : > { %v813_v63 = vmax.f32 %v592_v58, 0.0 }
 0x1ba   : > { %v596_v2 = vpop.f32.mrb[48].mxu0  ;;  %v4898_v4 = vpop.f32.mrb[48].mxu1 }
 0x1bb   : > { %v597_v5 = vadd.f32 %v4737_v57, %v596_v2  ;;  %v3084_v8 = vpop.f32.mrb[49].mxu0  ;;  %3301 = vmatmul.mubr.f32.gmra.mrb[108].mxu1 %v813_v63  ;;  %v3180_v9 = vpop.f32.mrb[49].mxu1 }
 0x1bc   : > { %3303 = vmatprep.mubr.msk.f32.mxu1 %vm4271_vm0, %v4272_v1 }
 0x1bd   : > { %v814_v10 = vmax.f32 %v597_v5, 0.0 }
 0x1be   : > { %v601_v0 = vpop.f32.mrb[50].mxu0  ;;  %v4903_v13 = vpop.f32.mrb[50].mxu1 }
 0x1bf   : > { %v602_v15 = vadd.f32 %v4737_v57, %v601_v0  ;;  %v3087_v16 = vpop.f32.mrb[51].mxu0  ;;  %3304 = vmatmul.mubr.f32.gmra.mrb[110].mxu1 %v814_v10  ;;  %v3183_v17 = vpop.f32.mrb[51].mxu1 }
 0x1c0   : > { %3306 = vmatprep.mubr.msk.f32.mxu1 %vm4271_vm0, %v4272_v1  ;;  %v637_v16 = vadd.f32 %v4737_v57, %v4745_v61 }
 0x1c1   : > { %v815_v20 = vmax.f32 %v602_v15, 0.0 }
 0x1c2   : > { %v606_v21 = vpop.f32.mrb[52].mxu0  ;;  %v4908_v22 = vpop.f32.mrb[52].mxu1 }
 0x1c3   : > { %v607_v23 = vadd.f32 %v4737_v57, %v606_v21  ;;  %v3090_v25 = vpop.f32.mrb[53].mxu0  ;;  %3307 = vmatmul.mubr.f32.gmra.mrb[112].mxu1 %v815_v20  ;;  %v3186_v26 = vpop.f32.mrb[53].mxu1  ;;  %v822_v20 = vmax.f32 %v637_v16, 0.0  ;;  %v642_v21 = vadd.f32 %v4737_v57, %v4749_v6 }
 0x1c4   : > { %3309 = vmatprep.mubr.msk.f32.mxu1 %vm4271_vm0, %v4272_v1  ;;  %v647_v25 = vadd.f32 %v4737_v57, %v4754_v12  ;;  %v652_v26 = vadd.f32 %v4737_v57, %v4759_v18 }
 0x1c5   : > { %v816_v28 = vmax.f32 %v607_v23, 0.0  ;;  %v823_v23 = vmax.f32 %v642_v21, 0.0  ;;  %v757_v21 = vadd.f32 %v4737_v57, %v4898_v4 }
 0x1c6   : > { %v611_v29 = vpop.f32.mrb[54].mxu0  ;;  %v4913_v32 = vpop.f32.mrb[54].mxu1  ;;  %v824_v61 = vmax.f32 %v647_v25, 0.0  ;;  %v825_v6 = vmax.f32 %v652_v26, 0.0 }
 0x1c7   : > { %v612_v34 = vadd.f32 %v4737_v57, %v611_v29  ;;  %v3093_v35 = vpop.f32.mrb[55].mxu0  ;;  %3310 = vmatmul.mubr.f32.gmra.mrb[114].mxu1 %v816_v28  ;;  %v3189_v36 = vpop.f32.mrb[55].mxu1  ;;  %v657_v28 = vadd.f32 %v4737_v57, %v4770_v27  ;;  %v662_v29 = vadd.f32 %v4737_v57, %v4776_v33  ;;  %v846_v26 = vmax.f32 %v757_v21, 0.0 }
 0x1c8   : > { %3312 = vmatprep.mubr.msk.f32.mxu1 %vm4271_vm0, %v4272_v1  ;;  %v672_v35 = vadd.f32 %v4737_v57, %v4786_v45  ;;  %v677_v36 = vadd.f32 %v4737_v57, %v4797_v54 }
 0x1c9   : > { %v817_v37 = vmax.f32 %v612_v34, 0.0  ;;  %v826_v12 = vmax.f32 %v657_v28, 0.0  ;;  %v827_v18 = vmax.f32 %v662_v29, 0.0  ;;  %v667_v34 = vadd.f32 %v4737_v57, %v4781_v39 }
 0x1ca   : > { %v616_v41 = vpop.f32.mrb[56].mxu0  ;;  %v4918_v42 = vpop.f32.mrb[56].mxu1  ;;  %v829_v33 = vmax.f32 %v672_v35, 0.0  ;;  %v830_v39 = vmax.f32 %v677_v36, 0.0 }
 0x1cb   : > { %v617_v43 = vadd.f32 %v4737_v57, %v616_v41  ;;  %v3096_v44 = vpop.f32.mrb[57].mxu0  ;;  %3313 = vmatmul.mubr.f32.gmra.mrb[116].mxu1 %v817_v37  ;;  %v3192_v47 = vpop.f32.mrb[57].mxu1  ;;  %v828_v27 = vmax.f32 %v667_v34, 0.0  ;;  %v682_v37 = vadd.f32 %v4737_v57, %v4803_v62  ;;  %v687_v41 = vadd.f32 %v4737_v57, %v4808_v7 }
 0x1cc   : > { %3315 = vmatprep.mubr.msk.f32.mxu1 %vm4271_vm0, %v4272_v1  ;;  %v697_v44 = vadd.f32 %v4737_v57, %v4824_v24  ;;  %v702_v47 = vadd.f32 %v4737_v57, %v4830_v31  ;;  %v767_v34 = vadd.f32 %v4737_v57, %v4908_v22 }
 0x1cd   : > { %v818_v49 = vmax.f32 %v617_v43, 0.0  ;;  %v831_v45 = vmax.f32 %v682_v37, 0.0  ;;  %v832_v54 = vmax.f32 %v687_v41, 0.0  ;;  %v692_v43 = vadd.f32 %v4737_v57, %v4813_v14 }
 0x1ce   : > { %v621_v50 = vpop.f32.mrb[58].mxu0  ;;  %v4923_v51 = vpop.f32.mrb[58].mxu1  ;;  %v834_v7 = vmax.f32 %v697_v44, 0.0  ;;  %v835_v14 = vmax.f32 %v702_v47, 0.0  ;;  %v848_v36 = vmax.f32 %v767_v34, 0.0 }
 0x1cf   : > { %v622_v52 = vadd.f32 %v4737_v57, %v621_v50  ;;  %v3099_v53 = vpop.f32.mrb[59].mxu0  ;;  %3316 = vmatmul.mubr.f32.gmra.mrb[118].mxu1 %v818_v49  ;;  %v3195_v58 = vpop.f32.mrb[59].mxu1  ;;  %v833_v62 = vmax.f32 %v692_v43, 0.0  ;;  %v707_v49 = vadd.f32 %v4737_v57, %v4835_v38  ;;  %v712_v50 = vadd.f32 %v4737_v57, %v4840_v46 }
 0x1d0   : > { %3318 = vmatprep.mubr.msk.f32.mxu1 %vm4271_vm0, %v4272_v1  ;;  %v722_v53 = vadd.f32 %v4737_v57, %v4857_v3  ;;  %v727_v58 = vadd.f32 %v4737_v57, %v4862_v11  ;;  %v777_v43 = vadd.f32 %v4737_v57, %v4918_v42 }
 0x1d1   : > { %v819_v59 = vmax.f32 %v622_v52, 0.0  ;;  %v836_v24 = vmax.f32 %v707_v49, 0.0  ;;  %v837_v31 = vmax.f32 %v712_v50, 0.0  ;;  %v717_v52 = vadd.f32 %v4737_v57, %v4851_v56 }
 0x1d2   : > { %v626_v60 = vpop.f32.mrb[60].mxu0  ;;  %v4928_v63 = vpop.f32.mrb[60].mxu1  ;;  %v839_v46 = vmax.f32 %v722_v53, 0.0  ;;  %v840_v56 = vmax.f32 %v727_v58, 0.0  ;;  %v850_v47 = vmax.f32 %v777_v43, 0.0 }
 0x1d3   : > { %v627_v2 = vadd.f32 %v4737_v57, %v626_v60  ;;  %v3102_v5 = vpop.f32.mrb[61].mxu0  ;;  %3319 = vmatmul.mubr.f32.gmra.mrb[120].mxu1 %v819_v59  ;;  %v3198_v8 = vpop.f32.mrb[61].mxu1  ;;  %v838_v38 = vmax.f32 %v717_v52, 0.0  ;;  %v732_v59 = vadd.f32 %v4737_v57, %v4867_v19  ;;  %v737_v60 = vadd.f32 %v4737_v57, %v4878_v30  ;;  %v5025_v19 = vld [vmem:[%s5660_s4] ss:$0 sm:$0xff] }
 0x1d4   : > { %3321 = vmatprep.mubr.msk.f32.mxu1 %vm4271_vm0, %v4272_v1  ;;  %v747_v30 = vadd.f32 %v4737_v57, %v4888_v48  ;;  %v787_v52 = vadd.f32 %v4737_v57, %v4928_v63 }
 0x1d5   : > { %v820_v9 = vmax.f32 %v627_v2, 0.0  ;;  %v841_v3 = vmax.f32 %v732_v59, 0.0  ;;  %v842_v11 = vmax.f32 %v737_v60, 0.0  ;;  %v742_v2 = vadd.f32 %v4737_v57, %v4883_v40 }
 0x1d6   : > { %v631_v10 = vpop.f32.mrb[62].mxu0  ;;  %v844_v40 = vmax.f32 %v747_v30, 0.0  ;;  %v852_v58 = vmax.f32 %v787_v52, 0.0 }
 0x1d7   : > { %v632_v0 = vadd.f32 %v4737_v57, %v631_v10  ;;  %v3105_v15 = vpop.f32.mrb[63].mxu0  ;;  %3322 = vmatmul.mubr.f32.gmra.mrb[122].mxu1 %v820_v9  ;;  %v843_v5 = vmax.f32 %v742_v2, 0.0 }
 0x1d8   : > { %3324 = vmatprep.mubr.msk.f32.mxu1 %vm4271_vm0, %v4272_v1 }
 0x1d9   : > { %v821_v17 = vmax.f32 %v632_v0, 0.0  ;;  %v752_v0 = vadd.f32 %v4737_v57, %v4893_v55 }
 0x1db   : > { %3325 = vmatmul.mubr.f32.gmra.mrb[124].mxu1 %v821_v17  ;;  %v845_v48 = vmax.f32 %v752_v0, 0.0 }
 0x1dc   : > { %3327 = vmatprep.mubr.msk.f32.mxu1 %vm4271_vm0, %v4272_v1 }
 0x1df   : > { %3328 = vmatmul.mubr.f32.gmra.mrb[126].mxu1 %v822_v20 }
 0x1e0   : > { %3330 = vmatprep.mubr.msk.f32.mxu1 %vm4271_vm0, %v4272_v1 }
 0x1e3   : > { %3331 = vmatmul.mubr.f32.gmra.mrb[128].mxu1 %v823_v23 }
 0x1e4   : > { %3333 = vmatprep.mubr.msk.f32.mxu1 %vm4271_vm0, %v4272_v1 }
 0x1e7   : > { %3334 = vmatmul.mubr.f32.gmra.mrb[130].mxu1 %v824_v61 }
 0x1e8   : > { %3336 = vmatprep.mubr.msk.f32.mxu1 %vm4271_vm0, %v4272_v1 }
 0x1eb   : > { %3337 = vmatmul.mubr.f32.gmra.mrb[132].mxu1 %v825_v6  ;;  %v762_v6 = vadd.f32 %v4737_v57, %v4903_v13 }
 0x1ec   : > { %3339 = vmatprep.mubr.msk.f32.mxu1 %vm4271_vm0, %v4272_v1 }
 0x1ef   : > { %3340 = vmatmul.mubr.f32.gmra.mrb[134].mxu1 %v826_v12 }
 0x1f0   : > { %3342 = vmatprep.mubr.msk.f32.mxu1 %vm4271_vm0, %v4272_v1 }
 0x1f3   : > { %3343 = vmatmul.mubr.f32.gmra.mrb[136].mxu1 %v827_v18  ;;  %v847_v18 = vmax.f32 %v762_v6, 0.0 }
 0x1f4   : > { %3345 = vmatprep.mubr.msk.f32.mxu1 %vm4271_vm0, %v4272_v1 }
 0x1f7   : > { %3346 = vmatmul.mubr.f32.gmra.mrb[138].mxu1 %v828_v27 }
 0x1f8   : > { %3348 = vmatprep.mubr.msk.f32.mxu1 %vm4271_vm0, %v4272_v1 }
 0x1fb   : > { %3349 = vmatmul.mubr.f32.gmra.mrb[140].mxu1 %v829_v33 }
 0x1fc   : > { %3351 = vmatprep.mubr.msk.f32.mxu1 %vm4271_vm0, %v4272_v1 }
 0x1ff   : > { %3352 = vmatmul.mubr.f32.gmra.mrb[142].mxu1 %v830_v39  ;;  %v772_v39 = vadd.f32 %v4737_v57, %v4913_v32 }
 0x200   : > { %3354 = vmatprep.mubr.msk.f32.mxu1 %vm4271_vm0, %v4272_v1 }
 0x203   : > { %3355 = vmatmul.mubr.f32.gmra.mrb[144].mxu1 %v831_v45 }
 0x204   : > { %3357 = vmatprep.mubr.msk.f32.mxu1 %vm4271_vm0, %v4272_v1 }
 0x207   : > { %3358 = vmatmul.mubr.f32.gmra.mrb[146].mxu1 %v832_v54  ;;  %v849_v54 = vmax.f32 %v772_v39, 0.0 }
 0x208   : > { %3360 = vmatprep.mubr.msk.f32.mxu1 %vm4271_vm0, %v4272_v1 }
 0x20b   : > { %3361 = vmatmul.mubr.f32.gmra.mrb[148].mxu1 %v833_v62 }
 0x20c   : > { %3363 = vmatprep.mubr.msk.f32.mxu1 %vm4271_vm0, %v4272_v1 }
 0x20f   : > { %3364 = vmatmul.mubr.f32.gmra.mrb[150].mxu1 %v834_v7 }
 0x210   : > { %3366 = vmatprep.mubr.msk.f32.mxu1 %vm4271_vm0, %v4272_v1 }
 0x213   : > { %3367 = vmatmul.mubr.f32.gmra.mrb[152].mxu1 %v835_v14  ;;  %v782_v14 = vadd.f32 %v4737_v57, %v4923_v51 }
 0x214   : > { %3369 = vmatprep.mubr.msk.f32.mxu1 %vm4271_vm0, %v4272_v1 }
 0x217   : > { %3370 = vmatmul.mubr.f32.gmra.mrb[154].mxu1 %v836_v24 }
 0x218   : > { %3372 = vmatprep.mubr.msk.f32.mxu1 %vm4271_vm0, %v4272_v1 }
 0x21b   : > { %3373 = vmatmul.mubr.f32.gmra.mrb[156].mxu1 %v837_v31  ;;  %v851_v31 = vmax.f32 %v782_v14, 0.0 }
 0x21c   : > { %3375 = vmatprep.mubr.msk.f32.mxu1 %vm4271_vm0, %v4272_v1 }
 0x21f   : > { %3376 = vmatmul.mubr.f32.gmra.mrb[158].mxu1 %v838_v38 }
 0x220   : > { %3378 = vmatprep.mubr.msk.f32.mxu1 %vm4271_vm0, %v4272_v1 }
 0x223   : > { %3379 = vmatmul.mubr.f32.gmra.mrb[160].mxu1 %v839_v46 }
 0x224   : > { %3381 = vmatprep.mubr.msk.f32.mxu1 %vm4271_vm0, %v4272_v1 }
 0x227   : > { %3382 = vmatmul.mubr.f32.gmra.mrb[162].mxu1 %v840_v56 }
 0x228   : > { %3384 = vmatprep.mubr.msk.f32.mxu1 %vm4271_vm0, %v4272_v1 }
 0x22b   : > { %3385 = vmatmul.mubr.f32.gmra.mrb[164].mxu1 %v841_v3 }
 0x22c   : > { %3387 = vmatprep.mubr.msk.f32.mxu1 %vm4271_vm0, %v4272_v1 }
 0x22f   : > { %3388 = vmatmul.mubr.f32.gmra.mrb[166].mxu1 %v842_v11 }
 0x230   : > { %3390 = vmatprep.mubr.msk.f32.mxu1 %vm4271_vm0, %v4272_v1 }
 0x232   : > { %v942_v8 = vpop.f32.mrb[62].mxu1 }
 0x233   : > { %v943_v9 = vadd.f32 %v5025_v19, %v942_v8  ;;  %v3233_v10 = vpop.f32.mrb[63].mxu1  ;;  %3391 = vmatmul.mubr.f32.gmra.mrb[168].mxu1 %v843_v5 }
 0x234   : > { %3393 = vmatprep.mubr.msk.f32.mxu1 %vm4271_vm0, %v4272_v1 }
 0x235   : > { %v1256_v15 = vmax.f32 %v943_v9, 0.0 }
 0x236   : > { %v947_v16 = vpop.f32.mrb[64].mxu1 }
 0x237   : > { %v948_v17 = vadd.f32 %v5025_v19, %v947_v16  ;;  %v3236_v20 = vpop.f32.mrb[65].mxu1  ;;  %3394 = vmatmul.mubr.f32.gmra.mrb[170].mxu1 %v844_v40  ;;  %3453 = vmatmul.mubr.f32.vlgmr.msra.gmra.mrb[64].mxu0 %v1256_v15 }
 0x238   : > { %3396 = vmatprep.mubr.msk.f32.mxu1 %vm4271_vm0, %v4272_v1  ;;  %3455 = vmatprep.mubr.msk.f32.mxu0 %vm4271_vm0, %v4272_v1 }
 0x239   : > { %v1257_v23 = vmax.f32 %v948_v17, 0.0 }
 0x23a   : > { %v952_v25 = vpop.f32.mrb[66].mxu1 }
 0x23b   : > { %v953_v55 = vadd.f32 %v5025_v19, %v952_v25  ;;  %v3239_v61 = vpop.f32.mrb[67].mxu1  ;;  %3397 = vmatmul.mubr.f32.gmra.mrb[172].mxu1 %v845_v48  ;;  %3456 = vmatmul.mubr.f32.gmra.mrb[66].mxu0 %v1257_v23 }
 0x23c   : > { %3399 = vmatprep.mubr.msk.f32.mxu1 %vm4271_vm0, %v4272_v1  ;;  %3458 = vmatprep.mubr.msk.f32.mxu0 %vm4271_vm0, %v4272_v1 }
 0x23d   : > { %v1258_v28 = vmax.f32 %v953_v55, 0.0 }
 0x23e   : > { %v957_v12 = vpop.f32.mrb[68].mxu1 }
 0x23f   : > { %v958_v4 = vadd.f32 %v5025_v19, %v957_v12  ;;  %v3242_v29 = vpop.f32.mrb[69].mxu1  ;;  %3400 = vmatmul.mubr.f32.gmra.mrb[174].mxu1 %v846_v26  ;;  %3459 = vmatmul.mubr.f32.gmra.mrb[68].mxu0 %v1258_v28 }
 0x240   : > { %3402 = vmatprep.mubr.msk.f32.mxu1 %vm4271_vm0, %v4272_v1  ;;  %3461 = vmatprep.mubr.msk.f32.mxu0 %vm4271_vm0, %v4272_v1 }
 0x241   : > { %v1259_v27 = vmax.f32 %v958_v4, 0.0 }
 0x242   : > { %v962_v35 = vpop.f32.mrb[70].mxu1 }
 0x243   : > { %v963_v13 = vadd.f32 %v5025_v19, %v962_v35  ;;  %v3245_v33 = vpop.f32.mrb[71].mxu1  ;;  %3403 = vmatmul.mubr.f32.gmra.mrb[176].mxu1 %v847_v18  ;;  %3462 = vmatmul.mubr.f32.gmra.mrb[70].mxu0 %v1259_v27 }
 0x244   : > { %3405 = vmatprep.mubr.msk.f32.mxu1 %vm4271_vm0, %v4272_v1  ;;  %3464 = vmatprep.mubr.msk.f32.mxu0 %vm4271_vm0, %v4272_v1 }
 0x245   : > { %v1260_v37 = vmax.f32 %v963_v13, 0.0 }
 0x246   : > { %v967_v45 = vpop.f32.mrb[72].mxu1 }
 0x247   : > { %v968_v22 = vadd.f32 %v5025_v19, %v967_v45  ;;  %v3248_v41 = vpop.f32.mrb[73].mxu1  ;;  %3406 = vmatmul.mubr.f32.gmra.mrb[178].mxu1 %v848_v36  ;;  %3465 = vmatmul.mubr.f32.gmra.mrb[72].mxu0 %v1260_v37 }
 0x248   : > { %3408 = vmatprep.mubr.msk.f32.mxu1 %vm4271_vm0, %v4272_v1  ;;  %3467 = vmatprep.mubr.msk.f32.mxu0 %vm4271_vm0, %v4272_v1 }
 0x249   : > { %v1261_v62 = vmax.f32 %v968_v22, 0.0 }
 0x24a   : > { %v972_v44 = vpop.f32.mrb[74].mxu1 }
 0x24b   : > { %v973_v32 = vadd.f32 %v5025_v19, %v972_v44  ;;  %v3251_v7 = vpop.f32.mrb[75].mxu1  ;;  %3409 = vmatmul.mubr.f32.gmra.mrb[180].mxu1 %v849_v54  ;;  %3468 = vmatmul.mubr.f32.gmra.mrb[74].mxu0 %v1261_v62 }
 0x24c   : > { %3411 = vmatprep.mubr.msk.f32.mxu1 %vm4271_vm0, %v4272_v1  ;;  %3470 = vmatprep.mubr.msk.f32.mxu0 %vm4271_vm0, %v4272_v1 }
 0x24d   : > { %v1262_v49 = vmax.f32 %v973_v32, 0.0 }
 0x24e   : > { %v977_v24 = vpop.f32.mrb[76].mxu1 }
 0x24f   : > { %v978_v42 = vadd.f32 %v5025_v19, %v977_v24  ;;  %v3254_v50 = vpop.f32.mrb[77].mxu1  ;;  %3412 = vmatmul.mubr.f32.gmra.mrb[182].mxu1 %v850_v47  ;;  %3471 = vmatmul.mubr.f32.gmra.mrb[76].mxu0 %v1262_v49 }
 0x250   : > { %3414 = vmatprep.mubr.msk.f32.mxu1 %vm4271_vm0, %v4272_v1  ;;  %3473 = vmatprep.mubr.msk.f32.mxu0 %vm4271_vm0, %v4272_v1 }
 0x251   : > { %v1263_v38 = vmax.f32 %v978_v42, 0.0 }
 0x252   : > { %v982_v53 = vpop.f32.mrb[78].mxu1 }
 0x253   : > { %v983_v51 = vadd.f32 %v5025_v19, %v982_v53  ;;  %v3257_v46 = vpop.f32.mrb[79].mxu1  ;;  %3415 = vmatmul.mubr.f32.gmra.mrb[184].mxu1 %v851_v31  ;;  %3474 = vmatmul.mubr.f32.gmra.mrb[78].mxu0 %v1263_v38 }
 0x254   : > { %3417 = vmatprep.mubr.msk.f32.mxu1 %vm4271_vm0, %v4272_v1  ;;  %3476 = vmatprep.mubr.msk.f32.mxu0 %vm4271_vm0, %v4272_v1 }
 0x255   : > { %v1264_v56 = vmax.f32 %v983_v51, 0.0 }
 0x256   : > { %v987_v59 = vpop.f32.mrb[80].mxu1 }
 0x257   : > { %v988_v3 = vadd.f32 %v5025_v19, %v987_v59  ;;  %v3260_v60 = vpop.f32.mrb[81].mxu1  ;;  %3418 = vmatmul.mubr.f32.gmra.mrb[186].mxu1 %v852_v58  ;;  %3477 = vmatmul.mubr.f32.gmra.mrb[80].mxu0 %v1264_v56 }
 0x258   : > { %3479 = vmatprep.mubr.msk.f32.mxu0 %vm4271_vm0, %v4272_v1 }
 0x259   : > { %v1265_v57 = vmax.f32 %v988_v3, 0.0 }
 0x25a   : > { %v992_v63 = vpop.f32.mrb[82].mxu1 }
 0x25b   : > { %v993_v11 = vadd.f32 %v5025_v19, %v992_v63  ;;  %v3263_v2 = vpop.f32.mrb[83].mxu1  ;;  %3480 = vmatmul.mubr.f32.gmra.mrb[82].mxu0 %v1265_v57 }
 0x25c   : > { %3482 = vmatprep.mubr.msk.f32.mxu0 %vm4271_vm0, %v4272_v1 }
 0x25d   : > { %v1266_v5 = vmax.f32 %v993_v11, 0.0 }
 0x25e   : > { %v997_v30 = vpop.f32.mrb[84].mxu1 }
 0x25f   : > { %v998_v8 = vadd.f32 %v5025_v19, %v997_v30  ;;  %v3266_v9 = vpop.f32.mrb[85].mxu1  ;;  %3483 = vmatmul.mubr.f32.gmra.mrb[84].mxu0 %v1266_v5 }
 0x260   : > { %3485 = vmatprep.mubr.msk.f32.mxu0 %vm4271_vm0, %v4272_v1 }
 0x261   : > { %v1267_v10 = vmax.f32 %v998_v8, 0.0 }
 0x262   : > { %v1002_v40 = vpop.f32.mrb[86].mxu1 }
 0x263   : > { %v1003_v0 = vadd.f32 %v5025_v19, %v1002_v40  ;;  %v3269_v15 = vpop.f32.mrb[87].mxu1  ;;  %3486 = vmatmul.mubr.f32.gmra.mrb[86].mxu0 %v1267_v10 }
 0x264   : > { %3488 = vmatprep.mubr.msk.f32.mxu0 %vm4271_vm0, %v4272_v1 }
 0x265   : > { %v1268_v16 = vmax.f32 %v1003_v0, 0.0 }
 0x266   : > { %v1007_v17 = vpop.f32.mrb[88].mxu1 }
 0x267   : > { %v1008_v20 = vadd.f32 %v5025_v19, %v1007_v17  ;;  %v3272_v48 = vpop.f32.mrb[89].mxu1  ;;  %3489 = vmatmul.mubr.f32.gmra.mrb[88].mxu0 %v1268_v16 }
 0x268   : > { %3491 = vmatprep.mubr.msk.f32.mxu0 %vm4271_vm0, %v4272_v1 }
 0x269   : > { %v1269_v21 = vmax.f32 %v1008_v20, 0.0 }
 0x26a   : > { %v1012_v23 = vpop.f32.mrb[90].mxu1 }
 0x26b   : > { %v1013_v25 = vadd.f32 %v5025_v19, %v1012_v23  ;;  %v3275_v55 = vpop.f32.mrb[91].mxu1  ;;  %3492 = vmatmul.mubr.f32.gmra.mrb[90].mxu0 %v1269_v21 }
 0x26c   : > { %3494 = vmatprep.mubr.msk.f32.mxu0 %vm4271_vm0, %v4272_v1 }
 0x26d   : > { %v1270_v61 = vmax.f32 %v1013_v25, 0.0 }
 0x26e   : > { %v1017_v26 = vpop.f32.mrb[92].mxu1 }
 0x26f   : > { %v1018_v6 = vadd.f32 %v5025_v19, %v1017_v26  ;;  %v3278_v28 = vpop.f32.mrb[93].mxu1  ;;  %3495 = vmatmul.mubr.f32.gmra.mrb[92].mxu0 %v1270_v61 }
 0x270   : > { %3497 = vmatprep.mubr.msk.f32.mxu0 %vm4271_vm0, %v4272_v1 }
 0x271   : > { %v1271_v12 = vmax.f32 %v1018_v6, 0.0 }
 0x272   : > { %v1022_v4 = vpop.f32.mrb[94].mxu1 }
 0x273   : > { %v1023_v29 = vadd.f32 %v5025_v19, %v1022_v4  ;;  %v3281_v18 = vpop.f32.mrb[95].mxu1  ;;  %3498 = vmatmul.mubr.f32.gmra.mrb[94].mxu0 %v1271_v12 }
 0x274   : > { %3500 = vmatprep.mubr.msk.f32.mxu0 %vm4271_vm0, %v4272_v1 }
 0x275   : > { %v1272_v34 = vmax.f32 %v1023_v29, 0.0 }
 0x276   : > { %v1027_v27 = vpop.f32.mrb[96].mxu1 }
 0x277   : > { %v1028_v35 = vadd.f32 %v5025_v19, %v1027_v27  ;;  %v3284_v13 = vpop.f32.mrb[97].mxu1  ;;  %3501 = vmatmul.mubr.f32.gmra.mrb[96].mxu0 %v1272_v34 }
 0x278   : > { %3503 = vmatprep.mubr.msk.f32.mxu0 %vm4271_vm0, %v4272_v1 }
 0x279   : > { %v1273_v33 = vmax.f32 %v1028_v35, 0.0 }
 0x27a   : > { %v1032_v36 = vpop.f32.mrb[98].mxu1 }
 0x27b   : > { %v1033_v39 = vadd.f32 %v5025_v19, %v1032_v36  ;;  %v3287_v37 = vpop.f32.mrb[99].mxu1  ;;  %3504 = vmatmul.mubr.f32.gmra.mrb[98].mxu0 %v1273_v33 }
 0x27c   : > { %3506 = vmatprep.mubr.msk.f32.mxu0 %vm4271_vm0, %v4272_v1 }
 0x27d   : > { %v1274_v45 = vmax.f32 %v1033_v39, 0.0 }
 0x27e   : > { %v1037_v22 = vpop.f32.mrb[100].mxu1 }
 0x27f   : > { %v1038_v41 = vadd.f32 %v5025_v19, %v1037_v22  ;;  %v3290_v54 = vpop.f32.mrb[101].mxu1  ;;  %3507 = vmatmul.mubr.f32.gmra.mrb[100].mxu0 %v1274_v45 }
 0x280   : > { %3509 = vmatprep.mubr.msk.f32.mxu0 %vm4271_vm0, %v4272_v1 }
 0x281   : > { %v1275_v43 = vmax.f32 %v1038_v41, 0.0 }
 0x282   : > { %v1042_v62 = vpop.f32.mrb[102].mxu1 }
 0x283   : > { %v1043_v44 = vadd.f32 %v5025_v19, %v1042_v62  ;;  %v3293_v32 = vpop.f32.mrb[103].mxu1  ;;  %3510 = vmatmul.mubr.f32.gmra.mrb[102].mxu0 %v1275_v43 }
 0x284   : > { %3512 = vmatprep.mubr.msk.f32.mxu0 %vm4271_vm0, %v4272_v1 }
 0x285   : > { %v1276_v7 = vmax.f32 %v1043_v44, 0.0 }
 0x286   : > { %v1047_v47 = vpop.f32.mrb[104].mxu1 }
 0x287   : > { %v1048_v14 = vadd.f32 %v5025_v19, %v1047_v47  ;;  %v3296_v49 = vpop.f32.mrb[105].mxu1  ;;  %3513 = vmatmul.mubr.f32.gmra.mrb[104].mxu0 %v1276_v7 }
 0x288   : > { %3515 = vmatprep.mubr.msk.f32.mxu0 %vm4271_vm0, %v4272_v1 }
 0x289   : > { %v1277_v24 = vmax.f32 %v1048_v14, 0.0 }
 0x28a   : > { %v1052_v42 = vpop.f32.mrb[106].mxu1 }
 0x28b   : > { %v1053_v50 = vadd.f32 %v5025_v19, %v1052_v42  ;;  %v3299_v31 = vpop.f32.mrb[107].mxu1  ;;  %3516 = vmatmul.mubr.f32.gmra.mrb[106].mxu0 %v1277_v24 }
 0x28c   : > { %3518 = vmatprep.mubr.msk.f32.mxu0 %vm4271_vm0, %v4272_v1 }
 0x28d   : > { %v1278_v52 = vmax.f32 %v1053_v50, 0.0 }
 0x28e   : > { %v1057_v38 = vpop.f32.mrb[108].mxu1 }
 0x28f   : > { %v1058_v53 = vadd.f32 %v5025_v19, %v1057_v38  ;;  %v3302_v51 = vpop.f32.mrb[109].mxu1  ;;  %3519 = vmatmul.mubr.f32.gmra.mrb[108].mxu0 %v1278_v52 }
 0x290   : > { %3521 = vmatprep.mubr.msk.f32.mxu0 %vm4271_vm0, %v4272_v1 }
 0x291   : > { %v1279_v46 = vmax.f32 %v1058_v53, 0.0 }
 0x292   : > { %v1062_v58 = vpop.f32.mrb[110].mxu1 }
 0x293   : > { %v1063_v56 = vadd.f32 %v5025_v19, %v1062_v58  ;;  %v3305_v59 = vpop.f32.mrb[111].mxu1  ;;  %3522 = vmatmul.mubr.f32.gmra.mrb[110].mxu0 %v1279_v46 }
 0x294   : > { %3524 = vmatprep.mubr.msk.f32.mxu0 %vm4271_vm0, %v4272_v1 }
 0x295   : > { %v1280_v3 = vmax.f32 %v1063_v56, 0.0 }
 0x296   : > { %v1067_v60 = vpop.f32.mrb[112].mxu1 }
 0x297   : > { %v1068_v57 = vadd.f32 %v5025_v19, %v1067_v60  ;;  %v3308_v63 = vpop.f32.mrb[113].mxu1  ;;  %3525 = vmatmul.mubr.f32.gmra.mrb[112].mxu0 %v1280_v3 }
 0x298   : > { %3527 = vmatprep.mubr.msk.f32.mxu0 %vm4271_vm0, %v4272_v1 }
 0x299   : > { %v1281_v11 = vmax.f32 %v1068_v57, 0.0 }
 0x29a   : > { %v1072_v2 = vpop.f32.mrb[114].mxu1 }
 0x29b   : > { %v1073_v5 = vadd.f32 %v5025_v19, %v1072_v2  ;;  %v3311_v30 = vpop.f32.mrb[115].mxu1  ;;  %3528 = vmatmul.mubr.f32.gmra.mrb[114].mxu0 %v1281_v11 }
 0x29c   : > { %3530 = vmatprep.mubr.msk.f32.mxu0 %vm4271_vm0, %v4272_v1 }
 0x29d   : > { %v1282_v8 = vmax.f32 %v1073_v5, 0.0 }
 0x29e   : > { %v1077_v9 = vpop.f32.mrb[116].mxu1 }
 0x29f   : > { %v1078_v10 = vadd.f32 %v5025_v19, %v1077_v9  ;;  %v3314_v40 = vpop.f32.mrb[117].mxu1  ;;  %3531 = vmatmul.mubr.f32.gmra.mrb[116].mxu0 %v1282_v8 }
 0x2a0   : > { %3533 = vmatprep.mubr.msk.f32.mxu0 %vm4271_vm0, %v4272_v1 }
 0x2a1   : > { %v1283_v0 = vmax.f32 %v1078_v10, 0.0 }
 0x2a2   : > { %v1082_v15 = vpop.f32.mrb[118].mxu1 }
 0x2a3   : > { %v1083_v16 = vadd.f32 %v5025_v19, %v1082_v15  ;;  %v3317_v17 = vpop.f32.mrb[119].mxu1  ;;  %3534 = vmatmul.mubr.f32.gmra.mrb[118].mxu0 %v1283_v0 }
 0x2a4   : > { %3536 = vmatprep.mubr.msk.f32.mxu0 %vm4271_vm0, %v4272_v1 }
 0x2a5   : > { %v1284_v20 = vmax.f32 %v1083_v16, 0.0 }
 0x2a6   : > { %v1087_v48 = vpop.f32.mrb[120].mxu1 }
 0x2a7   : > { %v1088_v21 = vadd.f32 %v5025_v19, %v1087_v48  ;;  %v3320_v23 = vpop.f32.mrb[121].mxu1  ;;  %3537 = vmatmul.mubr.f32.gmra.mrb[120].mxu0 %v1284_v20 }
 0x2a8   : > { %3539 = vmatprep.mubr.msk.f32.mxu0 %vm4271_vm0, %v4272_v1 }
 0x2a9   : > { %v1285_v25 = vmax.f32 %v1088_v21, 0.0 }
 0x2aa   : > { %v1092_v55 = vpop.f32.mrb[122].mxu1 }
 0x2ab   : > { %v1093_v61 = vadd.f32 %v5025_v19, %v1092_v55  ;;  %v3323_v26 = vpop.f32.mrb[123].mxu1  ;;  %3540 = vmatmul.mubr.f32.gmra.mrb[122].mxu0 %v1285_v25 }
 0x2ac   : > { %3542 = vmatprep.mubr.msk.f32.mxu0 %vm4271_vm0, %v4272_v1 }
 0x2ad   : > { %v1286_v6 = vmax.f32 %v1093_v61, 0.0 }
 0x2ae   : > { %v1097_v28 = vpop.f32.mrb[124].mxu1 }
 0x2af   : > { %v1098_v12 = vadd.f32 %v5025_v19, %v1097_v28  ;;  %v3326_v4 = vpop.f32.mrb[125].mxu1  ;;  %3543 = vmatmul.mubr.f32.gmra.mrb[124].mxu0 %v1286_v6 }
 0x2b0   : > { %3545 = vmatprep.mubr.msk.f32.mxu0 %vm4271_vm0, %v4272_v1 }
 0x2b1   : > { %v1287_v29 = vmax.f32 %v1098_v12, 0.0 }
 0x2b2   : > { %v1102_v18 = vpop.f32.mrb[126].mxu1 }
 0x2b3   : > { %v1103_v34 = vadd.f32 %v5025_v19, %v1102_v18  ;;  %v3329_v27 = vpop.f32.mrb[127].mxu1  ;;  %3546 = vmatmul.mubr.f32.gmra.mrb[126].mxu0 %v1287_v29 }
 0x2b4   : > { %3548 = vmatprep.mubr.msk.f32.mxu0 %vm4271_vm0, %v4272_v1 }
 0x2b5   : > { %v1288_v35 = vmax.f32 %v1103_v34, 0.0 }
 0x2b6   : > { %v1107_v13 = vpop.f32.mrb[128].mxu1 }
 0x2b7   : > { %v1108_v33 = vadd.f32 %v5025_v19, %v1107_v13  ;;  %v3332_v36 = vpop.f32.mrb[129].mxu1  ;;  %3549 = vmatmul.mubr.f32.gmra.mrb[128].mxu0 %v1288_v35 }
 0x2b8   : > { %3551 = vmatprep.mubr.msk.f32.mxu0 %vm4271_vm0, %v4272_v1 }
 0x2b9   : > { %v1289_v39 = vmax.f32 %v1108_v33, 0.0 }
 0x2ba   : > { %v1112_v37 = vpop.f32.mrb[130].mxu1 }
 0x2bb   : > { %v1113_v45 = vadd.f32 %v5025_v19, %v1112_v37  ;;  %v3335_v22 = vpop.f32.mrb[131].mxu1  ;;  %3552 = vmatmul.mubr.f32.gmra.mrb[130].mxu0 %v1289_v39 }
 0x2bc   : > { %3554 = vmatprep.mubr.msk.f32.mxu0 %vm4271_vm0, %v4272_v1 }
 0x2bd   : > { %v1290_v41 = vmax.f32 %v1113_v45, 0.0 }
 0x2be   : > { %v1117_v54 = vpop.f32.mrb[132].mxu1 }
 0x2bf   : > { %v1118_v43 = vadd.f32 %v5025_v19, %v1117_v54  ;;  %v3338_v62 = vpop.f32.mrb[133].mxu1  ;;  %3555 = vmatmul.mubr.f32.gmra.mrb[132].mxu0 %v1290_v41 }
 0x2c0   : > { %3557 = vmatprep.mubr.msk.f32.mxu0 %vm4271_vm0, %v4272_v1 }
 0x2c1   : > { %v1291_v44 = vmax.f32 %v1118_v43, 0.0 }
 0x2c2   : > { %v1122_v32 = vpop.f32.mrb[134].mxu1 }
 0x2c3   : > { %v1123_v7 = vadd.f32 %v5025_v19, %v1122_v32  ;;  %v3341_v47 = vpop.f32.mrb[135].mxu1  ;;  %3558 = vmatmul.mubr.f32.gmra.mrb[134].mxu0 %v1291_v44 }
 0x2c4   : > { %3560 = vmatprep.mubr.msk.f32.mxu0 %vm4271_vm0, %v4272_v1 }
 0x2c5   : > { %v1292_v14 = vmax.f32 %v1123_v7, 0.0 }
 0x2c6   : > { %v1127_v49 = vpop.f32.mrb[136].mxu1 }
 0x2c7   : > { %v1128_v24 = vadd.f32 %v5025_v19, %v1127_v49  ;;  %v3344_v42 = vpop.f32.mrb[137].mxu1  ;;  %3561 = vmatmul.mubr.f32.gmra.mrb[136].mxu0 %v1292_v14 }
 0x2c8   : > { %3563 = vmatprep.mubr.msk.f32.mxu0 %vm4271_vm0, %v4272_v1 }
 0x2c9   : > { %v1293_v50 = vmax.f32 %v1128_v24, 0.0 }
 0x2ca   : > { %v1132_v31 = vpop.f32.mrb[138].mxu1 }
 0x2cb   : > { %v1133_v52 = vadd.f32 %v5025_v19, %v1132_v31  ;;  %v3347_v38 = vpop.f32.mrb[139].mxu1  ;;  %3564 = vmatmul.mubr.f32.gmra.mrb[138].mxu0 %v1293_v50 }
 0x2cc   : > { %3566 = vmatprep.mubr.msk.f32.mxu0 %vm4271_vm0, %v4272_v1 }
 0x2cd   : > { %v1294_v53 = vmax.f32 %v1133_v52, 0.0  ;;  %v5226_v52 = vld [vmem:[%s5662_s6] ss:$0 sm:$0xff] }
 0x2ce   : > { %v1137_v51 = vpop.f32.mrb[140].mxu1 }
 0x2cf   : > { %v1138_v46 = vadd.f32 %v5025_v19, %v1137_v51  ;;  %v3350_v58 = vpop.f32.mrb[141].mxu1  ;;  %3567 = vmatmul.mubr.f32.gmra.mrb[140].mxu0 %v1294_v53 }
 0x2d0   : > { %3569 = vmatprep.mubr.msk.f32.mxu0 %vm4271_vm0, %v4272_v1 }
 0x2d1   : > { %v1295_v56 = vmax.f32 %v1138_v46, 0.0 }
 0x2d2   : > { %v1142_v59 = vpop.f32.mrb[142].mxu1 }
 0x2d3   : > { %v1143_v3 = vadd.f32 %v5025_v19, %v1142_v59  ;;  %v3353_v60 = vpop.f32.mrb[143].mxu1  ;;  %3570 = vmatmul.mubr.f32.gmra.mrb[142].mxu0 %v1295_v56 }
 0x2d4   : > { %3572 = vmatprep.mubr.msk.f32.mxu0 %vm4271_vm0, %v4272_v1 }
 0x2d5   : > { %v1296_v57 = vmax.f32 %v1143_v3, 0.0 }
 0x2d6   : > { %v1147_v63 = vpop.f32.mrb[144].mxu1 }
 0x2d7   : > { %v1148_v11 = vadd.f32 %v5025_v19, %v1147_v63  ;;  %v3356_v2 = vpop.f32.mrb[145].mxu1  ;;  %3573 = vmatmul.mubr.f32.gmra.mrb[144].mxu0 %v1296_v57 }
 0x2d8   : > { %3575 = vmatprep.mubr.msk.f32.mxu0 %vm4271_vm0, %v4272_v1 }
 0x2d9   : > { %v1297_v5 = vmax.f32 %v1148_v11, 0.0 }
 0x2da   : > { %v1152_v30 = vpop.f32.mrb[146].mxu1 }
 0x2db   : > { %v1153_v8 = vadd.f32 %v5025_v19, %v1152_v30  ;;  %v3359_v9 = vpop.f32.mrb[147].mxu1  ;;  %3576 = vmatmul.mubr.f32.gmra.mrb[146].mxu0 %v1297_v5 }
 0x2dc   : > { %3578 = vmatprep.mubr.msk.f32.mxu0 %vm4271_vm0, %v4272_v1 }
 0x2dd   : > { %v1298_v10 = vmax.f32 %v1153_v8, 0.0 }
 0x2de   : > { %v1157_v40 = vpop.f32.mrb[148].mxu1 }
 0x2df   : > { %v1158_v0 = vadd.f32 %v5025_v19, %v1157_v40  ;;  %v3362_v15 = vpop.f32.mrb[149].mxu1  ;;  %3579 = vmatmul.mubr.f32.gmra.mrb[148].mxu0 %v1298_v10 }
 0x2e0   : > { %3581 = vmatprep.mubr.msk.f32.mxu0 %vm4271_vm0, %v4272_v1 }
 0x2e1   : > { %v1299_v16 = vmax.f32 %v1158_v0, 0.0 }
 0x2e2   : > { %v1162_v17 = vpop.f32.mrb[150].mxu1 }
 0x2e3   : > { %v1163_v20 = vadd.f32 %v5025_v19, %v1162_v17  ;;  %v3365_v48 = vpop.f32.mrb[151].mxu1  ;;  %3582 = vmatmul.mubr.f32.gmra.mrb[150].mxu0 %v1299_v16 }
 0x2e4   : > { %3584 = vmatprep.mubr.msk.f32.mxu0 %vm4271_vm0, %v4272_v1 }
 0x2e5   : > { %v1300_v21 = vmax.f32 %v1163_v20, 0.0 }
 0x2e6   : > { %v1167_v23 = vpop.f32.mrb[152].mxu1 }
 0x2e7   : > { %v1168_v25 = vadd.f32 %v5025_v19, %v1167_v23  ;;  %v3368_v55 = vpop.f32.mrb[153].mxu1  ;;  %3585 = vmatmul.mubr.f32.gmra.mrb[152].mxu0 %v1300_v21 }
 0x2e8   : > { %3587 = vmatprep.mubr.msk.f32.mxu0 %vm4271_vm0, %v4272_v1 }
 0x2e9   : > { %v1301_v61 = vmax.f32 %v1168_v25, 0.0 }
 0x2ea   : > { %v1172_v26 = vpop.f32.mrb[154].mxu1 }
 0x2eb   : > { %v1173_v6 = vadd.f32 %v5025_v19, %v1172_v26  ;;  %v3371_v28 = vpop.f32.mrb[155].mxu1  ;;  %3588 = vmatmul.mubr.f32.gmra.mrb[154].mxu0 %v1301_v61 }
 0x2ec   : > { %3590 = vmatprep.mubr.msk.f32.mxu0 %vm4271_vm0, %v4272_v1 }
 0x2ed   : > { %v1302_v12 = vmax.f32 %v1173_v6, 0.0 }
 0x2ee   : > { %v1177_v4 = vpop.f32.mrb[156].mxu1 }
 0x2ef   : > { %v1178_v29 = vadd.f32 %v5025_v19, %v1177_v4  ;;  %v3374_v18 = vpop.f32.mrb[157].mxu1  ;;  %3591 = vmatmul.mubr.f32.gmra.mrb[156].mxu0 %v1302_v12 }
 0x2f0   : > { %3593 = vmatprep.mubr.msk.f32.mxu0 %vm4271_vm0, %v4272_v1 }
 0x2f1   : > { %v1303_v34 = vmax.f32 %v1178_v29, 0.0 }
 0x2f2   : > { %v1182_v27 = vpop.f32.mrb[158].mxu1 }
 0x2f3   : > { %v1183_v35 = vadd.f32 %v5025_v19, %v1182_v27  ;;  %v3377_v13 = vpop.f32.mrb[159].mxu1  ;;  %3594 = vmatmul.mubr.f32.gmra.mrb[158].mxu0 %v1303_v34 }
 0x2f4   : > { %3596 = vmatprep.mubr.msk.f32.mxu0 %vm4271_vm0, %v4272_v1 }
 0x2f5   : > { %v1304_v33 = vmax.f32 %v1183_v35, 0.0 }
 0x2f6   : > { %v1187_v36 = vpop.f32.mrb[160].mxu1 }
 0x2f7   : > { %v1188_v39 = vadd.f32 %v5025_v19, %v1187_v36  ;;  %v3380_v37 = vpop.f32.mrb[161].mxu1  ;;  %3597 = vmatmul.mubr.f32.gmra.mrb[160].mxu0 %v1304_v33 }
 0x2f8   : > { %3599 = vmatprep.mubr.msk.f32.mxu0 %vm4271_vm0, %v4272_v1 }
 0x2f9   : > { %v1305_v45 = vmax.f32 %v1188_v39, 0.0 }
 0x2fa   : > { %v1192_v22 = vpop.f32.mrb[162].mxu1 }
 0x2fb   : > { %v1193_v41 = vadd.f32 %v5025_v19, %v1192_v22  ;;  %v3383_v54 = vpop.f32.mrb[163].mxu1  ;;  %3600 = vmatmul.mubr.f32.gmra.mrb[162].mxu0 %v1305_v45 }
 0x2fc   : > { %3602 = vmatprep.mubr.msk.f32.mxu0 %vm4271_vm0, %v4272_v1 }
 0x2fd   : > { %v1306_v43 = vmax.f32 %v1193_v41, 0.0 }
 0x2fe   : > { %v1197_v62 = vpop.f32.mrb[164].mxu1 }
 0x2ff   : > { %v1198_v44 = vadd.f32 %v5025_v19, %v1197_v62  ;;  %v3386_v32 = vpop.f32.mrb[165].mxu1  ;;  %3603 = vmatmul.mubr.f32.gmra.mrb[164].mxu0 %v1306_v43 }
 0x300   : > { %3605 = vmatprep.mubr.msk.f32.mxu0 %vm4271_vm0, %v4272_v1 }
 0x301   : > { %v1307_v7 = vmax.f32 %v1198_v44, 0.0 }
 0x302   : > { %v1202_v47 = vpop.f32.mrb[166].mxu1 }
 0x303   : > { %v1203_v14 = vadd.f32 %v5025_v19, %v1202_v47  ;;  %v3389_v49 = vpop.f32.mrb[167].mxu1  ;;  %3606 = vmatmul.mubr.f32.gmra.mrb[166].mxu0 %v1307_v7 }
 0x304   : > { %3608 = vmatprep.mubr.msk.f32.mxu0 %vm4271_vm0, %v4272_v1 }
 0x305   : > { %v1308_v24 = vmax.f32 %v1203_v14, 0.0 }
 0x306   : > { %v1207_v42 = vpop.f32.mrb[168].mxu1 }
 0x307   : > { %v1208_v50 = vadd.f32 %v5025_v19, %v1207_v42  ;;  %v3392_v31 = vpop.f32.mrb[169].mxu1  ;;  %3609 = vmatmul.mubr.f32.gmra.mrb[168].mxu0 %v1308_v24 }
 0x308   : > { %3611 = vmatprep.mubr.msk.f32.mxu0 %vm4271_vm0, %v4272_v1 }
 0x309   : > { %v1309_v38 = vmax.f32 %v1208_v50, 0.0 }
 0x30a   : > { %v1212_v53 = vpop.f32.mrb[170].mxu1  ;;  %v1408_v51 = vpop.f32.mrb[64].mxu0 }
 0x30b   : > { %v1213_v46 = vadd.f32 %v5025_v19, %v1212_v53  ;;  %v1409_v58 = vadd.f32 %v5226_v52, %v1408_v51  ;;  %v3395_v56 = vpop.f32.mrb[171].mxu1  ;;  %v3454_v59 = vpop.f32.mrb[65].mxu0  ;;  %3612 = vmatmul.mubr.f32.gmra.mrb[170].mxu0 %v1309_v38 }
 0x30c   : > { %3614 = vmatprep.mubr.msk.f32.mxu0 %vm4271_vm0, %v4272_v1 }
 0x30d   : > { %v1310_v3 = vmax.f32 %v1213_v46, 0.0  ;;  %v2664_v60 = vmul.f32 -1.442695, %v1409_v58 }
 0x30e   : > { %v1217_v57 = vpop.f32.mrb[172].mxu1  ;;  %v1413_v63 = vpop.f32.mrb[66].mxu0 }
 0x30f   : > { %3847 = vpow2.f32 %v2664_v60  ;;  %v1218_v11 = vadd.f32 %v5025_v19, %v1217_v57  ;;  %v1414_v2 = vadd.f32 %v5226_v52, %v1413_v63  ;;  %v3398_v5 = vpop.f32.mrb[173].mxu1  ;;  %v3457_v30 = vpop.f32.mrb[67].mxu0  ;;  %3615 = vmatmul.mubr.f32.gmra.mrb[172].mxu0 %v1310_v3 }
 0x310   : > { %3617 = vmatprep.mubr.msk.f32.mxu0 %vm4271_vm0, %v4272_v1 }
 0x311   : > { %v1311_v8 = vmax.f32 %v1218_v11, 0.0  ;;  %v2665_v9 = vmul.f32 -1.442695, %v1414_v2 }
 0x312   : > { %v1222_v10 = vpop.f32.mrb[174].mxu1  ;;  %v1418_v40 = vpop.f32.mrb[68].mxu0 }
 0x313   : > { %3849 = vpow2.f32 %v2665_v9  ;;  %v1223_v0 = vadd.f32 %v5025_v19, %v1222_v10  ;;  %v1419_v15 = vadd.f32 %v5226_v52, %v1418_v40  ;;  %v3401_v16 = vpop.f32.mrb[175].mxu1  ;;  %v3460_v17 = vpop.f32.mrb[69].mxu0  ;;  %3618 = vmatmul.mubr.f32.gmra.mrb[174].mxu0 %v1311_v8 }
 0x314   : > { %3620 = vmatprep.mubr.msk.f32.mxu0 %vm4271_vm0, %v4272_v1 }
 0x315   : > { %v1312_v20 = vmax.f32 %v1223_v0, 0.0  ;;  %v2666_v48 = vmul.f32 -1.442695, %v1419_v15 }
 0x316   : > { %v1227_v21 = vpop.f32.mrb[176].mxu1  ;;  %v1423_v23 = vpop.f32.mrb[70].mxu0 }
 0x317   : > { %3851 = vpow2.f32 %v2666_v48  ;;  %v1228_v25 = vadd.f32 %v5025_v19, %v1227_v21  ;;  %v1424_v55 = vadd.f32 %v5226_v52, %v1423_v23  ;;  %v3404_v61 = vpop.f32.mrb[177].mxu1  ;;  %v3463_v26 = vpop.f32.mrb[71].mxu0  ;;  %3621 = vmatmul.mubr.f32.gmra.mrb[176].mxu0 %v1312_v20 }
 0x318   : > { %3623 = vmatprep.mubr.msk.f32.mxu0 %vm4271_vm0, %v4272_v1 }
 0x319   : > { %v3848_v6 = vpop.eup %3847  ;;  %v1313_v28 = vmax.f32 %v1228_v25, 0.0  ;;  %v2667_v12 = vmul.f32 -1.442695, %v1424_v55 }
 0x31a   : > { %v1911_v4 = vadd.f32 1.0, %v3848_v6  ;;  %v1232_v29 = vpop.f32.mrb[178].mxu1  ;;  %v1428_v18 = vpop.f32.mrb[72].mxu0 }
 0x31b   : > { %3853 = vpow2.f32 %v2667_v12  ;;  %v1233_v34 = vadd.f32 %v5025_v19, %v1232_v29  ;;  %v1429_v27 = vadd.f32 %v5226_v52, %v1428_v18  ;;  %v3407_v35 = vpop.f32.mrb[179].mxu1  ;;  %v3466_v13 = vpop.f32.mrb[73].mxu0  ;;  %3624 = vmatmul.mubr.f32.gmra.mrb[178].mxu0 %v1313_v28 }
 0x31c   : > { %3855 = vrcp.f32 %v1911_v4  ;;  %3626 = vmatprep.mubr.msk.f32.mxu0 %vm4271_vm0, %v4272_v1 }
 0x31d   : > { %v3850_v33 = vpop.eup %3849  ;;  %v1314_v36 = vmax.f32 %v1233_v34, 0.0  ;;  %v2668_v39 = vmul.f32 -1.442695, %v1429_v27 }
 0x31e   : > { %v1912_v37 = vadd.f32 1.0, %v3850_v33  ;;  %v1237_v45 = vpop.f32.mrb[180].mxu1  ;;  %v1433_v22 = vpop.f32.mrb[74].mxu0 }
 0x31f   : > { %3857 = vpow2.f32 %v2668_v39  ;;  %v1238_v41 = vadd.f32 %v5025_v19, %v1237_v45  ;;  %v1434_v54 = vadd.f32 %v5226_v52, %v1433_v22  ;;  %v3410_v43 = vpop.f32.mrb[181].mxu1  ;;  %v3469_v62 = vpop.f32.mrb[75].mxu0  ;;  %3627 = vmatmul.mubr.f32.gmra.mrb[180].mxu0 %v1314_v36 }
 0x320   : > { %3859 = vrcp.f32 %v1912_v37  ;;  %3629 = vmatprep.mubr.msk.f32.mxu0 %vm4271_vm0, %v4272_v1 }
 0x321   : > { %v3852_v44 = vpop.eup %3851  ;;  %v1315_v32 = vmax.f32 %v1238_v41, 0.0  ;;  %v2669_v7 = vmul.f32 -1.442695, %v1434_v54 }
 0x322   : > { %v1913_v47 = vadd.f32 1.0, %v3852_v44  ;;  %v1242_v14 = vpop.f32.mrb[182].mxu1  ;;  %v1438_v49 = vpop.f32.mrb[76].mxu0 }
 0x323   : > { %3861 = vpow2.f32 %v2669_v7  ;;  %v1243_v24 = vadd.f32 %v5025_v19, %v1242_v14  ;;  %v1439_v42 = vadd.f32 %v5226_v52, %v1438_v49  ;;  %v3413_v50 = vpop.f32.mrb[183].mxu1  ;;  %v3472_v31 = vpop.f32.mrb[77].mxu0  ;;  %3630 = vmatmul.mubr.f32.gmra.mrb[182].mxu0 %v1315_v32 }
 0x324   : > { %3863 = vrcp.f32 %v1913_v47  ;;  %3632 = vmatprep.mubr.msk.f32.mxu0 %vm4271_vm0, %v4272_v1 }
 0x325   : > { %v3854_v38 = vpop.eup %3853  ;;  %v1316_v53 = vmax.f32 %v1243_v24, 0.0  ;;  %v2670_v51 = vmul.f32 -1.442695, %v1439_v42 }
 0x326   : > { %v3856_v46 = vpop.eup %3855  ;;  %v1914_v58 = vadd.f32 1.0, %v3854_v38  ;;  %v1247_v56 = vpop.f32.mrb[184].mxu1 }
 0x327   : > { %v1443_v59 = vpop.f32.mrb[78].mxu0  ;;  %2101 = vst.msk [vmem:[%s5259_s16] sm:$0xff] %vm2100_vm1, %v3856_v46  ;;  %3865 = vpow2.f32 %v2670_v51  ;;  %v1248_v3 = vadd.f32 %v5025_v19, %v1247_v56  ;;  %v3416_v57 = vpop.f32.mrb[185].mxu1  ;;  %3633 = vmatmul.mubr.f32.gmra.mrb[184].mxu0 %v1316_v53 }
 0x328   : > { %v1444_v60 = vadd.f32 %v5226_v52, %v1443_v59  ;;  %v3475_v63 = vpop.f32.mrb[79].mxu0  ;;  %3867 = vrcp.f32 %v1914_v58  ;;  %3635 = vmatprep.mubr.msk.f32.mxu0 %vm4271_vm0, %v4272_v1 }
 0x329   : > { %v3858_v11 = vpop.eup %3857  ;;  %v1317_v2 = vmax.f32 %v1248_v3, 0.0 }
 0x32a   : > { %v2671_v5 = vmul.f32 -1.442695, %v1444_v60  ;;  %v3860_v30 = vpop.eup %3859  ;;  %v1915_v8 = vadd.f32 1.0, %v3858_v11  ;;  %v1252_v9 = vpop.f32.mrb[186].mxu1 }
 0x32b   : > { %v1448_v10 = vpop.f32.mrb[80].mxu0  ;;  %2102 = vst.msk [vmem:[%s5259_s16 + $0x8] sm:$0xff] %vm2100_vm1, %v3860_v30  ;;  %v1253_v40 = vadd.f32 %v5025_v19, %v1252_v9  ;;  %v3419_v15 = vpop.f32.mrb[187].mxu1  ;;  %3636 = vmatmul.mubr.f32.gmra.mrb[186].mxu0 %v1317_v2 }
 0x32c   : > { %3869 = vpow2.f32 %v2671_v5  ;;  %v1449_v0 = vadd.f32 %v5226_v52, %v1448_v10  ;;  %v3478_v16 = vpop.f32.mrb[81].mxu0  ;;  %3638 = vmatprep.mubr.msk.f32.mxu0 %vm4271_vm0, %v4272_v1 }
 0x32d   : > { %3871 = vrcp.f32 %v1915_v8  ;;  %v3862_v17 = vpop.eup %3861  ;;  %v1318_v20 = vmax.f32 %v1253_v40, 0.0 }
 0x32e   : > { %v2672_v48 = vmul.f32 -1.442695, %v1449_v0  ;;  %v3864_v21 = vpop.eup %3863  ;;  %v1916_v23 = vadd.f32 1.0, %v3862_v17  ;;  %v1453_v25 = vpop.f32.mrb[82].mxu0 }
 0x32f   : > { %2103 = vst.msk [vmem:[%s5259_s16 + $0x10] sm:$0xff] %vm2100_vm1, %v3864_v21  ;;  %v1454_v19 = vadd.f32 %v5226_v52, %v1453_v25  ;;  %v3481_v55 = vpop.f32.mrb[83].mxu0  ;;  %3639 = vmatmul.mubr.f32.gmra.mrb[188].mxu0 %v1318_v20 }
 0x330   : > { %3873 = vpow2.f32 %v2672_v48 }
 0x331   : > { %3875 = vrcp.f32 %v1916_v23  ;;  %v3866_v61 = vpop.eup %3865  ;;  %v2673_v26 = vmul.f32 -1.442695, %v1454_v19 }
 0x332   : > { %v3868_v6 = vpop.eup %3867  ;;  %v1917_v1 = vadd.f32 1.0, %v3866_v61  ;;  %v1458_v28 = vpop.f32.mrb[84].mxu0 }
 0x333   : > { %2104 = vst.msk [vmem:[%s5259_s16 + $0x18] sm:$0xff] %vm2100_vm1, %v3868_v6  ;;  %3877 = vpow2.f32 %v2673_v26  ;;  %v1459_v12 = vadd.f32 %v5226_v52, %v1458_v28  ;;  %v3484_v4 = vpop.f32.mrb[85].mxu0 }
 0x334   : > { %3879 = vrcp.f32 %v1917_v1 }
 0x335   : > { %v2674_v18 = vmul.f32 -1.442695, %v1459_v12 }
 0x336   : > { %v3870_v29 = vpop.eup %3869  ;;  %v1463_v35 = vpop.f32.mrb[86].mxu0 }
 0x337   : > { %v3872_v34 = vpop.eup %3871  ;;  %v1918_v27 = vadd.f32 1.0, %v3870_v29  ;;  %3881 = vpow2.f32 %v2674_v18  ;;  %v1464_v13 = vadd.f32 %v5226_v52, %v1463_v35  ;;  %v3487_v33 = vpop.f32.mrb[87].mxu0 }
 0x338   : > { %2105 = vst.msk [vmem:[%s5259_s16 + $0x20] sm:$0xff] %vm2100_vm1, %v3872_v34 }
 0x339   : > { %3883 = vrcp.f32 %v1918_v27  ;;  %v2675_v39 = vmul.f32 -1.442695, %v1464_v13 }
 0x33a   : > { %v3874_v36 = vpop.eup %3873  ;;  %v1468_v22 = vpop.f32.mrb[88].mxu0 }
 0x33b   : > { %v3876_v37 = vpop.eup %3875  ;;  %v1919_v45 = vadd.f32 1.0, %v3874_v36  ;;  %3885 = vpow2.f32 %v2675_v39  ;;  %v1469_v41 = vadd.f32 %v5226_v52, %v1468_v22  ;;  %v3490_v54 = vpop.f32.mrb[89].mxu0 }
 0x33c   : > { %2106 = vst.msk [vmem:[%s5259_s16 + $0x28] sm:$0xff] %vm2100_vm1, %v3876_v37 }
 0x33d   : > { %3887 = vrcp.f32 %v1919_v45  ;;  %v3878_v43 = vpop.eup %3877  ;;  %v2676_v62 = vmul.f32 -1.442695, %v1469_v41 }
 0x33e   : > { %v3880_v44 = vpop.eup %3879  ;;  %v1920_v32 = vadd.f32 1.0, %v3878_v43  ;;  %v1473_v7 = vpop.f32.mrb[90].mxu0 }
 0x33f   : > { %2107 = vst.msk [vmem:[%s5259_s16 + $0x30] sm:$0xff] %vm2100_vm1, %v3880_v44  ;;  %3889 = vpow2.f32 %v2676_v62  ;;  %v1474_v47 = vadd.f32 %v5226_v52, %v1473_v7  ;;  %v3493_v14 = vpop.f32.mrb[91].mxu0 }
 0x340   : > { %3891 = vrcp.f32 %v1920_v32 }
 0x341   : > { %v3882_v49 = vpop.eup %3881  ;;  %v2677_v24 = vmul.f32 -1.442695, %v1474_v47 }
 0x342   : > { %v1921_v50 = vadd.f32 1.0, %v3882_v49  ;;  %v1478_v31 = vpop.f32.mrb[92].mxu0 }
 0x343   : > { %v3884_v42 = vpop.eup %3883  ;;  %3893 = vpow2.f32 %v2677_v24  ;;  %v1479_v38 = vadd.f32 %v5226_v52, %v1478_v31  ;;  %v3496_v53 = vpop.f32.mrb[93].mxu0 }
 0x344   : > { %2108 = vst.msk [vmem:[%s5259_s16 + $0x38] sm:$0xff] %vm2100_vm1, %v3884_v42  ;;  %3895 = vrcp.f32 %v1921_v50 }
 0x345   : > { %v3886_v51 = vpop.eup %3885  ;;  %v2678_v46 = vmul.f32 -1.442695, %v1479_v38 }
 0x346   : > { %v1922_v56 = vadd.f32 1.0, %v3886_v51  ;;  %v1483_v59 = vpop.f32.mrb[94].mxu0 }
 0x347   : > { %v3888_v58 = vpop.eup %3887  ;;  %3897 = vpow2.f32 %v2678_v46  ;;  %v1484_v3 = vadd.f32 %v5226_v52, %v1483_v59  ;;  %v3499_v60 = vpop.f32.mrb[95].mxu0 }
 0x348   : > { %2109 = vst.msk [vmem:[%s5259_s16 + $0x40] sm:$0xff] %vm2100_vm1, %v3888_v58  ;;  %3899 = vrcp.f32 %v1922_v56 }
 0x349   : > { %v3890_v57 = vpop.eup %3889  ;;  %v2679_v63 = vmul.f32 -1.442695, %v1484_v3 }
 0x34a   : > { %v3892_v11 = vpop.eup %3891  ;;  %v1923_v2 = vadd.f32 1.0, %v3890_v57  ;;  %v1488_v5 = vpop.f32.mrb[96].mxu0 }
 0x34b   : > { %2110 = vst.msk [vmem:[%s5259_s16 + $0x48] sm:$0xff] %vm2100_vm1, %v3892_v11  ;;  %3901 = vpow2.f32 %v2679_v63  ;;  %v1489_v30 = vadd.f32 %v5226_v52, %v1488_v5  ;;  %v3502_v8 = vpop.f32.mrb[97].mxu0 }
 0x34c   : > { %3903 = vrcp.f32 %v1923_v2 }
 0x34d   : > { %v3894_v9 = vpop.eup %3893  ;;  %v2680_v10 = vmul.f32 -1.442695, %v1489_v30 }
 0x34e   : > { %v3896_v40 = vpop.eup %3895  ;;  %v1924_v0 = vadd.f32 1.0, %v3894_v9  ;;  %v1493_v15 = vpop.f32.mrb[98].mxu0 }
 0x34f   : > { %2111 = vst.msk [vmem:[%s5259_s16 + $0x50] sm:$0xff] %vm2100_vm1, %v3896_v40  ;;  %3905 = vpow2.f32 %v2680_v10  ;;  %v1494_v16 = vadd.f32 %v5226_v52, %v1493_v15  ;;  %v3505_v17 = vpop.f32.mrb[99].mxu0 }
 0x350   : > { %3907 = vrcp.f32 %v1924_v0 }
 0x351   : > { %v3898_v20 = vpop.eup %3897  ;;  %v2681_v48 = vmul.f32 -1.442695, %v1494_v16 }
 0x352   : > { %v3900_v21 = vpop.eup %3899  ;;  %v1925_v23 = vadd.f32 1.0, %v3898_v20  ;;  %v1498_v25 = vpop.f32.mrb[100].mxu0 }
 0x353   : > { %2112 = vst.msk [vmem:[%s5259_s16 + $0x58] sm:$0xff] %vm2100_vm1, %v3900_v21  ;;  %3909 = vpow2.f32 %v2681_v48  ;;  %v1499_v19 = vadd.f32 %v5226_v52, %v1498_v25  ;;  %v3508_v55 = vpop.f32.mrb[101].mxu0 }
 0x354   : > { %3911 = vrcp.f32 %v1925_v23 }
 0x355   : > { %v3902_v61 = vpop.eup %3901  ;;  %v2682_v26 = vmul.f32 -1.442695, %v1499_v19 }
 0x356   : > { %v3904_v6 = vpop.eup %3903  ;;  %v1926_v1 = vadd.f32 1.0, %v3902_v61  ;;  %v1503_v28 = vpop.f32.mrb[102].mxu0 }
 0x357   : > { %2113 = vst.msk [vmem:[%s5259_s16 + $0x60] sm:$0xff] %vm2100_vm1, %v3904_v6  ;;  %3913 = vpow2.f32 %v2682_v26  ;;  %v1504_v12 = vadd.f32 %v5226_v52, %v1503_v28  ;;  %v3511_v4 = vpop.f32.mrb[103].mxu0 }
 0x358   : > { %3915 = vrcp.f32 %v1926_v1 }
 0x359   : > { %v3906_v29 = vpop.eup %3905  ;;  %v2683_v18 = vmul.f32 -1.442695, %v1504_v12 }
 0x35a   : > { %v3908_v34 = vpop.eup %3907  ;;  %v1927_v27 = vadd.f32 1.0, %v3906_v29  ;;  %v1508_v35 = vpop.f32.mrb[104].mxu0 }
 0x35b   : > { %2114 = vst.msk [vmem:[%s5259_s16 + $0x68] sm:$0xff] %vm2100_vm1, %v3908_v34  ;;  %3917 = vpow2.f32 %v2683_v18  ;;  %v1509_v13 = vadd.f32 %v5226_v52, %v1508_v35  ;;  %v3514_v33 = vpop.f32.mrb[105].mxu0 }
 0x35c   : > { %3919 = vrcp.f32 %v1927_v27 }
 0x35d   : > { %v3910_v36 = vpop.eup %3909  ;;  %v2684_v39 = vmul.f32 -1.442695, %v1509_v13 }
 0x35e   : > { %v3912_v37 = vpop.eup %3911  ;;  %v1928_v45 = vadd.f32 1.0, %v3910_v36  ;;  %v1513_v22 = vpop.f32.mrb[106].mxu0 }
 0x35f   : > { %2115 = vst.msk [vmem:[%s5259_s16 + $0x70] sm:$0xff] %vm2100_vm1, %v3912_v37  ;;  %3921 = vpow2.f32 %v2684_v39  ;;  %v1514_v41 = vadd.f32 %v5226_v52, %v1513_v22  ;;  %v3517_v54 = vpop.f32.mrb[107].mxu0 }
 0x360   : > { %3923 = vrcp.f32 %v1928_v45 }
 0x361   : > { %v3914_v43 = vpop.eup %3913  ;;  %v2685_v62 = vmul.f32 -1.442695, %v1514_v41 }
 0x362   : > { %v3916_v44 = vpop.eup %3915  ;;  %v1929_v32 = vadd.f32 1.0, %v3914_v43  ;;  %v1518_v7 = vpop.f32.mrb[108].mxu0 }
 0x363   : > { %2116 = vst.msk [vmem:[%s5259_s16 + $0x78] sm:$0xff] %vm2100_vm1, %v3916_v44  ;;  %3925 = vpow2.f32 %v2685_v62  ;;  %v1519_v47 = vadd.f32 %v5226_v52, %v1518_v7  ;;  %v3520_v14 = vpop.f32.mrb[109].mxu0 }
 0x364   : > { %3927 = vrcp.f32 %v1929_v32 }
 0x365   : > { %v3918_v49 = vpop.eup %3917  ;;  %v2686_v24 = vmul.f32 -1.442695, %v1519_v47 }
 0x366   : > { %v3920_v42 = vpop.eup %3919  ;;  %v1930_v50 = vadd.f32 1.0, %v3918_v49  ;;  %v1523_v31 = vpop.f32.mrb[110].mxu0 }
 0x367   : > { %2117 = vst.msk [vmem:[%s5259_s16 + $0x80] sm:$0xff] %vm2100_vm1, %v3920_v42  ;;  %3929 = vpow2.f32 %v2686_v24  ;;  %v1524_v38 = vadd.f32 %v5226_v52, %v1523_v31  ;;  %v3523_v53 = vpop.f32.mrb[111].mxu0 }
 0x368   : > { %3931 = vrcp.f32 %v1930_v50 }
 0x369   : > { %v3922_v51 = vpop.eup %3921  ;;  %v2687_v46 = vmul.f32 -1.442695, %v1524_v38 }
 0x36a   : > { %v3924_v58 = vpop.eup %3923  ;;  %v1931_v56 = vadd.f32 1.0, %v3922_v51  ;;  %v1528_v59 = vpop.f32.mrb[112].mxu0 }
 0x36b   : > { %2118 = vst.msk [vmem:[%s5259_s16 + $0x88] sm:$0xff] %vm2100_vm1, %v3924_v58  ;;  %3933 = vpow2.f32 %v2687_v46  ;;  %v1529_v3 = vadd.f32 %v5226_v52, %v1528_v59  ;;  %v3526_v60 = vpop.f32.mrb[113].mxu0 }
 0x36c   : > { %3935 = vrcp.f32 %v1931_v56 }
 0x36d   : > { %v3926_v57 = vpop.eup %3925  ;;  %v2688_v63 = vmul.f32 -1.442695, %v1529_v3 }
 0x36e   : > { %v3928_v11 = vpop.eup %3927  ;;  %v1932_v2 = vadd.f32 1.0, %v3926_v57  ;;  %v1533_v5 = vpop.f32.mrb[114].mxu0 }
 0x36f   : > { %2119 = vst.msk [vmem:[%s5259_s16 + $0x90] sm:$0xff] %vm2100_vm1, %v3928_v11  ;;  %3937 = vpow2.f32 %v2688_v63  ;;  %v1534_v30 = vadd.f32 %v5226_v52, %v1533_v5  ;;  %v3529_v8 = vpop.f32.mrb[115].mxu0 }
 0x370   : > { %3939 = vrcp.f32 %v1932_v2 }
 0x371   : > { %v3930_v9 = vpop.eup %3929  ;;  %v2689_v10 = vmul.f32 -1.442695, %v1534_v30 }
 0x372   : > { %v3932_v40 = vpop.eup %3931  ;;  %v1933_v0 = vadd.f32 1.0, %v3930_v9  ;;  %v1538_v15 = vpop.f32.mrb[116].mxu0 }
 0x373   : > { %2120 = vst.msk [vmem:[%s5259_s16 + $0x98] sm:$0xff] %vm2100_vm1, %v3932_v40  ;;  %3941 = vpow2.f32 %v2689_v10  ;;  %v1539_v16 = vadd.f32 %v5226_v52, %v1538_v15  ;;  %v3532_v17 = vpop.f32.mrb[117].mxu0 }
 0x374   : > { %3943 = vrcp.f32 %v1933_v0 }
 0x375   : > { %v3934_v20 = vpop.eup %3933  ;;  %v2690_v48 = vmul.f32 -1.442695, %v1539_v16 }
 0x376   : > { %v3936_v21 = vpop.eup %3935  ;;  %v1934_v23 = vadd.f32 1.0, %v3934_v20  ;;  %v1543_v25 = vpop.f32.mrb[118].mxu0 }
 0x377   : > { %2121 = vst.msk [vmem:[%s5259_s16 + $0xa0] sm:$0xff] %vm2100_vm1, %v3936_v21  ;;  %3945 = vpow2.f32 %v2690_v48  ;;  %v1544_v19 = vadd.f32 %v5226_v52, %v1543_v25  ;;  %v3535_v55 = vpop.f32.mrb[119].mxu0 }
 0x378   : > { %3947 = vrcp.f32 %v1934_v23 }
 0x379   : > { %v3938_v61 = vpop.eup %3937  ;;  %v2691_v26 = vmul.f32 -1.442695, %v1544_v19 }
 0x37a   : > { %v3940_v6 = vpop.eup %3939  ;;  %v1935_v1 = vadd.f32 1.0, %v3938_v61  ;;  %v1548_v28 = vpop.f32.mrb[120].mxu0 }
 0x37b   : > { %2122 = vst.msk [vmem:[%s5259_s16 + $0xa8] sm:$0xff] %vm2100_vm1, %v3940_v6  ;;  %3949 = vpow2.f32 %v2691_v26  ;;  %v1549_v12 = vadd.f32 %v5226_v52, %v1548_v28  ;;  %v3538_v4 = vpop.f32.mrb[121].mxu0 }
 0x37c   : > { %3951 = vrcp.f32 %v1935_v1 }
 0x37d   : > { %v3942_v29 = vpop.eup %3941  ;;  %v2692_v18 = vmul.f32 -1.442695, %v1549_v12 }
 0x37e   : > { %v3944_v34 = vpop.eup %3943  ;;  %v1936_v27 = vadd.f32 1.0, %v3942_v29  ;;  %v1553_v35 = vpop.f32.mrb[122].mxu0 }
 0x37f   : > { %2123 = vst.msk [vmem:[%s5259_s16 + $0xb0] sm:$0xff] %vm2100_vm1, %v3944_v34  ;;  %3953 = vpow2.f32 %v2692_v18  ;;  %v1554_v13 = vadd.f32 %v5226_v52, %v1553_v35  ;;  %v3541_v33 = vpop.f32.mrb[123].mxu0 }
 0x380   : > { %3955 = vrcp.f32 %v1936_v27 }
 0x381   : > { %v3946_v36 = vpop.eup %3945  ;;  %v2693_v39 = vmul.f32 -1.442695, %v1554_v13 }
 0x382   : > { %v3948_v37 = vpop.eup %3947  ;;  %v1937_v45 = vadd.f32 1.0, %v3946_v36  ;;  %v1558_v22 = vpop.f32.mrb[124].mxu0 }
 0x383   : > { %2124 = vst.msk [vmem:[%s5259_s16 + $0xb8] sm:$0xff] %vm2100_vm1, %v3948_v37  ;;  %3957 = vpow2.f32 %v2693_v39  ;;  %v1559_v41 = vadd.f32 %v5226_v52, %v1558_v22  ;;  %v3544_v54 = vpop.f32.mrb[125].mxu0 }
 0x384   : > { %3959 = vrcp.f32 %v1937_v45 }
 0x385   : > { %v3950_v43 = vpop.eup %3949  ;;  %v2694_v62 = vmul.f32 -1.442695, %v1559_v41 }
 0x386   : > { %v3952_v44 = vpop.eup %3951  ;;  %v1938_v32 = vadd.f32 1.0, %v3950_v43  ;;  %v1563_v7 = vpop.f32.mrb[126].mxu0 }
 0x387   : > { %2125 = vst.msk [vmem:[%s5259_s16 + $0xc0] sm:$0xff] %vm2100_vm1, %v3952_v44  ;;  %3961 = vpow2.f32 %v2694_v62  ;;  %v1564_v47 = vadd.f32 %v5226_v52, %v1563_v7  ;;  %v3547_v14 = vpop.f32.mrb[127].mxu0 }
 0x388   : > { %3963 = vrcp.f32 %v1938_v32 }
 0x389   : > { %v3954_v49 = vpop.eup %3953  ;;  %v2695_v24 = vmul.f32 -1.442695, %v1564_v47 }
 0x38a   : > { %v3956_v42 = vpop.eup %3955  ;;  %v1939_v50 = vadd.f32 1.0, %v3954_v49  ;;  %v1568_v31 = vpop.f32.mrb[128].mxu0 }
 0x38b   : > { %2126 = vst.msk [vmem:[%s5259_s16 + $0xc8] sm:$0xff] %vm2100_vm1, %v3956_v42  ;;  %3965 = vpow2.f32 %v2695_v24  ;;  %v1569_v38 = vadd.f32 %v5226_v52, %v1568_v31  ;;  %v3550_v53 = vpop.f32.mrb[129].mxu0 }
 0x38c   : > { %3967 = vrcp.f32 %v1939_v50 }
 0x38d   : > { %v3958_v51 = vpop.eup %3957  ;;  %v2696_v46 = vmul.f32 -1.442695, %v1569_v38 }
 0x38e   : > { %v3960_v58 = vpop.eup %3959  ;;  %v1940_v56 = vadd.f32 1.0, %v3958_v51  ;;  %v1573_v59 = vpop.f32.mrb[130].mxu0 }
 0x38f   : > { %2127 = vst.msk [vmem:[%s5259_s16 + $0xd0] sm:$0xff] %vm2100_vm1, %v3960_v58  ;;  %3969 = vpow2.f32 %v2696_v46  ;;  %v1574_v3 = vadd.f32 %v5226_v52, %v1573_v59  ;;  %v3553_v60 = vpop.f32.mrb[131].mxu0 }
 0x390   : > { %3971 = vrcp.f32 %v1940_v56 }
 0x391   : > { %v3962_v57 = vpop.eup %3961  ;;  %v2697_v63 = vmul.f32 -1.442695, %v1574_v3 }
 0x392   : > { %v3964_v11 = vpop.eup %3963  ;;  %v1941_v2 = vadd.f32 1.0, %v3962_v57  ;;  %v1578_v5 = vpop.f32.mrb[132].mxu0 }
 0x393   : > { %2128 = vst.msk [vmem:[%s5259_s16 + $0xd8] sm:$0xff] %vm2100_vm1, %v3964_v11  ;;  %3973 = vpow2.f32 %v2697_v63  ;;  %v1579_v30 = vadd.f32 %v5226_v52, %v1578_v5  ;;  %v3556_v8 = vpop.f32.mrb[133].mxu0 }
 0x394   : > { %3975 = vrcp.f32 %v1941_v2 }
 0x395   : > { %v3966_v9 = vpop.eup %3965  ;;  %v2698_v10 = vmul.f32 -1.442695, %v1579_v30 }
 0x396   : > { %v3968_v40 = vpop.eup %3967  ;;  %v1942_v0 = vadd.f32 1.0, %v3966_v9  ;;  %v1583_v15 = vpop.f32.mrb[134].mxu0 }
 0x397   : > { %2129 = vst.msk [vmem:[%s5259_s16 + $0xe0] sm:$0xff] %vm2100_vm1, %v3968_v40  ;;  %3977 = vpow2.f32 %v2698_v10  ;;  %v1584_v16 = vadd.f32 %v5226_v52, %v1583_v15  ;;  %v3559_v17 = vpop.f32.mrb[135].mxu0 }
 0x398   : > { %3979 = vrcp.f32 %v1942_v0 }
 0x399   : > { %v3970_v20 = vpop.eup %3969  ;;  %v2699_v48 = vmul.f32 -1.442695, %v1584_v16 }
 0x39a   : > { %v3972_v21 = vpop.eup %3971  ;;  %v1943_v23 = vadd.f32 1.0, %v3970_v20  ;;  %v1588_v25 = vpop.f32.mrb[136].mxu0 }
 0x39b   : > { %2130 = vst.msk [vmem:[%s5259_s16 + $0xe8] sm:$0xff] %vm2100_vm1, %v3972_v21  ;;  %3981 = vpow2.f32 %v2699_v48  ;;  %v1589_v19 = vadd.f32 %v5226_v52, %v1588_v25  ;;  %v3562_v55 = vpop.f32.mrb[137].mxu0 }
 0x39c   : > { %3983 = vrcp.f32 %v1943_v23 }
 0x39d   : > { %v3974_v61 = vpop.eup %3973  ;;  %v2700_v26 = vmul.f32 -1.442695, %v1589_v19 }
 0x39e   : > { %v3976_v6 = vpop.eup %3975  ;;  %v1944_v1 = vadd.f32 1.0, %v3974_v61  ;;  %v1593_v28 = vpop.f32.mrb[138].mxu0 }
 0x39f   : > { %2131 = vst.msk [vmem:[%s5259_s16 + $0xf0] sm:$0xff] %vm2100_vm1, %v3976_v6  ;;  %3985 = vpow2.f32 %v2700_v26  ;;  %v1594_v12 = vadd.f32 %v5226_v52, %v1593_v28  ;;  %v3565_v4 = vpop.f32.mrb[139].mxu0 }
 0x3a0   : > { %3987 = vrcp.f32 %v1944_v1 }
 0x3a1   : > { %v3978_v29 = vpop.eup %3977  ;;  %v2701_v18 = vmul.f32 -1.442695, %v1594_v12 }
 0x3a2   : > { %v3980_v34 = vpop.eup %3979  ;;  %v1945_v27 = vadd.f32 1.0, %v3978_v29  ;;  %v1598_v35 = vpop.f32.mrb[140].mxu0 }
 0x3a3   : > { %2132 = vst.msk [vmem:[%s5259_s16 + $0xf8] sm:$0xff] %vm2100_vm1, %v3980_v34  ;;  %3989 = vpow2.f32 %v2701_v18  ;;  %v1599_v13 = vadd.f32 %v5226_v52, %v1598_v35  ;;  %v3568_v33 = vpop.f32.mrb[141].mxu0 }
 0x3a4   : > { %3991 = vrcp.f32 %v1945_v27 }
 0x3a5   : > { %v3982_v36 = vpop.eup %3981  ;;  %v2702_v39 = vmul.f32 -1.442695, %v1599_v13 }
 0x3a6   : > { %v3984_v37 = vpop.eup %3983  ;;  %v1946_v45 = vadd.f32 1.0, %v3982_v36  ;;  %v1603_v22 = vpop.f32.mrb[142].mxu0 }
 0x3a7   : > { %2133 = vst.msk [vmem:[%s5259_s16 + $0x100] sm:$0xff] %vm2100_vm1, %v3984_v37  ;;  %3993 = vpow2.f32 %v2702_v39  ;;  %v1604_v41 = vadd.f32 %v5226_v52, %v1603_v22  ;;  %v3571_v54 = vpop.f32.mrb[143].mxu0 }
 0x3a8   : > { %3995 = vrcp.f32 %v1946_v45 }
 0x3a9   : > { %v3986_v43 = vpop.eup %3985  ;;  %v2703_v62 = vmul.f32 -1.442695, %v1604_v41  ;;  %v5395_v41 = vld [vmem:[%s5662_s6] ss:$0 sm:$0xff] }
 0x3aa   : > { %v3988_v44 = vpop.eup %3987  ;;  %v1947_v32 = vadd.f32 1.0, %v3986_v43  ;;  %v1608_v7 = vpop.f32.mrb[144].mxu0 }
 0x3ab   : > { %2134 = vst.msk [vmem:[%s5259_s16 + $0x108] sm:$0xff] %vm2100_vm1, %v3988_v44  ;;  %3997 = vpow2.f32 %v2703_v62  ;;  %v1609_v47 = vadd.f32 %v5226_v52, %v1608_v7  ;;  %v3574_v14 = vpop.f32.mrb[145].mxu0 }
 0x3ac   : > { %3999 = vrcp.f32 %v1947_v32 }
 0x3ad   : > { %v3990_v49 = vpop.eup %3989  ;;  %v2704_v24 = vmul.f32 -1.442695, %v1609_v47 }
 0x3ae   : > { %v3992_v42 = vpop.eup %3991  ;;  %v1948_v50 = vadd.f32 1.0, %v3990_v49  ;;  %v1613_v31 = vpop.f32.mrb[146].mxu0 }
 0x3af   : > { %2135 = vst.msk [vmem:[%s5259_s16 + $0x110] sm:$0xff] %vm2100_vm1, %v3992_v42  ;;  %4001 = vpow2.f32 %v2704_v24  ;;  %v1614_v38 = vadd.f32 %v5226_v52, %v1613_v31  ;;  %v3577_v53 = vpop.f32.mrb[147].mxu0 }
 0x3b0   : > { %4003 = vrcp.f32 %v1948_v50 }
 0x3b1   : > { %v3994_v51 = vpop.eup %3993  ;;  %v2705_v46 = vmul.f32 -1.442695, %v1614_v38 }
 0x3b2   : > { %v3996_v58 = vpop.eup %3995  ;;  %v1949_v56 = vadd.f32 1.0, %v3994_v51  ;;  %v1618_v59 = vpop.f32.mrb[148].mxu0 }
 0x3b3   : > { %2136 = vst.msk [vmem:[%s5259_s16 + $0x118] sm:$0xff] %vm2100_vm1, %v3996_v58  ;;  %4005 = vpow2.f32 %v2705_v46  ;;  %v1619_v3 = vadd.f32 %v5226_v52, %v1618_v59  ;;  %v3580_v60 = vpop.f32.mrb[149].mxu0 }
 0x3b4   : > { %4007 = vrcp.f32 %v1949_v56 }
 0x3b5   : > { %v3998_v57 = vpop.eup %3997  ;;  %v2706_v63 = vmul.f32 -1.442695, %v1619_v3 }
 0x3b6   : > { %v4000_v11 = vpop.eup %3999  ;;  %v1950_v2 = vadd.f32 1.0, %v3998_v57  ;;  %v1623_v5 = vpop.f32.mrb[150].mxu0 }
 0x3b7   : > { %2137 = vst.msk [vmem:[%s5259_s16 + $0x120] sm:$0xff] %vm2100_vm1, %v4000_v11  ;;  %4009 = vpow2.f32 %v2706_v63  ;;  %v1624_v30 = vadd.f32 %v5226_v52, %v1623_v5  ;;  %v3583_v8 = vpop.f32.mrb[151].mxu0 }
 0x3b8   : > { %4011 = vrcp.f32 %v1950_v2 }
 0x3b9   : > { %v4002_v9 = vpop.eup %4001  ;;  %v2707_v10 = vmul.f32 -1.442695, %v1624_v30 }
 0x3ba   : > { %v4004_v40 = vpop.eup %4003  ;;  %v1951_v0 = vadd.f32 1.0, %v4002_v9  ;;  %v1628_v15 = vpop.f32.mrb[152].mxu0 }
 0x3bb   : > { %2138 = vst.msk [vmem:[%s5259_s16 + $0x128] sm:$0xff] %vm2100_vm1, %v4004_v40  ;;  %4013 = vpow2.f32 %v2707_v10  ;;  %v1629_v16 = vadd.f32 %v5226_v52, %v1628_v15  ;;  %v3586_v17 = vpop.f32.mrb[153].mxu0 }
 0x3bc   : > { %4015 = vrcp.f32 %v1951_v0 }
 0x3bd   : > { %v4006_v20 = vpop.eup %4005  ;;  %v2708_v48 = vmul.f32 -1.442695, %v1629_v16 }
 0x3be   : > { %v4008_v21 = vpop.eup %4007  ;;  %v1952_v23 = vadd.f32 1.0, %v4006_v20  ;;  %v1633_v25 = vpop.f32.mrb[154].mxu0 }
 0x3bf   : > { %2139 = vst.msk [vmem:[%s5259_s16 + $0x130] sm:$0xff] %vm2100_vm1, %v4008_v21  ;;  %4017 = vpow2.f32 %v2708_v48  ;;  %v1634_v19 = vadd.f32 %v5226_v52, %v1633_v25  ;;  %v3589_v55 = vpop.f32.mrb[155].mxu0 }
 0x3c0   : > { %4019 = vrcp.f32 %v1952_v23 }
 0x3c1   : > { %v4010_v61 = vpop.eup %4009  ;;  %v2709_v26 = vmul.f32 -1.442695, %v1634_v19 }
 0x3c2   : > { %v4012_v6 = vpop.eup %4011  ;;  %v1953_v1 = vadd.f32 1.0, %v4010_v61  ;;  %v1638_v28 = vpop.f32.mrb[156].mxu0 }
 0x3c3   : > { %2140 = vst.msk [vmem:[%s5259_s16 + $0x138] sm:$0xff] %vm2100_vm1, %v4012_v6  ;;  %4021 = vpow2.f32 %v2709_v26  ;;  %v1639_v12 = vadd.f32 %v5226_v52, %v1638_v28  ;;  %v3592_v4 = vpop.f32.mrb[157].mxu0 }
 0x3c4   : > { %4023 = vrcp.f32 %v1953_v1 }
 0x3c5   : > { %v4014_v29 = vpop.eup %4013  ;;  %v2710_v18 = vmul.f32 -1.442695, %v1639_v12 }
 0x3c6   : > { %v4016_v34 = vpop.eup %4015  ;;  %v1954_v27 = vadd.f32 1.0, %v4014_v29  ;;  %v1643_v35 = vpop.f32.mrb[158].mxu0 }
 0x3c7   : > { %2141 = vst.msk [vmem:[%s5259_s16 + $0x140] sm:$0xff] %vm2100_vm1, %v4016_v34  ;;  %4025 = vpow2.f32 %v2710_v18  ;;  %v1644_v13 = vadd.f32 %v5226_v52, %v1643_v35  ;;  %v3595_v33 = vpop.f32.mrb[159].mxu0 }
 0x3c8   : > { %4027 = vrcp.f32 %v1954_v27 }
 0x3c9   : > { %v4018_v36 = vpop.eup %4017  ;;  %v2711_v39 = vmul.f32 -1.442695, %v1644_v13 }
 0x3ca   : > { %v4020_v37 = vpop.eup %4019  ;;  %v1955_v45 = vadd.f32 1.0, %v4018_v36  ;;  %v1648_v22 = vpop.f32.mrb[160].mxu0 }
 0x3cb   : > { %2142 = vst.msk [vmem:[%s5259_s16 + $0x148] sm:$0xff] %vm2100_vm1, %v4020_v37  ;;  %4029 = vpow2.f32 %v2711_v39  ;;  %v1649_v54 = vadd.f32 %v5395_v41, %v1648_v22  ;;  %v3598_v43 = vpop.f32.mrb[161].mxu0 }
 0x3cc   : > { %4031 = vrcp.f32 %v1955_v45 }
 0x3cd   : > { %v4022_v52 = vpop.eup %4021  ;;  %v2712_v62 = vmul.f32 -1.442695, %v1649_v54 }
 0x3ce   : > { %v4024_v44 = vpop.eup %4023  ;;  %v1956_v32 = vadd.f32 1.0, %v4022_v52  ;;  %v1653_v7 = vpop.f32.mrb[162].mxu0 }
 0x3cf   : > { %2143 = vst.msk [vmem:[%s5259_s16 + $0x150] sm:$0xff] %vm2100_vm1, %v4024_v44  ;;  %4033 = vpow2.f32 %v2712_v62  ;;  %v1654_v47 = vadd.f32 %v5395_v41, %v1653_v7  ;;  %v3601_v14 = vpop.f32.mrb[163].mxu0 }
 0x3d0   : > { %4035 = vrcp.f32 %v1956_v32 }
 0x3d1   : > { %v4026_v49 = vpop.eup %4025  ;;  %v2713_v24 = vmul.f32 -1.442695, %v1654_v47 }
 0x3d2   : > { %v4028_v42 = vpop.eup %4027  ;;  %v1957_v50 = vadd.f32 1.0, %v4026_v49  ;;  %v1658_v31 = vpop.f32.mrb[164].mxu0 }
 0x3d3   : > { %2144 = vst.msk [vmem:[%s5259_s16 + $0x158] sm:$0xff] %vm2100_vm1, %v4028_v42  ;;  %4037 = vpow2.f32 %v2713_v24  ;;  %v1659_v38 = vadd.f32 %v5395_v41, %v1658_v31  ;;  %v3604_v53 = vpop.f32.mrb[165].mxu0 }
 0x3d4   : > { %4039 = vrcp.f32 %v1957_v50 }
 0x3d5   : > { %v4030_v51 = vpop.eup %4029  ;;  %v2714_v46 = vmul.f32 -1.442695, %v1659_v38 }
 0x3d6   : > { %v4032_v58 = vpop.eup %4031  ;;  %v1958_v56 = vadd.f32 1.0, %v4030_v51  ;;  %v1663_v59 = vpop.f32.mrb[166].mxu0 }
 0x3d7   : > { %2145 = vst.msk [vmem:[%s5259_s16 + $0x160] sm:$0xff] %vm2100_vm1, %v4032_v58  ;;  %4041 = vpow2.f32 %v2714_v46  ;;  %v1664_v3 = vadd.f32 %v5395_v41, %v1663_v59  ;;  %v3607_v60 = vpop.f32.mrb[167].mxu0 }
 0x3d8   : > { %4043 = vrcp.f32 %v1958_v56 }
 0x3d9   : > { %v4034_v57 = vpop.eup %4033  ;;  %v2715_v63 = vmul.f32 -1.442695, %v1664_v3 }
 0x3da   : > { %v4036_v11 = vpop.eup %4035  ;;  %v1959_v2 = vadd.f32 1.0, %v4034_v57  ;;  %v1668_v5 = vpop.f32.mrb[168].mxu0 }
 0x3db   : > { %2146 = vst.msk [vmem:[%s5259_s16 + $0x168] sm:$0xff] %vm2100_vm1, %v4036_v11  ;;  %4045 = vpow2.f32 %v2715_v63  ;;  %v1669_v30 = vadd.f32 %v5395_v41, %v1668_v5  ;;  %v3610_v8 = vpop.f32.mrb[169].mxu0 }
 0x3dc   : > { %4047 = vrcp.f32 %v1959_v2 }
 0x3dd   : > { %v4038_v9 = vpop.eup %4037  ;;  %v2716_v10 = vmul.f32 -1.442695, %v1669_v30 }
 0x3de   : > { %v4040_v40 = vpop.eup %4039  ;;  %v1960_v0 = vadd.f32 1.0, %v4038_v9  ;;  %v1673_v15 = vpop.f32.mrb[170].mxu0 }
 0x3df   : > { %2147 = vst.msk [vmem:[%s5259_s16 + $0x170] sm:$0xff] %vm2100_vm1, %v4040_v40  ;;  %4049 = vpow2.f32 %v2716_v10  ;;  %v1674_v16 = vadd.f32 %v5395_v41, %v1673_v15  ;;  %v3613_v17 = vpop.f32.mrb[171].mxu0 }
 0x3e0   : > { %4051 = vrcp.f32 %v1960_v0 }
 0x3e1   : > { %v4042_v20 = vpop.eup %4041  ;;  %v2717_v48 = vmul.f32 -1.442695, %v1674_v16 }
 0x3e2   : > { %v4044_v21 = vpop.eup %4043  ;;  %v1961_v23 = vadd.f32 1.0, %v4042_v20  ;;  %v1678_v25 = vpop.f32.mrb[172].mxu0 }
 0x3e3   : > { %2148 = vst.msk [vmem:[%s5259_s16 + $0x178] sm:$0xff] %vm2100_vm1, %v4044_v21  ;;  %4053 = vpow2.f32 %v2717_v48  ;;  %v1679_v19 = vadd.f32 %v5395_v41, %v1678_v25  ;;  %v3616_v55 = vpop.f32.mrb[173].mxu0 }
 0x3e4   : > { %4055 = vrcp.f32 %v1961_v23 }
 0x3e5   : > { %v4046_v61 = vpop.eup %4045  ;;  %v2718_v26 = vmul.f32 -1.442695, %v1679_v19 }
 0x3e6   : > { %v4048_v6 = vpop.eup %4047  ;;  %v1962_v1 = vadd.f32 1.0, %v4046_v61  ;;  %v1683_v28 = vpop.f32.mrb[174].mxu0 }
 0x3e7   : > { %2149 = vst.msk [vmem:[%s5259_s16 + $0x180] sm:$0xff] %vm2100_vm1, %v4048_v6  ;;  %4057 = vpow2.f32 %v2718_v26  ;;  %v1684_v12 = vadd.f32 %v5395_v41, %v1683_v28  ;;  %v3619_v4 = vpop.f32.mrb[175].mxu0 }
 0x3e8   : > { %4059 = vrcp.f32 %v1962_v1 }
 0x3e9   : > { %v4050_v29 = vpop.eup %4049  ;;  %v2719_v18 = vmul.f32 -1.442695, %v1684_v12 }
 0x3ea   : > { %v4052_v34 = vpop.eup %4051  ;;  %v1963_v27 = vadd.f32 1.0, %v4050_v29  ;;  %v1688_v35 = vpop.f32.mrb[176].mxu0 }
 0x3eb   : > { %2150 = vst.msk [vmem:[%s5259_s16 + $0x188] sm:$0xff] %vm2100_vm1, %v4052_v34  ;;  %4061 = vpow2.f32 %v2719_v18  ;;  %v1689_v13 = vadd.f32 %v5395_v41, %v1688_v35  ;;  %v3622_v33 = vpop.f32.mrb[177].mxu0 }
 0x3ec   : > { %4063 = vrcp.f32 %v1963_v27 }
 0x3ed   : > { %v4054_v36 = vpop.eup %4053  ;;  %v2720_v39 = vmul.f32 -1.442695, %v1689_v13 }
 0x3ee   : > { %v4056_v37 = vpop.eup %4055  ;;  %v1964_v45 = vadd.f32 1.0, %v4054_v36  ;;  %v1693_v22 = vpop.f32.mrb[178].mxu0 }
 0x3ef   : > { %2151 = vst.msk [vmem:[%s5259_s16 + $0x190] sm:$0xff] %vm2100_vm1, %v4056_v37  ;;  %4065 = vpow2.f32 %v2720_v39  ;;  %v1694_v54 = vadd.f32 %v5395_v41, %v1693_v22  ;;  %v3625_v43 = vpop.f32.mrb[179].mxu0 }
 0x3f0   : > { %4067 = vrcp.f32 %v1964_v45 }
 0x3f1   : > { %v4058_v52 = vpop.eup %4057  ;;  %v2721_v62 = vmul.f32 -1.442695, %v1694_v54 }
 0x3f2   : > { %v4060_v44 = vpop.eup %4059  ;;  %v1965_v32 = vadd.f32 1.0, %v4058_v52  ;;  %v1698_v7 = vpop.f32.mrb[180].mxu0 }
 0x3f3   : > { %2152 = vst.msk [vmem:[%s5259_s16 + $0x198] sm:$0xff] %vm2100_vm1, %v4060_v44  ;;  %4069 = vpow2.f32 %v2721_v62  ;;  %v1699_v47 = vadd.f32 %v5395_v41, %v1698_v7  ;;  %v3628_v14 = vpop.f32.mrb[181].mxu0 }
 0x3f4   : > { %4071 = vrcp.f32 %v1965_v32 }
 0x3f5   : > { %v4062_v49 = vpop.eup %4061  ;;  %v2722_v24 = vmul.f32 -1.442695, %v1699_v47 }
 0x3f6   : > { %v4064_v42 = vpop.eup %4063  ;;  %v1966_v50 = vadd.f32 1.0, %v4062_v49  ;;  %v1703_v31 = vpop.f32.mrb[182].mxu0 }
 0x3f7   : > { %2153 = vst.msk [vmem:[%s5259_s16 + $0x1a0] sm:$0xff] %vm2100_vm1, %v4064_v42  ;;  %4073 = vpow2.f32 %v2722_v24  ;;  %v1704_v38 = vadd.f32 %v5395_v41, %v1703_v31  ;;  %v3631_v53 = vpop.f32.mrb[183].mxu0 }
 0x3f8   : > { %4075 = vrcp.f32 %v1966_v50 }
 0x3f9   : > { %v4066_v51 = vpop.eup %4065  ;;  %v2723_v46 = vmul.f32 -1.442695, %v1704_v38 }
 0x3fa   : > { %v4068_v58 = vpop.eup %4067  ;;  %v1967_v56 = vadd.f32 1.0, %v4066_v51  ;;  %v1708_v59 = vpop.f32.mrb[184].mxu0 }
 0x3fb   : > { %2154 = vst.msk [vmem:[%s5259_s16 + $0x1a8] sm:$0xff] %vm2100_vm1, %v4068_v58  ;;  %4077 = vpow2.f32 %v2723_v46  ;;  %v1709_v3 = vadd.f32 %v5395_v41, %v1708_v59  ;;  %v3634_v60 = vpop.f32.mrb[185].mxu0 }
 0x3fc   : > { %4079 = vrcp.f32 %v1967_v56 }
 0x3fd   : > { %v4070_v57 = vpop.eup %4069  ;;  %v2724_v63 = vmul.f32 -1.442695, %v1709_v3 }
 0x3fe   : > { %v4072_v11 = vpop.eup %4071  ;;  %v1968_v2 = vadd.f32 1.0, %v4070_v57  ;;  %v1713_v5 = vpop.f32.mrb[186].mxu0 }
 0x3ff   : > { %2155 = vst.msk [vmem:[%s5259_s16 + $0x1b0] sm:$0xff] %vm2100_vm1, %v4072_v11  ;;  %4081 = vpow2.f32 %v2724_v63  ;;  %v1714_v30 = vadd.f32 %v5395_v41, %v1713_v5  ;;  %v3637_v8 = vpop.f32.mrb[187].mxu0 }
 0x400   : > { %4083 = vrcp.f32 %v1968_v2 }
 0x401   : > { %v4074_v9 = vpop.eup %4073  ;;  %v2725_v10 = vmul.f32 -1.442695, %v1714_v30 }
 0x402   : > { %v4076_v40 = vpop.eup %4075  ;;  %v1969_v0 = vadd.f32 1.0, %v4074_v9  ;;  %v1718_v15 = vpop.f32.mrb[188].mxu0 }
 0x403   : > { %2156 = vst.msk [vmem:[%s5259_s16 + $0x1b8] sm:$0xff] %vm2100_vm1, %v4076_v40  ;;  %4085 = vpow2.f32 %v2725_v10  ;;  %v1719_v16 = vadd.f32 %v5395_v41, %v1718_v15  ;;  %v3640_v17 = vpop.f32.mrb[189].mxu0 }
 0x404   : > { %4087 = vrcp.f32 %v1969_v0 }
 0x405   : > { %v4078_v20 = vpop.eup %4077  ;;  %v2726_v48 = vmul.f32 -1.442695, %v1719_v16 }
 0x406   : > { %v4080_v21 = vpop.eup %4079  ;;  %v1970_v23 = vadd.f32 1.0, %v4078_v20 }
 0x407   : > { %2157 = vst.msk [vmem:[%s5259_s16 + $0x1c0] sm:$0xff] %vm2100_vm1, %v4080_v21  ;;  %4089 = vpow2.f32 %v2726_v48 }
 0x408   : > { %4091 = vrcp.f32 %v1970_v23 }
 0x409   : > { %v4082_v25 = vpop.eup %4081 }
 0x40a   : > { %v4084_v19 = vpop.eup %4083  ;;  %v1971_v55 = vadd.f32 1.0, %v4082_v25 }
 0x40b   : > { %2158 = vst.msk [vmem:[%s5259_s16 + $0x1c8] sm:$0xff] %vm2100_vm1, %v4084_v19 }
 0x40c   : > { %4093 = vrcp.f32 %v1971_v55 }
 0x40d   : > { %v4086_v41 = vpop.eup %4085 }
 0x40e   : > { %v4088_v61 = vpop.eup %4087  ;;  %v1972_v26 = vadd.f32 1.0, %v4086_v41 }
 0x40f   : > { %2159 = vst.msk [vmem:[%s5259_s16 + $0x1d0] sm:$0xff] %vm2100_vm1, %v4088_v61 }
 0x410   : > { %4095 = vrcp.f32 %v1972_v26 }
 0x411   : > { %v4090_v6 = vpop.eup %4089 }
 0x412   : > { %v4092_v1 = vpop.eup %4091  ;;  %v1973_v28 = vadd.f32 1.0, %v4090_v6 }
 0x413   : > { %2160 = vst.msk [vmem:[%s5259_s16 + $0x1d8] sm:$0xff] %vm2100_vm1, %v4092_v1 }
 0x414   : > { %4097 = vrcp.f32 %v1973_v28 }
 0x416   : > { %v4094_v12 = vpop.eup %4093 }
 0x417   : > { %2161 = vst.msk [vmem:[%s5259_s16 + $0x1e0] sm:$0xff] %vm2100_vm1, %v4094_v12 }
 0x419   : > { %2170 = sbr.rel (!%p5677_p6) target bundleno = 1140 (0x474), region = 60 }
 0x41a   : > { %v4096_v4 = vpop.eup %4095 }
 0x41b   : > { %2162 = vst.msk [vmem:[%s5259_s16 + $0x1e8] sm:$0xff] %vm2100_vm1, %v4096_v4 }
 0x41e   : > { %v4098_v29 = vpop.eup %4097 }
 0x41f   : > { %2163 = vst.msk [vmem:[%s5259_s16 + $0x1f0] sm:$0xff] %vm2100_vm1, %v4098_v29 }
 0x420   : > { %s5690_s8 = smov (!%p2173_p7, %s2172_s8), 63 }
 0x421   : > { %s2727_s11 = sshll.u32 %s5690_s8, 7 }
 0x422   : > { %p2730_p9 = scmp.eq.s32.totalorder %s2727_s11, 0 }
 0x423   : > { %4100 = sdivrem.u32 (!%p2730_p9), %s5690_s8, 63 }
 0x424   : > { %2181 = sbr.rel (%p2730_p9) target bundleno = 1140 (0x474), region = 64 }
 0x42c   : > { %s5467_s12 = spop.drf %4100 }
 0x42d   : > { %p2731_p12 = scmp.le.s32.totalorder %s5467_s12, 0 }
 0x42e   : > { %s5678_s28 = smov (!%p2731_p12), %s5461_s27  ;;  %s5679_s13 = smov (!%p2731_p12), %s5259_s16 }
 0x42f   : > { %2594 = sbr.rel (%p2731_p12) target bundleno = 1111 (0x457), region = 146  ;;  %s5476_s22 = smov (!%p2731_p12), 0  }
 0x430   : > { %s5478_s23 = smov (!%p2731_p12), 0  }
 0x436 LB: >> { %v2369_v18 = vld [vmem:[%s4238_s13] sm:$0xff]  ;;  %v2371_v34 = vld [vmem:[%s4238_s13 + $0x8] sm:$0xff]  ;;  %v2373_v27 = vld [vmem:[%s4238_s13 + $0x10] sm:$0xff]  ;;  %s2495_s24 = sadd.s32 1, %s4242_s22  ;;  %s2363_s23 = sadd.s32 1, %s4246_s23   ;;  %s4246_s23 = sphi %s5478_s23, %s2363_s23   ;;  %s4242_s22 = sphi %s5476_s22, %s5682_s22   ;;  %s4238_s13 = sphi %s5679_s13, %s5681_s13   ;;  %s4234_s28 = sphi %s5678_s28, %s5680_s28  }
 0x437   : >> { %2370 = vst [vmem:[%s4234_s28] sm:$0xff] %v2369_v18  ;;  %2372 = vst [vmem:[%s4234_s28 + $0x8] sm:$0xff] %v2371_v34  ;;  %v2375_v35 = vld [vmem:[%s4238_s13 + $0x18] sm:$0xff]  ;;  %v2377_v13 = vld [vmem:[%s4238_s13 + $0x20] sm:$0xff]  ;;  %p2496_p0 = scmp.ge.s32.totalorder %s2495_s24, %s5467_s12  ;;  %p2362_p2 = scmp.ge.s32.totalorder %s2363_s23, %s5467_s12 }
 0x438   : >> { %2374 = vst [vmem:[%s4234_s28 + $0x10] sm:$0xff] %v2373_v27  ;;  %v2379_v33 = vld [vmem:[%s4238_s13 + $0x28] sm:$0xff]  ;;  %2376 = vst [vmem:[%s4234_s28 + $0x18] sm:$0xff] %v2375_v35  ;;  %v2381_v36 = vld [vmem:[%s4238_s13 + $0x30] sm:$0xff] }
 0x439   : >> { %2378 = vst [vmem:[%s4234_s28 + $0x20] sm:$0xff] %v2377_v13  ;;  %2380 = vst [vmem:[%s4234_s28 + $0x28] sm:$0xff] %v2379_v33  ;;  %v2383_v39 = vld [vmem:[%s4238_s13 + $0x38] sm:$0xff]  ;;  %v2385_v37 = vld [vmem:[%s4238_s13 + $0x40] sm:$0xff]  ;;  %s5692_s24 = smov (%p2496_p0, %s2495_s24), 0 }
 0x43a   : >> { %2382 = vst [vmem:[%s4234_s28 + $0x30] sm:$0xff] %v2381_v36  ;;  %2384 = vst [vmem:[%s4234_s28 + $0x38] sm:$0xff] %v2383_v39  ;;  %v2387_v45 = vld [vmem:[%s4238_s13 + $0x48] sm:$0xff]  ;;  %v2389_v22 = vld [vmem:[%s4238_s13 + $0x50] sm:$0xff]  ;;  %s2498_s14 = smul.u32 504, %s5692_s24  ;;  %s5682_s22 = smov %s5692_s24 }
 0x43b   : >> { %2386 = vst [vmem:[%s4234_s28 + $0x40] sm:$0xff] %v2385_v37  ;;  %v2391_v54 = vld [vmem:[%s4238_s13 + $0x58] sm:$0xff]  ;;  %2388 = vst [vmem:[%s4234_s28 + $0x48] sm:$0xff] %v2387_v45  ;;  %v2393_v43 = vld [vmem:[%s4238_s13 + $0x60] sm:$0xff] }
 0x43c   : >> { %2390 = vst [vmem:[%s4234_s28 + $0x50] sm:$0xff] %v2389_v22  ;;  %2392 = vst [vmem:[%s4234_s28 + $0x58] sm:$0xff] %v2391_v54  ;;  %v2395_v52 = vld [vmem:[%s4238_s13 + $0x68] sm:$0xff]  ;;  %v2397_v62 = vld [vmem:[%s4238_s13 + $0x70] sm:$0xff]  ;;  %s5540_s20 = scalar_lea.vmem %s5259_s16, %s2498_s14 [#allocation6]   ;;  %s5543_s21 = scalar_lea.vmem %s5461_s27, %s2498_s14  }
 0x43d   : >> { %2394 = vst [vmem:[%s4234_s28 + $0x60] sm:$0xff] %v2393_v43  ;;  %2396 = vst [vmem:[%s4234_s28 + $0x68] sm:$0xff] %v2395_v52  ;;  %v2399_v44 = vld [vmem:[%s4238_s13 + $0x78] sm:$0xff]  ;;  %v2401_v32 = vld [vmem:[%s4238_s13 + $0x80] sm:$0xff] }
 0x43e   : >> { %2398 = vst [vmem:[%s4234_s28 + $0x70] sm:$0xff] %v2397_v62  ;;  %v2403_v7 = vld [vmem:[%s4238_s13 + $0x88] sm:$0xff]  ;;  %2400 = vst [vmem:[%s4234_s28 + $0x78] sm:$0xff] %v2399_v44  ;;  %v2405_v47 = vld [vmem:[%s4238_s13 + $0x90] sm:$0xff] }
 0x43f   : >> { %2402 = vst [vmem:[%s4234_s28 + $0x80] sm:$0xff] %v2401_v32  ;;  %2404 = vst [vmem:[%s4234_s28 + $0x88] sm:$0xff] %v2403_v7  ;;  %v2407_v14 = vld [vmem:[%s4238_s13 + $0x98] sm:$0xff]  ;;  %v2409_v49 = vld [vmem:[%s4238_s13 + $0xa0] sm:$0xff] }
 0x440   : >> { %2406 = vst [vmem:[%s4234_s28 + $0x90] sm:$0xff] %v2405_v47  ;;  %2408 = vst [vmem:[%s4234_s28 + $0x98] sm:$0xff] %v2407_v14  ;;  %v2411_v24 = vld [vmem:[%s4238_s13 + $0xa8] sm:$0xff]  ;;  %v2413_v42 = vld [vmem:[%s4238_s13 + $0xb0] sm:$0xff] }
 0x441   : >> { %2410 = vst [vmem:[%s4234_s28 + $0xa0] sm:$0xff] %v2409_v49  ;;  %v2415_v50 = vld [vmem:[%s4238_s13 + $0xb8] sm:$0xff]  ;;  %2412 = vst [vmem:[%s4234_s28 + $0xa8] sm:$0xff] %v2411_v24  ;;  %v2417_v31 = vld [vmem:[%s4238_s13 + $0xc0] sm:$0xff] }
 0x442   : >> { %2414 = vst [vmem:[%s4234_s28 + $0xb0] sm:$0xff] %v2413_v42  ;;  %2416 = vst [vmem:[%s4234_s28 + $0xb8] sm:$0xff] %v2415_v50  ;;  %v2419_v38 = vld [vmem:[%s4238_s13 + $0xc8] sm:$0xff]  ;;  %v2421_v53 = vld [vmem:[%s4238_s13 + $0xd0] sm:$0xff] }
 0x443   : >> { %2418 = vst [vmem:[%s4234_s28 + $0xc0] sm:$0xff] %v2417_v31  ;;  %2420 = vst [vmem:[%s4234_s28 + $0xc8] sm:$0xff] %v2419_v38  ;;  %v2423_v51 = vld [vmem:[%s4238_s13 + $0xd8] sm:$0xff]  ;;  %v2425_v46 = vld [vmem:[%s4238_s13 + $0xe0] sm:$0xff] }
 0x444   : >> { %2422 = vst [vmem:[%s4234_s28 + $0xd0] sm:$0xff] %v2421_v53  ;;  %v2427_v58 = vld [vmem:[%s4238_s13 + $0xe8] sm:$0xff]  ;;  %2424 = vst [vmem:[%s4234_s28 + $0xd8] sm:$0xff] %v2423_v51  ;;  %v2429_v56 = vld [vmem:[%s4238_s13 + $0xf0] sm:$0xff] }
 0x445   : >> { %2426 = vst [vmem:[%s4234_s28 + $0xe0] sm:$0xff] %v2425_v46  ;;  %2428 = vst [vmem:[%s4234_s28 + $0xe8] sm:$0xff] %v2427_v58  ;;  %v2431_v59 = vld [vmem:[%s4238_s13 + $0xf8] sm:$0xff]  ;;  %v2433_v3 = vld [vmem:[%s4238_s13 + $0x100] sm:$0xff] }
 0x446   : >> { %2430 = vst [vmem:[%s4234_s28 + $0xf0] sm:$0xff] %v2429_v56  ;;  %2432 = vst [vmem:[%s4234_s28 + $0xf8] sm:$0xff] %v2431_v59  ;;  %v2435_v60 = vld [vmem:[%s4238_s13 + $0x108] sm:$0xff]  ;;  %v2437_v57 = vld [vmem:[%s4238_s13 + $0x110] sm:$0xff] }
 0x447   : >> { %2434 = vst [vmem:[%s4234_s28 + $0x100] sm:$0xff] %v2433_v3  ;;  %v2439_v63 = vld [vmem:[%s4238_s13 + $0x118] sm:$0xff]  ;;  %2436 = vst [vmem:[%s4234_s28 + $0x108] sm:$0xff] %v2435_v60  ;;  %v2441_v11 = vld [vmem:[%s4238_s13 + $0x120] sm:$0xff] }
 0x448   : >> { %2438 = vst [vmem:[%s4234_s28 + $0x110] sm:$0xff] %v2437_v57  ;;  %2440 = vst [vmem:[%s4234_s28 + $0x118] sm:$0xff] %v2439_v63  ;;  %v2443_v2 = vld [vmem:[%s4238_s13 + $0x128] sm:$0xff]  ;;  %v2445_v5 = vld [vmem:[%s4238_s13 + $0x130] sm:$0xff] }
 0x449   : >> { %2442 = vst [vmem:[%s4234_s28 + $0x120] sm:$0xff] %v2441_v11  ;;  %2444 = vst [vmem:[%s4234_s28 + $0x128] sm:$0xff] %v2443_v2  ;;  %v2447_v30 = vld [vmem:[%s4238_s13 + $0x138] sm:$0xff]  ;;  %v2449_v8 = vld [vmem:[%s4238_s13 + $0x140] sm:$0xff] }
 0x44a   : >> { %2446 = vst [vmem:[%s4234_s28 + $0x130] sm:$0xff] %v2445_v5  ;;  %v2451_v9 = vld [vmem:[%s4238_s13 + $0x148] sm:$0xff]  ;;  %2448 = vst [vmem:[%s4234_s28 + $0x138] sm:$0xff] %v2447_v30  ;;  %v2453_v10 = vld [vmem:[%s4238_s13 + $0x150] sm:$0xff] }
 0x44b   : >> { %2450 = vst [vmem:[%s4234_s28 + $0x140] sm:$0xff] %v2449_v8  ;;  %2452 = vst [vmem:[%s4234_s28 + $0x148] sm:$0xff] %v2451_v9  ;;  %v2455_v40 = vld [vmem:[%s4238_s13 + $0x158] sm:$0xff]  ;;  %v2457_v0 = vld [vmem:[%s4238_s13 + $0x160] sm:$0xff] }
 0x44c   : >> { %2454 = vst [vmem:[%s4234_s28 + $0x150] sm:$0xff] %v2453_v10  ;;  %2456 = vst [vmem:[%s4234_s28 + $0x158] sm:$0xff] %v2455_v40  ;;  %v2459_v15 = vld [vmem:[%s4238_s13 + $0x168] sm:$0xff]  ;;  %v2461_v16 = vld [vmem:[%s4238_s13 + $0x170] sm:$0xff] }
 0x44d   : >> { %2458 = vst [vmem:[%s4234_s28 + $0x160] sm:$0xff] %v2457_v0  ;;  %v2463_v17 = vld [vmem:[%s4238_s13 + $0x178] sm:$0xff]  ;;  %2460 = vst [vmem:[%s4234_s28 + $0x168] sm:$0xff] %v2459_v15  ;;  %v2465_v20 = vld [vmem:[%s4238_s13 + $0x180] sm:$0xff] }
 0x44e   : >> { %2462 = vst [vmem:[%s4234_s28 + $0x170] sm:$0xff] %v2461_v16  ;;  %2464 = vst [vmem:[%s4234_s28 + $0x178] sm:$0xff] %v2463_v17  ;;  %v2467_v48 = vld [vmem:[%s4238_s13 + $0x188] sm:$0xff]  ;;  %v2469_v21 = vld [vmem:[%s4238_s13 + $0x190] sm:$0xff] }
 0x44f   : >> { %2466 = vst [vmem:[%s4234_s28 + $0x180] sm:$0xff] %v2465_v20  ;;  %2468 = vst [vmem:[%s4234_s28 + $0x188] sm:$0xff] %v2467_v48  ;;  %v2471_v23 = vld [vmem:[%s4238_s13 + $0x198] sm:$0xff]  ;;  %v2473_v25 = vld [vmem:[%s4238_s13 + $0x1a0] sm:$0xff] }
 0x450   : >> { %2470 = vst [vmem:[%s4234_s28 + $0x190] sm:$0xff] %v2469_v21  ;;  %v2475_v19 = vld [vmem:[%s4238_s13 + $0x1a8] sm:$0xff]  ;;  %2472 = vst [vmem:[%s4234_s28 + $0x198] sm:$0xff] %v2471_v23  ;;  %v2477_v55 = vld [vmem:[%s4238_s13 + $0x1b0] sm:$0xff]  ;;  %2365 = sbr.rel (!%p2362_p2) target bundleno = 1078 (0x436), region = 152 }
 0x451   : >> { %2474 = vst [vmem:[%s4234_s28 + $0x1a0] sm:$0xff] %v2473_v25  ;;  %2476 = vst [vmem:[%s4234_s28 + $0x1a8] sm:$0xff] %v2475_v19  ;;  %v2479_v41 = vld [vmem:[%s4238_s13 + $0x1b8] sm:$0xff]  ;;  %v2481_v61 = vld [vmem:[%s4238_s13 + $0x1c0] sm:$0xff] }
 0x452   : >> { %2478 = vst [vmem:[%s4234_s28 + $0x1b0] sm:$0xff] %v2477_v55  ;;  %2480 = vst [vmem:[%s4234_s28 + $0x1b8] sm:$0xff] %v2479_v41  ;;  %v2483_v26 = vld [vmem:[%s4238_s13 + $0x1c8] sm:$0xff]  ;;  %v2485_v6 = vld [vmem:[%s4238_s13 + $0x1d0] sm:$0xff] }
 0x453   : >> { %2482 = vst [vmem:[%s4234_s28 + $0x1c0] sm:$0xff] %v2481_v61  ;;  %v2487_v1 = vld [vmem:[%s4238_s13 + $0x1d8] sm:$0xff]  ;;  %2484 = vst [vmem:[%s4234_s28 + $0x1c8] sm:$0xff] %v2483_v26  ;;  %v2489_v28 = vld [vmem:[%s4238_s13 + $0x1e0] sm:$0xff] }
 0x454   : >> { %2486 = vst [vmem:[%s4234_s28 + $0x1d0] sm:$0xff] %v2485_v6  ;;  %2488 = vst [vmem:[%s4234_s28 + $0x1d8] sm:$0xff] %v2487_v1  ;;  %v2491_v12 = vld [vmem:[%s4238_s13 + $0x1e8] sm:$0xff]  ;;  %v2493_v4 = vld [vmem:[%s4238_s13 + $0x1f0] sm:$0xff]  ;;  %s5681_s13 = smov %s5540_s20 }
 0x455   : >> { %2490 = vst [vmem:[%s4234_s28 + $0x1e0] sm:$0xff] %v2489_v28  ;;  %2492 = vst [vmem:[%s4234_s28 + $0x1e8] sm:$0xff] %v2491_v12 }
 0x456   : >> { %2494 = vst [vmem:[%s4234_s28 + $0x1f0] sm:$0xff] %v2493_v4  ;;  %s5680_s28 = smov %s5543_s21 }
 0x457 PF: > { %4102 = sdivrem.u32 %s5690_s8, 63 }
 0x458   : > { %s2732_s19 = smul.u32 504, %s5467_s12 }
 0x45a   : > { %s2506_s15 = scalar_lea.vmem %s5259_s16, %s2732_s19 [#allocation6]   ;;  %s2508_s10 = scalar_lea.vmem %s5461_s27, %s2732_s19  }
 0x460   : > { %s4103_s30 = spop.drf %4102 }
 0x461   : > { %p2734_p4 = scmp.le.s32.totalorder %s4103_s30, 0 }
 0x462   : > { %s4248_s17 = smov (!%p2734_p4), %s2508_s10   ;;  %s4252_s18 = smov (!%p2734_p4), %s2506_s15  }
 0x463   : > { %2608 = sbr.rel (%p2734_p4) target bundleno = 1140 (0x474), region = 157  ;;  %s4256_s11 = smov (!%p2734_p4), 0  }
 0x464   : > { %s4260_s14 = smov (!%p2734_p4), 0  }
 0x46a LB: >> { %v2518_v29 = vld [vmem:[%s4254_s18] sm:$0xff]  ;;  %s2520_s28 = sadd.s32 1, %s4258_s11  ;;  %s2512_s14 = sadd.s32 1, %s4262_s14   ;;  %s4262_s14 = sphi %s4260_s14, %s2512_s14   ;;  %s4258_s11 = sphi %s4256_s11, %s4257_s11   ;;  %s4254_s18 = sphi %s4252_s18, %s2525_s18   ;;  %s4250_s17 = sphi %s4248_s17, %s2526_s17  }
 0x46b   : >> { %2519 = vst [vmem:[%s4250_s17] sm:$0xff] %v2518_v29  ;;  %p2521_p8 = scmp.ge.s32.totalorder %s2520_s28, %s4103_s30  ;;  %p2511_p10 = scmp.ge.s32.totalorder %s2512_s14, %s4103_s30 }
 0x46d   : >> { %s5694_s28 = smov (%p2521_p8, %s2520_s28), 0  ;;  %2514 = sbr.rel (!%p2511_p10) target bundleno = 1130 (0x46a), region = 163 }
 0x46e   : >> { %s2735_s16 = sshll.u32 %s5694_s28, 3  ;;  %s4257_s11 = smov %s5694_s28  }
 0x46f   : >> { %s2525_s18 = scalar_lea.vmem %s2506_s15, %s2735_s16 [#allocation6]   ;;  %s2526_s17 = scalar_lea.vmem %s2508_s10, %s2735_s16  }
 0x474 PF: > { %p18_p13 = scmp.ge.s32.totalorder %s4335_s29, 4   ;;  %s5683_s24 = smov %s4222_s25 }
 0x475   : > { %s5684_s25 = smov %s4226_s26  ;;  %s5685_s26 = smov %s4345_s9 }
 0x476   : > { %s5686_s27 = smov %s4335_s29  ;;  %20 = sbr.rel (!%p18_p13) target bundleno = 4 (0x4), region = 174 }
 0x47d   :  { %2542 = vsyncpa [#allocation3], 1 }
 0x47e   :  { %2544 = vsyncpa [#allocation3 + $0x1], 1 }
 0x47f   :  { %2545 = vsyncpa [#allocation5], 1 }

</bundles_post_ra>
